<compile_context>
chip_gen: v7x
topology: tpu7x:2x2x1
jax: 0.10.0
libtpu: 0.0.40
codegen_flags: <defaults>
</compile_context>

<pallas_src>
import jax
import jax.numpy as jnp
from jax.experimental import pallas as pl
from jax.experimental.pallas import tpu as pltpu

INPUT_SIZE = 10
HIDDEN_SIZE = 20
NUM_LAYERS = 2      # hard-wired: 2 stacked LSTM layers below
OUTPUT_SIZE = 1

HP = 128            # per-gate lane-padded width (one full vreg lane slab)
BP = 8              # sublane-padded batch (one full sublane group)


def lstm_kernel(x_ref,       # (T*BP, I)      time-major, batch padded to BP
                wih0_ref,    # (I, 4*HP)      layer-0 input proj (gate-padded)
                b0_ref,      # (1, 4*HP)      layer-0 bias (b_ih + b_hh)
                whh0_ref,    # (HP, 4*HP)     layer-0 recurrent weights
                w1ih_ref,    # (HP, 4*HP)     layer-1 input weights (over h0)
                w1hh_ref,    # (HP, 4*HP)     layer-1 recurrent weights (over h1)
                b1_ref,      # (1, 4*HP)      layer-1 bias (b_ih + b_hh)
                wfc_ref,     # (1, HP)        final linear row
                bfc_ref,     # (1, 1)         final linear bias
                out_ref,     # (B, 1)
                gx_ref):     # scratch (T*BP, 4*HP): precomputed layer-0 input proj
    TB, _ = x_ref.shape
    T = TB // BP
    G = 4 * HP
    B = out_ref.shape[0]

    # ---- hoisted, non-recurrent work --------------------------------------
    # Layer-0 input projection for ALL timesteps as one MXU call, bias folded.
    gx_ref[...] = (jnp.dot(x_ref[...], wih0_ref[...],
                           preferred_element_type=jnp.float32) + b0_ref[...])

    whh0 = whh0_ref[...]
    w1ih = w1ih_ref[...]
    w1hh = w1hh_ref[...]
    b1b = jnp.broadcast_to(b1_ref[...], (BP, G))   # hoist: no per-step broadcast

    def gate_math(g, c):
        # whole-vreg (128-lane) gate slabs -> pure VPU/EUP, no lane rotates
        i_g = jax.nn.sigmoid(g[:, 0 * HP:1 * HP])
        f_g = jax.nn.sigmoid(g[:, 1 * HP:2 * HP])
        g_g = jnp.tanh(g[:, 2 * HP:3 * HP])
        o_g = jax.nn.sigmoid(g[:, 3 * HP:4 * HP])
        c_new = f_g * c + i_g * g_g
        h_new = o_g * jnp.tanh(c_new)
        return h_new, c_new

    # ---- recurrence: fully unrolled static time loop (T is small & fixed) --
    h0 = c0 = h1 = c1 = jnp.zeros((BP, HP), jnp.float32)
    for t in range(T):
        # layer-1 recurrent half: depends only on h1_{t-1} -> off the deepest
        # dependency chain, schedulable alongside layer-0's step-t work.
        r1 = jnp.dot(h1, w1hh, preferred_element_type=jnp.float32) + b1b
        # layer 0: only the recurrent matmul sits on the sequential chain
        g0 = (gx_ref[pl.ds(t * BP, BP), :]
              + jnp.dot(h0, whh0, preferred_element_type=jnp.float32))
        h0, c0 = gate_math(g0, c0)
        # layer 1: input half needs the fresh h0_t
        g1 = r1 + jnp.dot(h0, w1ih, preferred_element_type=jnp.float32)
        h1, c1 = gate_math(g1, c1)

    # final Linear on last-timestep top-layer hidden: VPU multiply-reduce
    out = jnp.sum(h1 * wfc_ref[...], axis=-1, keepdims=True) + bfc_ref[...]
    out_ref[...] = out[:B].astype(out_ref.dtype)


def init_params(key, input_size=INPUT_SIZE, hidden_size=HIDDEN_SIZE,
                output_size=OUTPUT_SIZE):
    """Deterministic parameter init (same shapes as nn.LSTM / nn.Linear)."""
    H, I = hidden_size, input_size
    ks = jax.random.split(key, 10)
    bound = 1.0 / jnp.sqrt(jnp.float32(H))

    def u(k, shape):
        return jax.random.uniform(k, shape, jnp.float32, -bound, bound)

    return {
        # PyTorch layout: weight_ih_l0 (4H, I), weight_hh_l0 (4H, H), biases (4H,)
        "w_ih_l0": u(ks[0], (4 * H, I)),
        "w_hh_l0": u(ks[1], (4 * H, H)),
        "b_ih_l0": u(ks[2], (4 * H,)),
        "b_hh_l0": u(ks[3], (4 * H,)),
        "w_ih_l1": u(ks[4], (4 * H, H)),
        "w_hh_l1": u(ks[5], (4 * H, H)),
        "b_ih_l1": u(ks[6], (4 * H,)),
        "b_hh_l1": u(ks[7], (4 * H,)),
        # fc: (out, H) + (out,)
        "w_fc": u(ks[8], (output_size, H)),
        "b_fc": u(ks[9], (output_size,)),
    }


def _pad_gate_cols(w, H):
    """(in, 4H) -> (in, 4*HP): gate k's H columns land at lanes [k*HP, k*HP+H)."""
    in_dim = w.shape[0]
    out = jnp.zeros((in_dim, 4 * HP), jnp.float32)
    for k in range(4):
        out = out.at[:, k * HP:k * HP + H].set(w[:, k * H:(k + 1) * H])
    return out


def _pad_rows(w, H):
    """(H, 4*HP) -> (HP, 4*HP): zero-pad the contraction rows to a full vreg."""
    return jnp.zeros((HP, 4 * HP), jnp.float32).at[:H, :].set(w)


def lstm_model_forward(x, p):
    """x: (B, T, I) batch_first, float32  ->  (B, OUTPUT_SIZE)."""
    B, T, I = x.shape
    H = HIDDEN_SIZE

    # time-major, batch padded to BP sublanes, flattened to 2D for one big matmul
    x_tm = jnp.transpose(x, (1, 0, 2)).astype(jnp.float32)          # (T, B, I)
    x_pad = jnp.zeros((T, BP, I), jnp.float32).at[:, :B, :].set(x_tm)
    x2d = x_pad.reshape(T * BP, I)                                   # (T*BP, I)

    # ---- layer 0 (gate-padded, pre-transposed to (in, 4*HP)) ----
    wih0 = _pad_gate_cols(p["w_ih_l0"].T.astype(jnp.float32), H)             # (I, 4HP)
    b0 = _pad_gate_cols((p["b_ih_l0"] + p["b_hh_l0"]).reshape(1, 4 * H), H)   # (1, 4HP)
    whh0 = _pad_rows(_pad_gate_cols(p["w_hh_l0"].T.astype(jnp.float32), H), H)  # (HP, 4HP)

    # ---- layer 1: separate input / recurrent weights (split dots in-kernel) ----
    w1ih = _pad_rows(_pad_gate_cols(p["w_ih_l1"].T.astype(jnp.float32), H), H)  # (HP, 4HP)
    w1hh = _pad_rows(_pad_gate_cols(p["w_hh_l1"].T.astype(jnp.float32), H), H)  # (HP, 4HP)
    b1 = _pad_gate_cols((p["b_ih_l1"] + p["b_hh_l1"]).reshape(1, 4 * H), H)     # (1, 4HP)

    # ---- final Linear (OUTPUT_SIZE == 1) ----
    wfc = jnp.zeros((1, HP), jnp.float32).at[:, :H].set(p["w_fc"].astype(jnp.float32))
    bfc = p["b_fc"].reshape(1, OUTPUT_SIZE).astype(jnp.float32)

    vmem = pl.BlockSpec(memory_space=pltpu.MemorySpace.VMEM)
    out = pl.pallas_call(
        lstm_kernel,
        out_shape=jax.ShapeDtypeStruct((B, OUTPUT_SIZE), jnp.float32),
        in_specs=[vmem] * 9,
        out_specs=vmem,
        scratch_shapes=[pltpu.VMEM((T * BP, 4 * HP), jnp.float32)],
    )(x2d, wih0, b0, whh0, w1ih, w1hh, b1, wfc, bfc)
    return out


def lstm_model_reference(x, p):
    """Pure-JAX reference mirroring torch nn.LSTM (batch_first) + Linear."""
    B, T, I = x.shape
    H = HIDDEN_SIZE

    def cell(x_t, h, c, w_ih, w_hh, b_ih, b_hh):
        gates = x_t @ w_ih.T + b_ih + h @ w_hh.T + b_hh
        i_g = jax.nn.sigmoid(gates[:, 0:H])
        f_g = jax.nn.sigmoid(gates[:, H:2 * H])
        g_g = jnp.tanh(gates[:, 2 * H:3 * H])
        o_g = jax.nn.sigmoid(gates[:, 3 * H:4 * H])
        c_new = f_g * c + i_g * g_g
        h_new = o_g * jnp.tanh(c_new)
        return h_new, c_new

    h0 = c0 = h1 = c1 = jnp.zeros((B, H), jnp.float32)
    for t in range(T):
        x_t = x[:, t, :]
        h0, c0 = cell(x_t, h0, c0, p["w_ih_l0"], p["w_hh_l0"],
                      p["b_ih_l0"], p["b_hh_l0"])
        h1, c1 = cell(h0, h1, c1, p["w_ih_l1"], p["w_hh_l1"],
                      p["b_ih_l1"], p["b_hh_l1"])
    return h1 @ p["w_fc"].T + p["b_fc"]


if __name__ == "__main__":
    key = jax.random.PRNGKey(0)
    k_param, k_x = jax.random.split(key)

    batch, seq = 2, 8
    x = jax.random.normal(k_x, (batch, seq, INPUT_SIZE), jnp.float32)
    params = init_params(k_param)

    out = lstm_model_forward(x, params)
    out = jax.block_until_ready(out)

    ref = lstm_model_reference(x, params)
    assert out.shape == (batch, OUTPUT_SIZE)
    assert jnp.allclose(out, ref, atol=1e-5, rtol=1e-5), (out, ref)

    print("KERNEL_OK")
</pallas_src>

<mosaic_0001>
module attributes {stable_mosaic.version = 11 : i64} {
  func.func @lstm_kernel(%arg0: memref<64x10xf32, #tpu.memory_space<vmem>>, %arg1: memref<10x512xf32, #tpu.memory_space<vmem>>, %arg2: memref<1x512xf32, #tpu.memory_space<vmem>>, %arg3: memref<128x512xf32, #tpu.memory_space<vmem>>, %arg4: memref<128x512xf32, #tpu.memory_space<vmem>>, %arg5: memref<128x512xf32, #tpu.memory_space<vmem>>, %arg6: memref<1x512xf32, #tpu.memory_space<vmem>>, %arg7: memref<1x128xf32, #tpu.memory_space<vmem>>, %arg8: memref<1x1xf32, #tpu.memory_space<vmem>>, %arg9: memref<2x1xf32, #tpu.memory_space<vmem>>, %arg10: memref<64x512xf32, #tpu.memory_space<vmem>>) attributes {dimension_semantics = [], scalar_prefetch = 0 : i64, scratch_operands = 1 : i64, tpu.core_type = #tpu.core_type<tc>} {
    %c0 = arith.constant 0 : index
    %c0_0 = arith.constant 0 : index
    %0 = vector.load %arg0[%c0, %c0_0] : memref<64x10xf32, #tpu.memory_space<vmem>>, vector<64x10xf32>
    %c0_1 = arith.constant 0 : index
    %c0_2 = arith.constant 0 : index
    %1 = vector.load %arg1[%c0_1, %c0_2] : memref<10x512xf32, #tpu.memory_space<vmem>>, vector<10x512xf32>
    %cst = arith.constant dense<0.000000e+00> : vector<64x512xf32>
    %2 = tpu.matmul %0, %1, %cst {dimension_numbers = #tpu.dot_dimension_numbers<[1], [0], [0], [1], [0, 0, 1, 1], [], []>} : vector<64x10xf32>, vector<10x512xf32>, vector<64x512xf32> -> vector<64x512xf32>
    %c0_3 = arith.constant 0 : index
    %c0_4 = arith.constant 0 : index
    %3 = vector.load %arg2[%c0_3, %c0_4] : memref<1x512xf32, #tpu.memory_space<vmem>>, vector<1x512xf32>
    %4 = vector.broadcast %3 : vector<1x512xf32> to vector<64x512xf32>
    %5 = arith.addf %2, %4 : vector<64x512xf32>
    %c0_5 = arith.constant 0 : index
    %c0_6 = arith.constant 0 : index
    %6 = vector.load %arg10[%c0_5, %c0_6] : memref<64x512xf32, #tpu.memory_space<vmem>>, vector<64x512xf32>
    tpu.vector_store %arg10[%c0_5, %c0_6], %5 {strides = array<i32>} : memref<64x512xf32, #tpu.memory_space<vmem>>, vector<64x512xf32>,
    %c0_7 = arith.constant 0 : index
    %c0_8 = arith.constant 0 : index
    %7 = vector.load %arg3[%c0_7, %c0_8] : memref<128x512xf32, #tpu.memory_space<vmem>>, vector<128x512xf32>
    %c0_9 = arith.constant 0 : index
    %c0_10 = arith.constant 0 : index
    %8 = vector.load %arg4[%c0_9, %c0_10] : memref<128x512xf32, #tpu.memory_space<vmem>>, vector<128x512xf32>
    %c0_11 = arith.constant 0 : index
    %c0_12 = arith.constant 0 : index
    %9 = vector.load %arg5[%c0_11, %c0_12] : memref<128x512xf32, #tpu.memory_space<vmem>>, vector<128x512xf32>
    %c0_13 = arith.constant 0 : index
    %c0_14 = arith.constant 0 : index
    %10 = vector.load %arg6[%c0_13, %c0_14] : memref<1x512xf32, #tpu.memory_space<vmem>>, vector<1x512xf32>
    %11 = vector.shape_cast %10 : vector<1x512xf32> to vector<1x512xf32>
    %12 = vector.broadcast %11 : vector<1x512xf32> to vector<8x512xf32>
    %cst_15 = arith.constant 0.000000e+00 : f32
    %13 = vector.broadcast %cst_15 : f32 to vector<8x128xf32>
    %cst_16 = arith.constant dense<0.000000e+00> : vector<8x512xf32>
    %14 = tpu.matmul %13, %9, %cst_16 {dimension_numbers = #tpu.dot_dimension_numbers<[1], [0], [0], [1], [0, 0, 1, 1], [], []>} : vector<8x128xf32>, vector<128x512xf32>, vector<8x512xf32> -> vector<8x512xf32>
    %15 = arith.addf %14, %12 : vector<8x512xf32>
    %c0_17 = arith.constant 0 : index
    %c0_18 = arith.constant 0 : index
    %16 = vector.load %arg10[%c0_17, %c0_18] : memref<64x512xf32, #tpu.memory_space<vmem>>, vector<8x512xf32>
    %cst_19 = arith.constant dense<0.000000e+00> : vector<8x512xf32>
    %17 = tpu.matmul %13, %7, %cst_19 {dimension_numbers = #tpu.dot_dimension_numbers<[1], [0], [0], [1], [0, 0, 1, 1], [], []>} : vector<8x128xf32>, vector<128x512xf32>, vector<8x512xf32> -> vector<8x512xf32>
    %18 = arith.addf %16, %17 : vector<8x512xf32>
    %19 = vector.extract_strided_slice %18 {offsets = [0, 0], sizes = [8, 128], strides = [1, 1]} : vector<8x512xf32> to vector<8x128xf32>
    %20 = arith.negf %19 : vector<8x128xf32>
    %21 = math.exp %20 : vector<8x128xf32>
    %cst_20 = arith.constant 1.000000e+00 : f32
    %22 = vector.broadcast %cst_20 : f32 to vector<8x128xf32>
    %23 = arith.addf %22, %21 : vector<8x128xf32>
    %24 = arith.divf %22, %23 : vector<8x128xf32>
    %25 = vector.extract_strided_slice %18 {offsets = [0, 128], sizes = [8, 128], strides = [1, 1]} : vector<8x512xf32> to vector<8x128xf32>
    %26 = arith.negf %25 : vector<8x128xf32>
    %27 = math.exp %26 : vector<8x128xf32>
    %cst_21 = arith.constant 1.000000e+00 : f32
    %28 = vector.broadcast %cst_21 : f32 to vector<8x128xf32>
    %29 = arith.addf %28, %27 : vector<8x128xf32>
    %30 = arith.divf %28, %29 : vector<8x128xf32>
    %31 = vector.extract_strided_slice %18 {offsets = [0, 256], sizes = [8, 128], strides = [1, 1]} : vector<8x512xf32> to vector<8x128xf32>
    %32 = math.tanh %31 : vector<8x128xf32>
    %33 = vector.extract_strided_slice %18 {offsets = [0, 384], sizes = [8, 128], strides = [1, 1]} : vector<8x512xf32> to vector<8x128xf32>
    %34 = arith.negf %33 : vector<8x128xf32>
    %35 = math.exp %34 : vector<8x128xf32>
    %cst_22 = arith.constant 1.000000e+00 : f32
    %36 = vector.broadcast %cst_22 : f32 to vector<8x128xf32>
    %37 = arith.addf %36, %35 : vector<8x128xf32>
    %38 = arith.divf %36, %37 : vector<8x128xf32>
    %39 = arith.mulf %30, %13 : vector<8x128xf32>
    %40 = arith.mulf %24, %32 : vector<8x128xf32>
    %41 = arith.addf %39, %40 : vector<8x128xf32>
    %42 = math.tanh %41 : vector<8x128xf32>
    %43 = arith.mulf %38, %42 : vector<8x128xf32>
    %cst_23 = arith.constant dense<0.000000e+00> : vector<8x512xf32>
    %44 = tpu.matmul %43, %8, %cst_23 {dimension_numbers = #tpu.dot_dimension_numbers<[1], [0], [0], [1], [0, 0, 1, 1], [], []>} : vector<8x128xf32>, vector<128x512xf32>, vector<8x512xf32> -> vector<8x512xf32>
    %45 = arith.addf %15, %44 : vector<8x512xf32>
    %46 = vector.extract_strided_slice %45 {offsets = [0, 0], sizes = [8, 128], strides = [1, 1]} : vector<8x512xf32> to vector<8x128xf32>
    %47 = arith.negf %46 : vector<8x128xf32>
    %48 = math.exp %47 : vector<8x128xf32>
    %cst_24 = arith.constant 1.000000e+00 : f32
    %49 = vector.broadcast %cst_24 : f32 to vector<8x128xf32>
    %50 = arith.addf %49, %48 : vector<8x128xf32>
    %51 = arith.divf %49, %50 : vector<8x128xf32>
    %52 = vector.extract_strided_slice %45 {offsets = [0, 128], sizes = [8, 128], strides = [1, 1]} : vector<8x512xf32> to vector<8x128xf32>
    %53 = arith.negf %52 : vector<8x128xf32>
    %54 = math.exp %53 : vector<8x128xf32>
    %cst_25 = arith.constant 1.000000e+00 : f32
    %55 = vector.broadcast %cst_25 : f32 to vector<8x128xf32>
    %56 = arith.addf %55, %54 : vector<8x128xf32>
    %57 = arith.divf %55, %56 : vector<8x128xf32>
    %58 = vector.extract_strided_slice %45 {offsets = [0, 256], sizes = [8, 128], strides = [1, 1]} : vector<8x512xf32> to vector<8x128xf32>
    %59 = math.tanh %58 : vector<8x128xf32>
    %60 = vector.extract_strided_slice %45 {offsets = [0, 384], sizes = [8, 128], strides = [1, 1]} : vector<8x512xf32> to vector<8x128xf32>
    %61 = arith.negf %60 : vector<8x128xf32>
    %62 = math.exp %61 : vector<8x128xf32>
    %cst_26 = arith.constant 1.000000e+00 : f32
    %63 = vector.broadcast %cst_26 : f32 to vector<8x128xf32>
    %64 = arith.addf %63, %62 : vector<8x128xf32>
    %65 = arith.divf %63, %64 : vector<8x128xf32>
    %66 = arith.mulf %57, %13 : vector<8x128xf32>
    %67 = arith.mulf %51, %59 : vector<8x128xf32>
    %68 = arith.addf %66, %67 : vector<8x128xf32>
    %69 = math.tanh %68 : vector<8x128xf32>
    %70 = arith.mulf %65, %69 : vector<8x128xf32>
    %cst_27 = arith.constant dense<0.000000e+00> : vector<8x512xf32>
    %71 = tpu.matmul %70, %9, %cst_27 {dimension_numbers = #tpu.dot_dimension_numbers<[1], [0], [0], [1], [0, 0, 1, 1], [], []>} : vector<8x128xf32>, vector<128x512xf32>, vector<8x512xf32> -> vector<8x512xf32>
    %72 = arith.addf %71, %12 : vector<8x512xf32>
    %c8 = arith.constant 8 : index
    %c0_28 = arith.constant 0 : index
    %73 = vector.load %arg10[%c8, %c0_28] : memref<64x512xf32, #tpu.memory_space<vmem>>, vector<8x512xf32>
    %cst_29 = arith.constant dense<0.000000e+00> : vector<8x512xf32>
    %74 = tpu.matmul %43, %7, %cst_29 {dimension_numbers = #tpu.dot_dimension_numbers<[1], [0], [0], [1], [0, 0, 1, 1], [], []>} : vector<8x128xf32>, vector<128x512xf32>, vector<8x512xf32> -> vector<8x512xf32>
    %75 = arith.addf %73, %74 : vector<8x512xf32>
    %76 = vector.extract_strided_slice %75 {offsets = [0, 0], sizes = [8, 128], strides = [1, 1]} : vector<8x512xf32> to vector<8x128xf32>
    %77 = arith.negf %76 : vector<8x128xf32>
    %78 = math.exp %77 : vector<8x128xf32>
    %cst_30 = arith.constant 1.000000e+00 : f32
    %79 = vector.broadcast %cst_30 : f32 to vector<8x128xf32>
    %80 = arith.addf %79, %78 : vector<8x128xf32>
    %81 = arith.divf %79, %80 : vector<8x128xf32>
    %82 = vector.extract_strided_slice %75 {offsets = [0, 128], sizes = [8, 128], strides = [1, 1]} : vector<8x512xf32> to vector<8x128xf32>
    %83 = arith.negf %82 : vector<8x128xf32>
    %84 = math.exp %83 : vector<8x128xf32>
    %cst_31 = arith.constant 1.000000e+00 : f32
    %85 = vector.broadcast %cst_31 : f32 to vector<8x128xf32>
    %86 = arith.addf %85, %84 : vector<8x128xf32>
    %87 = arith.divf %85, %86 : vector<8x128xf32>
    %88 = vector.extract_strided_slice %75 {offsets = [0, 256], sizes = [8, 128], strides = [1, 1]} : vector<8x512xf32> to vector<8x128xf32>
    %89 = math.tanh %88 : vector<8x128xf32>
    %90 = vector.extract_strided_slice %75 {offsets = [0, 384], sizes = [8, 128], strides = [1, 1]} : vector<8x512xf32> to vector<8x128xf32>
    %91 = arith.negf %90 : vector<8x128xf32>
    %92 = math.exp %91 : vector<8x128xf32>
    %cst_32 = arith.constant 1.000000e+00 : f32
    %93 = vector.broadcast %cst_32 : f32 to vector<8x128xf32>
    %94 = arith.addf %93, %92 : vector<8x128xf32>
    %95 = arith.divf %93, %94 : vector<8x128xf32>
    %96 = arith.mulf %87, %41 : vector<8x128xf32>
    %97 = arith.mulf %81, %89 : vector<8x128xf32>
    %98 = arith.addf %96, %97 : vector<8x128xf32>
    %99 = math.tanh %98 : vector<8x128xf32>
    %100 = arith.mulf %95, %99 : vector<8x128xf32>
    %cst_33 = arith.constant dense<0.000000e+00> : vector<8x512xf32>
    %101 = tpu.matmul %100, %8, %cst_33 {dimension_numbers = #tpu.dot_dimension_numbers<[1], [0], [0], [1], [0, 0, 1, 1], [], []>} : vector<8x128xf32>, vector<128x512xf32>, vector<8x512xf32> -> vector<8x512xf32>
    %102 = arith.addf %72, %101 : vector<8x512xf32>
    %103 = vector.extract_strided_slice %102 {offsets = [0, 0], sizes = [8, 128], strides = [1, 1]} : vector<8x512xf32> to vector<8x128xf32>
    %104 = arith.negf %103 : vector<8x128xf32>
    %105 = math.exp %104 : vector<8x128xf32>
    %cst_34 = arith.constant 1.000000e+00 : f32
    %106 = vector.broadcast %cst_34 : f32 to vector<8x128xf32>
    %107 = arith.addf %106, %105 : vector<8x128xf32>
    %108 = arith.divf %106, %107 : vector<8x128xf32>
    %109 = vector.extract_strided_slice %102 {offsets = [0, 128], sizes = [8, 128], strides = [1, 1]} : vector<8x512xf32> to vector<8x128xf32>
    %110 = arith.negf %109 : vector<8x128xf32>
    %111 = math.exp %110 : vector<8x128xf32>
    %cst_35 = arith.constant 1.000000e+00 : f32
    %112 = vector.broadcast %cst_35 : f32 to vector<8x128xf32>
    %113 = arith.addf %112, %111 : vector<8x128xf32>
    %114 = arith.divf %112, %113 : vector<8x128xf32>
    %115 = vector.extract_strided_slice %102 {offsets = [0, 256], sizes = [8, 128], strides = [1, 1]} : vector<8x512xf32> to vector<8x128xf32>
    %116 = math.tanh %115 : vector<8x128xf32>
    %117 = vector.extract_strided_slice %102 {offsets = [0, 384], sizes = [8, 128], strides = [1, 1]} : vector<8x512xf32> to vector<8x128xf32>
    %118 = arith.negf %117 : vector<8x128xf32>
    %119 = math.exp %118 : vector<8x128xf32>
    %cst_36 = arith.constant 1.000000e+00 : f32
    %120 = vector.broadcast %cst_36 : f32 to vector<8x128xf32>
    %121 = arith.addf %120, %119 : vector<8x128xf32>
    %122 = arith.divf %120, %121 : vector<8x128xf32>
    %123 = arith.mulf %114, %68 : vector<8x128xf32>
    %124 = arith.mulf %108, %116 : vector<8x128xf32>
    %125 = arith.addf %123, %124 : vector<8x128xf32>
    %126 = math.tanh %125 : vector<8x128xf32>
    %127 = arith.mulf %122, %126 : vector<8x128xf32>
    %cst_37 = arith.constant dense<0.000000e+00> : vector<8x512xf32>
    %128 = tpu.matmul %127, %9, %cst_37 {dimension_numbers = #tpu.dot_dimension_numbers<[1], [0], [0], [1], [0, 0, 1, 1], [], []>} : vector<8x128xf32>, vector<128x512xf32>, vector<8x512xf32> -> vector<8x512xf32>
    %129 = arith.addf %128, %12 : vector<8x512xf32>
    %c16 = arith.constant 16 : index
    %c0_38 = arith.constant 0 : index
    %130 = vector.load %arg10[%c16, %c0_38] : memref<64x512xf32, #tpu.memory_space<vmem>>, vector<8x512xf32>
    %cst_39 = arith.constant dense<0.000000e+00> : vector<8x512xf32>
    %131 = tpu.matmul %100, %7, %cst_39 {dimension_numbers = #tpu.dot_dimension_numbers<[1], [0], [0], [1], [0, 0, 1, 1], [], []>} : vector<8x128xf32>, vector<128x512xf32>, vector<8x512xf32> -> vector<8x512xf32>
    %132 = arith.addf %130, %131 : vector<8x512xf32>
    %133 = vector.extract_strided_slice %132 {offsets = [0, 0], sizes = [8, 128], strides = [1, 1]} : vector<8x512xf32> to vector<8x128xf32>
    %134 = arith.negf %133 : vector<8x128xf32>
    %135 = math.exp %134 : vector<8x128xf32>
    %cst_40 = arith.constant 1.000000e+00 : f32
    %136 = vector.broadcast %cst_40 : f32 to vector<8x128xf32>
    %137 = arith.addf %136, %135 : vector<8x128xf32>
    %138 = arith.divf %136, %137 : vector<8x128xf32>
    %139 = vector.extract_strided_slice %132 {offsets = [0, 128], sizes = [8, 128], strides = [1, 1]} : vector<8x512xf32> to vector<8x128xf32>
    %140 = arith.negf %139 : vector<8x128xf32>
    %141 = math.exp %140 : vector<8x128xf32>
    %cst_41 = arith.constant 1.000000e+00 : f32
    %142 = vector.broadcast %cst_41 : f32 to vector<8x128xf32>
    %143 = arith.addf %142, %141 : vector<8x128xf32>
    %144 = arith.divf %142, %143 : vector<8x128xf32>
    %145 = vector.extract_strided_slice %132 {offsets = [0, 256], sizes = [8, 128], strides = [1, 1]} : vector<8x512xf32> to vector<8x128xf32>
    %146 = math.tanh %145 : vector<8x128xf32>
    %147 = vector.extract_strided_slice %132 {offsets = [0, 384], sizes = [8, 128], strides = [1, 1]} : vector<8x512xf32> to vector<8x128xf32>
    %148 = arith.negf %147 : vector<8x128xf32>
    %149 = math.exp %148 : vector<8x128xf32>
    %cst_42 = arith.constant 1.000000e+00 : f32
    %150 = vector.broadcast %cst_42 : f32 to vector<8x128xf32>
    %151 = arith.addf %150, %149 : vector<8x128xf32>
    %152 = arith.divf %150, %151 : vector<8x128xf32>
    %153 = arith.mulf %144, %98 : vector<8x128xf32>
    %154 = arith.mulf %138, %146 : vector<8x128xf32>
    %155 = arith.addf %153, %154 : vector<8x128xf32>
    %156 = math.tanh %155 : vector<8x128xf32>
    %157 = arith.mulf %152, %156 : vector<8x128xf32>
    %cst_43 = arith.constant dense<0.000000e+00> : vector<8x512xf32>
    %158 = tpu.matmul %157, %8, %cst_43 {dimension_numbers = #tpu.dot_dimension_numbers<[1], [0], [0], [1], [0, 0, 1, 1], [], []>} : vector<8x128xf32>, vector<128x512xf32>, vector<8x512xf32> -> vector<8x512xf32>
    %159 = arith.addf %129, %158 : vector<8x512xf32>
    %160 = vector.extract_strided_slice %159 {offsets = [0, 0], sizes = [8, 128], strides = [1, 1]} : vector<8x512xf32> to vector<8x128xf32>
    %161 = arith.negf %160 : vector<8x128xf32>
    %162 = math.exp %161 : vector<8x128xf32>
    %cst_44 = arith.constant 1.000000e+00 : f32
    %163 = vector.broadcast %cst_44 : f32 to vector<8x128xf32>
    %164 = arith.addf %163, %162 : vector<8x128xf32>
    %165 = arith.divf %163, %164 : vector<8x128xf32>
    %166 = vector.extract_strided_slice %159 {offsets = [0, 128], sizes = [8, 128], strides = [1, 1]} : vector<8x512xf32> to vector<8x128xf32>
    %167 = arith.negf %166 : vector<8x128xf32>
    %168 = math.exp %167 : vector<8x128xf32>
    %cst_45 = arith.constant 1.000000e+00 : f32
    %169 = vector.broadcast %cst_45 : f32 to vector<8x128xf32>
    %170 = arith.addf %169, %168 : vector<8x128xf32>
    %171 = arith.divf %169, %170 : vector<8x128xf32>
    %172 = vector.extract_strided_slice %159 {offsets = [0, 256], sizes = [8, 128], strides = [1, 1]} : vector<8x512xf32> to vector<8x128xf32>
    %173 = math.tanh %172 : vector<8x128xf32>
    %174 = vector.extract_strided_slice %159 {offsets = [0, 384], sizes = [8, 128], strides = [1, 1]} : vector<8x512xf32> to vector<8x128xf32>
    %175 = arith.negf %174 : vector<8x128xf32>
    %176 = math.exp %175 : vector<8x128xf32>
    %cst_46 = arith.constant 1.000000e+00 : f32
    %177 = vector.broadcast %cst_46 : f32 to vector<8x128xf32>
    %178 = arith.addf %177, %176 : vector<8x128xf32>
    %179 = arith.divf %177, %178 : vector<8x128xf32>
    %180 = arith.mulf %171, %125 : vector<8x128xf32>
    %181 = arith.mulf %165, %173 : vector<8x128xf32>
    %182 = arith.addf %180, %181 : vector<8x128xf32>
    %183 = math.tanh %182 : vector<8x128xf32>
    %184 = arith.mulf %179, %183 : vector<8x128xf32>
    %cst_47 = arith.constant dense<0.000000e+00> : vector<8x512xf32>
    %185 = tpu.matmul %184, %9, %cst_47 {dimension_numbers = #tpu.dot_dimension_numbers<[1], [0], [0], [1], [0, 0, 1, 1], [], []>} : vector<8x128xf32>, vector<128x512xf32>, vector<8x512xf32> -> vector<8x512xf32>
    %186 = arith.addf %185, %12 : vector<8x512xf32>
    %c24 = arith.constant 24 : index
    %c0_48 = arith.constant 0 : index
    %187 = vector.load %arg10[%c24, %c0_48] : memref<64x512xf32, #tpu.memory_space<vmem>>, vector<8x512xf32>
    %cst_49 = arith.constant dense<0.000000e+00> : vector<8x512xf32>
    %188 = tpu.matmul %157, %7, %cst_49 {dimension_numbers = #tpu.dot_dimension_numbers<[1], [0], [0], [1], [0, 0, 1, 1], [], []>} : vector<8x128xf32>, vector<128x512xf32>, vector<8x512xf32> -> vector<8x512xf32>
    %189 = arith.addf %187, %188 : vector<8x512xf32>
    %190 = vector.extract_strided_slice %189 {offsets = [0, 0], sizes = [8, 128], strides = [1, 1]} : vector<8x512xf32> to vector<8x128xf32>
    %191 = arith.negf %190 : vector<8x128xf32>
    %192 = math.exp %191 : vector<8x128xf32>
    %cst_50 = arith.constant 1.000000e+00 : f32
    %193 = vector.broadcast %cst_50 : f32 to vector<8x128xf32>
    %194 = arith.addf %193, %192 : vector<8x128xf32>
    %195 = arith.divf %193, %194 : vector<8x128xf32>
    %196 = vector.extract_strided_slice %189 {offsets = [0, 128], sizes = [8, 128], strides = [1, 1]} : vector<8x512xf32> to vector<8x128xf32>
    %197 = arith.negf %196 : vector<8x128xf32>
    %198 = math.exp %197 : vector<8x128xf32>
    %cst_51 = arith.constant 1.000000e+00 : f32
    %199 = vector.broadcast %cst_51 : f32 to vector<8x128xf32>
    %200 = arith.addf %199, %198 : vector<8x128xf32>
    %201 = arith.divf %199, %200 : vector<8x128xf32>
    %202 = vector.extract_strided_slice %189 {offsets = [0, 256], sizes = [8, 128], strides = [1, 1]} : vector<8x512xf32> to vector<8x128xf32>
    %203 = math.tanh %202 : vector<8x128xf32>
    %204 = vector.extract_strided_slice %189 {offsets = [0, 384], sizes = [8, 128], strides = [1, 1]} : vector<8x512xf32> to vector<8x128xf32>
    %205 = arith.negf %204 : vector<8x128xf32>
    %206 = math.exp %205 : vector<8x128xf32>
    %cst_52 = arith.constant 1.000000e+00 : f32
    %207 = vector.broadcast %cst_52 : f32 to vector<8x128xf32>
    %208 = arith.addf %207, %206 : vector<8x128xf32>
    %209 = arith.divf %207, %208 : vector<8x128xf32>
    %210 = arith.mulf %201, %155 : vector<8x128xf32>
    %211 = arith.mulf %195, %203 : vector<8x128xf32>
    %212 = arith.addf %210, %211 : vector<8x128xf32>
    %213 = math.tanh %212 : vector<8x128xf32>
    %214 = arith.mulf %209, %213 : vector<8x128xf32>
    %cst_53 = arith.constant dense<0.000000e+00> : vector<8x512xf32>
    %215 = tpu.matmul %214, %8, %cst_53 {dimension_numbers = #tpu.dot_dimension_numbers<[1], [0], [0], [1], [0, 0, 1, 1], [], []>} : vector<8x128xf32>, vector<128x512xf32>, vector<8x512xf32> -> vector<8x512xf32>
    %216 = arith.addf %186, %215 : vector<8x512xf32>
    %217 = vector.extract_strided_slice %216 {offsets = [0, 0], sizes = [8, 128], strides = [1, 1]} : vector<8x512xf32> to vector<8x128xf32>
    %218 = arith.negf %217 : vector<8x128xf32>
    %219 = math.exp %218 : vector<8x128xf32>
    %cst_54 = arith.constant 1.000000e+00 : f32
    %220 = vector.broadcast %cst_54 : f32 to vector<8x128xf32>
    %221 = arith.addf %220, %219 : vector<8x128xf32>
    %222 = arith.divf %220, %221 : vector<8x128xf32>
    %223 = vector.extract_strided_slice %216 {offsets = [0, 128], sizes = [8, 128], strides = [1, 1]} : vector<8x512xf32> to vector<8x128xf32>
    %224 = arith.negf %223 : vector<8x128xf32>
    %225 = math.exp %224 : vector<8x128xf32>
    %cst_55 = arith.constant 1.000000e+00 : f32
    %226 = vector.broadcast %cst_55 : f32 to vector<8x128xf32>
    %227 = arith.addf %226, %225 : vector<8x128xf32>
    %228 = arith.divf %226, %227 : vector<8x128xf32>
    %229 = vector.extract_strided_slice %216 {offsets = [0, 256], sizes = [8, 128], strides = [1, 1]} : vector<8x512xf32> to vector<8x128xf32>
    %230 = math.tanh %229 : vector<8x128xf32>
    %231 = vector.extract_strided_slice %216 {offsets = [0, 384], sizes = [8, 128], strides = [1, 1]} : vector<8x512xf32> to vector<8x128xf32>
    %232 = arith.negf %231 : vector<8x128xf32>
    %233 = math.exp %232 : vector<8x128xf32>
    %cst_56 = arith.constant 1.000000e+00 : f32
    %234 = vector.broadcast %cst_56 : f32 to vector<8x128xf32>
    %235 = arith.addf %234, %233 : vector<8x128xf32>
    %236 = arith.divf %234, %235 : vector<8x128xf32>
    %237 = arith.mulf %228, %182 : vector<8x128xf32>
    %238 = arith.mulf %222, %230 : vector<8x128xf32>
    %239 = arith.addf %237, %238 : vector<8x128xf32>
    %240 = math.tanh %239 : vector<8x128xf32>
    %241 = arith.mulf %236, %240 : vector<8x128xf32>
    %cst_57 = arith.constant dense<0.000000e+00> : vector<8x512xf32>
    %242 = tpu.matmul %241, %9, %cst_57 {dimension_numbers = #tpu.dot_dimension_numbers<[1], [0], [0], [1], [0, 0, 1, 1], [], []>} : vector<8x128xf32>, vector<128x512xf32>, vector<8x512xf32> -> vector<8x512xf32>
    %243 = arith.addf %242, %12 : vector<8x512xf32>
    %c32 = arith.constant 32 : index
    %c0_58 = arith.constant 0 : index
    %244 = vector.load %arg10[%c32, %c0_58] : memref<64x512xf32, #tpu.memory_space<vmem>>, vector<8x512xf32>
    %cst_59 = arith.constant dense<0.000000e+00> : vector<8x512xf32>
    %245 = tpu.matmul %214, %7, %cst_59 {dimension_numbers = #tpu.dot_dimension_numbers<[1], [0], [0], [1], [0, 0, 1, 1], [], []>} : vector<8x128xf32>, vector<128x512xf32>, vector<8x512xf32> -> vector<8x512xf32>
    %246 = arith.addf %244, %245 : vector<8x512xf32>
    %247 = vector.extract_strided_slice %246 {offsets = [0, 0], sizes = [8, 128], strides = [1, 1]} : vector<8x512xf32> to vector<8x128xf32>
    %248 = arith.negf %247 : vector<8x128xf32>
    %249 = math.exp %248 : vector<8x128xf32>
    %cst_60 = arith.constant 1.000000e+00 : f32
    %250 = vector.broadcast %cst_60 : f32 to vector<8x128xf32>
    %251 = arith.addf %250, %249 : vector<8x128xf32>
    %252 = arith.divf %250, %251 : vector<8x128xf32>
    %253 = vector.extract_strided_slice %246 {offsets = [0, 128], sizes = [8, 128], strides = [1, 1]} : vector<8x512xf32> to vector<8x128xf32>
    %254 = arith.negf %253 : vector<8x128xf32>
    %255 = math.exp %254 : vector<8x128xf32>
    %cst_61 = arith.constant 1.000000e+00 : f32
    %256 = vector.broadcast %cst_61 : f32 to vector<8x128xf32>
    %257 = arith.addf %256, %255 : vector<8x128xf32>
    %258 = arith.divf %256, %257 : vector<8x128xf32>
    %259 = vector.extract_strided_slice %246 {offsets = [0, 256], sizes = [8, 128], strides = [1, 1]} : vector<8x512xf32> to vector<8x128xf32>
    %260 = math.tanh %259 : vector<8x128xf32>
    %261 = vector.extract_strided_slice %246 {offsets = [0, 384], sizes = [8, 128], strides = [1, 1]} : vector<8x512xf32> to vector<8x128xf32>
    %262 = arith.negf %261 : vector<8x128xf32>
    %263 = math.exp %262 : vector<8x128xf32>
    %cst_62 = arith.constant 1.000000e+00 : f32
    %264 = vector.broadcast %cst_62 : f32 to vector<8x128xf32>
    %265 = arith.addf %264, %263 : vector<8x128xf32>
    %266 = arith.divf %264, %265 : vector<8x128xf32>
    %267 = arith.mulf %258, %212 : vector<8x128xf32>
    %268 = arith.mulf %252, %260 : vector<8x128xf32>
    %269 = arith.addf %267, %268 : vector<8x128xf32>
    %270 = math.tanh %269 : vector<8x128xf32>
    %271 = arith.mulf %266, %270 : vector<8x128xf32>
    %cst_63 = arith.constant dense<0.000000e+00> : vector<8x512xf32>
    %272 = tpu.matmul %271, %8, %cst_63 {dimension_numbers = #tpu.dot_dimension_numbers<[1], [0], [0], [1], [0, 0, 1, 1], [], []>} : vector<8x128xf32>, vector<128x512xf32>, vector<8x512xf32> -> vector<8x512xf32>
    %273 = arith.addf %243, %272 : vector<8x512xf32>
    %274 = vector.extract_strided_slice %273 {offsets = [0, 0], sizes = [8, 128], strides = [1, 1]} : vector<8x512xf32> to vector<8x128xf32>
    %275 = arith.negf %274 : vector<8x128xf32>
    %276 = math.exp %275 : vector<8x128xf32>
    %cst_64 = arith.constant 1.000000e+00 : f32
    %277 = vector.broadcast %cst_64 : f32 to vector<8x128xf32>
    %278 = arith.addf %277, %276 : vector<8x128xf32>
    %279 = arith.divf %277, %278 : vector<8x128xf32>
    %280 = vector.extract_strided_slice %273 {offsets = [0, 128], sizes = [8, 128], strides = [1, 1]} : vector<8x512xf32> to vector<8x128xf32>
    %281 = arith.negf %280 : vector<8x128xf32>
    %282 = math.exp %281 : vector<8x128xf32>
    %cst_65 = arith.constant 1.000000e+00 : f32
    %283 = vector.broadcast %cst_65 : f32 to vector<8x128xf32>
    %284 = arith.addf %283, %282 : vector<8x128xf32>
    %285 = arith.divf %283, %284 : vector<8x128xf32>
    %286 = vector.extract_strided_slice %273 {offsets = [0, 256], sizes = [8, 128], strides = [1, 1]} : vector<8x512xf32> to vector<8x128xf32>
    %287 = math.tanh %286 : vector<8x128xf32>
    %288 = vector.extract_strided_slice %273 {offsets = [0, 384], sizes = [8, 128], strides = [1, 1]} : vector<8x512xf32> to vector<8x128xf32>
    %289 = arith.negf %288 : vector<8x128xf32>
    %290 = math.exp %289 : vector<8x128xf32>
    %cst_66 = arith.constant 1.000000e+00 : f32
    %291 = vector.broadcast %cst_66 : f32 to vector<8x128xf32>
    %292 = arith.addf %291, %290 : vector<8x128xf32>
    %293 = arith.divf %291, %292 : vector<8x128xf32>
    %294 = arith.mulf %285, %239 : vector<8x128xf32>
    %295 = arith.mulf %279, %287 : vector<8x128xf32>
    %296 = arith.addf %294, %295 : vector<8x128xf32>
    %297 = math.tanh %296 : vector<8x128xf32>
    %298 = arith.mulf %293, %297 : vector<8x128xf32>
    %cst_67 = arith.constant dense<0.000000e+00> : vector<8x512xf32>
    %299 = tpu.matmul %298, %9, %cst_67 {dimension_numbers = #tpu.dot_dimension_numbers<[1], [0], [0], [1], [0, 0, 1, 1], [], []>} : vector<8x128xf32>, vector<128x512xf32>, vector<8x512xf32> -> vector<8x512xf32>
    %300 = arith.addf %299, %12 : vector<8x512xf32>
    %c40 = arith.constant 40 : index
    %c0_68 = arith.constant 0 : index
    %301 = vector.load %arg10[%c40, %c0_68] : memref<64x512xf32, #tpu.memory_space<vmem>>, vector<8x512xf32>
    %cst_69 = arith.constant dense<0.000000e+00> : vector<8x512xf32>
    %302 = tpu.matmul %271, %7, %cst_69 {dimension_numbers = #tpu.dot_dimension_numbers<[1], [0], [0], [1], [0, 0, 1, 1], [], []>} : vector<8x128xf32>, vector<128x512xf32>, vector<8x512xf32> -> vector<8x512xf32>
    %303 = arith.addf %301, %302 : vector<8x512xf32>
    %304 = vector.extract_strided_slice %303 {offsets = [0, 0], sizes = [8, 128], strides = [1, 1]} : vector<8x512xf32> to vector<8x128xf32>
    %305 = arith.negf %304 : vector<8x128xf32>
    %306 = math.exp %305 : vector<8x128xf32>
    %cst_70 = arith.constant 1.000000e+00 : f32
    %307 = vector.broadcast %cst_70 : f32 to vector<8x128xf32>
    %308 = arith.addf %307, %306 : vector<8x128xf32>
    %309 = arith.divf %307, %308 : vector<8x128xf32>
    %310 = vector.extract_strided_slice %303 {offsets = [0, 128], sizes = [8, 128], strides = [1, 1]} : vector<8x512xf32> to vector<8x128xf32>
    %311 = arith.negf %310 : vector<8x128xf32>
    %312 = math.exp %311 : vector<8x128xf32>
    %cst_71 = arith.constant 1.000000e+00 : f32
    %313 = vector.broadcast %cst_71 : f32 to vector<8x128xf32>
    %314 = arith.addf %313, %312 : vector<8x128xf32>
    %315 = arith.divf %313, %314 : vector<8x128xf32>
    %316 = vector.extract_strided_slice %303 {offsets = [0, 256], sizes = [8, 128], strides = [1, 1]} : vector<8x512xf32> to vector<8x128xf32>
    %317 = math.tanh %316 : vector<8x128xf32>
    %318 = vector.extract_strided_slice %303 {offsets = [0, 384], sizes = [8, 128], strides = [1, 1]} : vector<8x512xf32> to vector<8x128xf32>
    %319 = arith.negf %318 : vector<8x128xf32>
    %320 = math.exp %319 : vector<8x128xf32>
    %cst_72 = arith.constant 1.000000e+00 : f32
    %321 = vector.broadcast %cst_72 : f32 to vector<8x128xf32>
    %322 = arith.addf %321, %320 : vector<8x128xf32>
    %323 = arith.divf %321, %322 : vector<8x128xf32>
    %324 = arith.mulf %315, %269 : vector<8x128xf32>
    %325 = arith.mulf %309, %317 : vector<8x128xf32>
    %326 = arith.addf %324, %325 : vector<8x128xf32>
    %327 = math.tanh %326 : vector<8x128xf32>
    %328 = arith.mulf %323, %327 : vector<8x128xf32>
    %cst_73 = arith.constant dense<0.000000e+00> : vector<8x512xf32>
    %329 = tpu.matmul %328, %8, %cst_73 {dimension_numbers = #tpu.dot_dimension_numbers<[1], [0], [0], [1], [0, 0, 1, 1], [], []>} : vector<8x128xf32>, vector<128x512xf32>, vector<8x512xf32> -> vector<8x512xf32>
    %330 = arith.addf %300, %329 : vector<8x512xf32>
    %331 = vector.extract_strided_slice %330 {offsets = [0, 0], sizes = [8, 128], strides = [1, 1]} : vector<8x512xf32> to vector<8x128xf32>
    %332 = arith.negf %331 : vector<8x128xf32>
    %333 = math.exp %332 : vector<8x128xf32>
    %cst_74 = arith.constant 1.000000e+00 : f32
    %334 = vector.broadcast %cst_74 : f32 to vector<8x128xf32>
    %335 = arith.addf %334, %333 : vector<8x128xf32>
    %336 = arith.divf %334, %335 : vector<8x128xf32>
    %337 = vector.extract_strided_slice %330 {offsets = [0, 128], sizes = [8, 128], strides = [1, 1]} : vector<8x512xf32> to vector<8x128xf32>
    %338 = arith.negf %337 : vector<8x128xf32>
    %339 = math.exp %338 : vector<8x128xf32>
    %cst_75 = arith.constant 1.000000e+00 : f32
    %340 = vector.broadcast %cst_75 : f32 to vector<8x128xf32>
    %341 = arith.addf %340, %339 : vector<8x128xf32>
    %342 = arith.divf %340, %341 : vector<8x128xf32>
    %343 = vector.extract_strided_slice %330 {offsets = [0, 256], sizes = [8, 128], strides = [1, 1]} : vector<8x512xf32> to vector<8x128xf32>
    %344 = math.tanh %343 : vector<8x128xf32>
    %345 = vector.extract_strided_slice %330 {offsets = [0, 384], sizes = [8, 128], strides = [1, 1]} : vector<8x512xf32> to vector<8x128xf32>
    %346 = arith.negf %345 : vector<8x128xf32>
    %347 = math.exp %346 : vector<8x128xf32>
    %cst_76 = arith.constant 1.000000e+00 : f32
    %348 = vector.broadcast %cst_76 : f32 to vector<8x128xf32>
    %349 = arith.addf %348, %347 : vector<8x128xf32>
    %350 = arith.divf %348, %349 : vector<8x128xf32>
    %351 = arith.mulf %342, %296 : vector<8x128xf32>
    %352 = arith.mulf %336, %344 : vector<8x128xf32>
    %353 = arith.addf %351, %352 : vector<8x128xf32>
    %354 = math.tanh %353 : vector<8x128xf32>
    %355 = arith.mulf %350, %354 : vector<8x128xf32>
    %cst_77 = arith.constant dense<0.000000e+00> : vector<8x512xf32>
    %356 = tpu.matmul %355, %9, %cst_77 {dimension_numbers = #tpu.dot_dimension_numbers<[1], [0], [0], [1], [0, 0, 1, 1], [], []>} : vector<8x128xf32>, vector<128x512xf32>, vector<8x512xf32> -> vector<8x512xf32>
    %357 = arith.addf %356, %12 : vector<8x512xf32>
    %c48 = arith.constant 48 : index
    %c0_78 = arith.constant 0 : index
    %358 = vector.load %arg10[%c48, %c0_78] : memref<64x512xf32, #tpu.memory_space<vmem>>, vector<8x512xf32>
    %cst_79 = arith.constant dense<0.000000e+00> : vector<8x512xf32>
    %359 = tpu.matmul %328, %7, %cst_79 {dimension_numbers = #tpu.dot_dimension_numbers<[1], [0], [0], [1], [0, 0, 1, 1], [], []>} : vector<8x128xf32>, vector<128x512xf32>, vector<8x512xf32> -> vector<8x512xf32>
    %360 = arith.addf %358, %359 : vector<8x512xf32>
    %361 = vector.extract_strided_slice %360 {offsets = [0, 0], sizes = [8, 128], strides = [1, 1]} : vector<8x512xf32> to vector<8x128xf32>
    %362 = arith.negf %361 : vector<8x128xf32>
    %363 = math.exp %362 : vector<8x128xf32>
    %cst_80 = arith.constant 1.000000e+00 : f32
    %364 = vector.broadcast %cst_80 : f32 to vector<8x128xf32>
    %365 = arith.addf %364, %363 : vector<8x128xf32>
    %366 = arith.divf %364, %365 : vector<8x128xf32>
    %367 = vector.extract_strided_slice %360 {offsets = [0, 128], sizes = [8, 128], strides = [1, 1]} : vector<8x512xf32> to vector<8x128xf32>
    %368 = arith.negf %367 : vector<8x128xf32>
    %369 = math.exp %368 : vector<8x128xf32>
    %cst_81 = arith.constant 1.000000e+00 : f32
    %370 = vector.broadcast %cst_81 : f32 to vector<8x128xf32>
    %371 = arith.addf %370, %369 : vector<8x128xf32>
    %372 = arith.divf %370, %371 : vector<8x128xf32>
    %373 = vector.extract_strided_slice %360 {offsets = [0, 256], sizes = [8, 128], strides = [1, 1]} : vector<8x512xf32> to vector<8x128xf32>
    %374 = math.tanh %373 : vector<8x128xf32>
    %375 = vector.extract_strided_slice %360 {offsets = [0, 384], sizes = [8, 128], strides = [1, 1]} : vector<8x512xf32> to vector<8x128xf32>
    %376 = arith.negf %375 : vector<8x128xf32>
    %377 = math.exp %376 : vector<8x128xf32>
    %cst_82 = arith.constant 1.000000e+00 : f32
    %378 = vector.broadcast %cst_82 : f32 to vector<8x128xf32>
    %379 = arith.addf %378, %377 : vector<8x128xf32>
    %380 = arith.divf %378, %379 : vector<8x128xf32>
    %381 = arith.mulf %372, %326 : vector<8x128xf32>
    %382 = arith.mulf %366, %374 : vector<8x128xf32>
    %383 = arith.addf %381, %382 : vector<8x128xf32>
    %384 = math.tanh %383 : vector<8x128xf32>
    %385 = arith.mulf %380, %384 : vector<8x128xf32>
    %cst_83 = arith.constant dense<0.000000e+00> : vector<8x512xf32>
    %386 = tpu.matmul %385, %8, %cst_83 {dimension_numbers = #tpu.dot_dimension_numbers<[1], [0], [0], [1], [0, 0, 1, 1], [], []>} : vector<8x128xf32>, vector<128x512xf32>, vector<8x512xf32> -> vector<8x512xf32>
    %387 = arith.addf %357, %386 : vector<8x512xf32>
    %388 = vector.extract_strided_slice %387 {offsets = [0, 0], sizes = [8, 128], strides = [1, 1]} : vector<8x512xf32> to vector<8x128xf32>
    %389 = arith.negf %388 : vector<8x128xf32>
    %390 = math.exp %389 : vector<8x128xf32>
    %cst_84 = arith.constant 1.000000e+00 : f32
    %391 = vector.broadcast %cst_84 : f32 to vector<8x128xf32>
    %392 = arith.addf %391, %390 : vector<8x128xf32>
    %393 = arith.divf %391, %392 : vector<8x128xf32>
    %394 = vector.extract_strided_slice %387 {offsets = [0, 128], sizes = [8, 128], strides = [1, 1]} : vector<8x512xf32> to vector<8x128xf32>
    %395 = arith.negf %394 : vector<8x128xf32>
    %396 = math.exp %395 : vector<8x128xf32>
    %cst_85 = arith.constant 1.000000e+00 : f32
    %397 = vector.broadcast %cst_85 : f32 to vector<8x128xf32>
    %398 = arith.addf %397, %396 : vector<8x128xf32>
    %399 = arith.divf %397, %398 : vector<8x128xf32>
    %400 = vector.extract_strided_slice %387 {offsets = [0, 256], sizes = [8, 128], strides = [1, 1]} : vector<8x512xf32> to vector<8x128xf32>
    %401 = math.tanh %400 : vector<8x128xf32>
    %402 = vector.extract_strided_slice %387 {offsets = [0, 384], sizes = [8, 128], strides = [1, 1]} : vector<8x512xf32> to vector<8x128xf32>
    %403 = arith.negf %402 : vector<8x128xf32>
    %404 = math.exp %403 : vector<8x128xf32>
    %cst_86 = arith.constant 1.000000e+00 : f32
    %405 = vector.broadcast %cst_86 : f32 to vector<8x128xf32>
    %406 = arith.addf %405, %404 : vector<8x128xf32>
    %407 = arith.divf %405, %406 : vector<8x128xf32>
    %408 = arith.mulf %399, %353 : vector<8x128xf32>
    %409 = arith.mulf %393, %401 : vector<8x128xf32>
    %410 = arith.addf %408, %409 : vector<8x128xf32>
    %411 = math.tanh %410 : vector<8x128xf32>
    %412 = arith.mulf %407, %411 : vector<8x128xf32>
    %cst_87 = arith.constant dense<0.000000e+00> : vector<8x512xf32>
    %413 = tpu.matmul %412, %9, %cst_87 {dimension_numbers = #tpu.dot_dimension_numbers<[1], [0], [0], [1], [0, 0, 1, 1], [], []>} : vector<8x128xf32>, vector<128x512xf32>, vector<8x512xf32> -> vector<8x512xf32>
    %414 = arith.addf %413, %12 : vector<8x512xf32>
    %c56 = arith.constant 56 : index
    %c0_88 = arith.constant 0 : index
    %415 = vector.load %arg10[%c56, %c0_88] : memref<64x512xf32, #tpu.memory_space<vmem>>, vector<8x512xf32>
    %cst_89 = arith.constant dense<0.000000e+00> : vector<8x512xf32>
    %416 = tpu.matmul %385, %7, %cst_89 {dimension_numbers = #tpu.dot_dimension_numbers<[1], [0], [0], [1], [0, 0, 1, 1], [], []>} : vector<8x128xf32>, vector<128x512xf32>, vector<8x512xf32> -> vector<8x512xf32>
    %417 = arith.addf %415, %416 : vector<8x512xf32>
    %418 = vector.extract_strided_slice %417 {offsets = [0, 0], sizes = [8, 128], strides = [1, 1]} : vector<8x512xf32> to vector<8x128xf32>
    %419 = arith.negf %418 : vector<8x128xf32>
    %420 = math.exp %419 : vector<8x128xf32>
    %cst_90 = arith.constant 1.000000e+00 : f32
    %421 = vector.broadcast %cst_90 : f32 to vector<8x128xf32>
    %422 = arith.addf %421, %420 : vector<8x128xf32>
    %423 = arith.divf %421, %422 : vector<8x128xf32>
    %424 = vector.extract_strided_slice %417 {offsets = [0, 128], sizes = [8, 128], strides = [1, 1]} : vector<8x512xf32> to vector<8x128xf32>
    %425 = arith.negf %424 : vector<8x128xf32>
    %426 = math.exp %425 : vector<8x128xf32>
    %cst_91 = arith.constant 1.000000e+00 : f32
    %427 = vector.broadcast %cst_91 : f32 to vector<8x128xf32>
    %428 = arith.addf %427, %426 : vector<8x128xf32>
    %429 = arith.divf %427, %428 : vector<8x128xf32>
    %430 = vector.extract_strided_slice %417 {offsets = [0, 256], sizes = [8, 128], strides = [1, 1]} : vector<8x512xf32> to vector<8x128xf32>
    %431 = math.tanh %430 : vector<8x128xf32>
    %432 = vector.extract_strided_slice %417 {offsets = [0, 384], sizes = [8, 128], strides = [1, 1]} : vector<8x512xf32> to vector<8x128xf32>
    %433 = arith.negf %432 : vector<8x128xf32>
    %434 = math.exp %433 : vector<8x128xf32>
    %cst_92 = arith.constant 1.000000e+00 : f32
    %435 = vector.broadcast %cst_92 : f32 to vector<8x128xf32>
    %436 = arith.addf %435, %434 : vector<8x128xf32>
    %437 = arith.divf %435, %436 : vector<8x128xf32>
    %438 = arith.mulf %429, %383 : vector<8x128xf32>
    %439 = arith.mulf %423, %431 : vector<8x128xf32>
    %440 = arith.addf %438, %439 : vector<8x128xf32>
    %441 = math.tanh %440 : vector<8x128xf32>
    %442 = arith.mulf %437, %441 : vector<8x128xf32>
    %cst_93 = arith.constant dense<0.000000e+00> : vector<8x512xf32>
    %443 = tpu.matmul %442, %8, %cst_93 {dimension_numbers = #tpu.dot_dimension_numbers<[1], [0], [0], [1], [0, 0, 1, 1], [], []>} : vector<8x128xf32>, vector<128x512xf32>, vector<8x512xf32> -> vector<8x512xf32>
    %444 = arith.addf %414, %443 : vector<8x512xf32>
    %445 = vector.extract_strided_slice %444 {offsets = [0, 0], sizes = [8, 128], strides = [1, 1]} : vector<8x512xf32> to vector<8x128xf32>
    %446 = arith.negf %445 : vector<8x128xf32>
    %447 = math.exp %446 : vector<8x128xf32>
    %cst_94 = arith.constant 1.000000e+00 : f32
    %448 = vector.broadcast %cst_94 : f32 to vector<8x128xf32>
    %449 = arith.addf %448, %447 : vector<8x128xf32>
    %450 = arith.divf %448, %449 : vector<8x128xf32>
    %451 = vector.extract_strided_slice %444 {offsets = [0, 128], sizes = [8, 128], strides = [1, 1]} : vector<8x512xf32> to vector<8x128xf32>
    %452 = arith.negf %451 : vector<8x128xf32>
    %453 = math.exp %452 : vector<8x128xf32>
    %cst_95 = arith.constant 1.000000e+00 : f32
    %454 = vector.broadcast %cst_95 : f32 to vector<8x128xf32>
    %455 = arith.addf %454, %453 : vector<8x128xf32>
    %456 = arith.divf %454, %455 : vector<8x128xf32>
    %457 = vector.extract_strided_slice %444 {offsets = [0, 256], sizes = [8, 128], strides = [1, 1]} : vector<8x512xf32> to vector<8x128xf32>
    %458 = math.tanh %457 : vector<8x128xf32>
    %459 = vector.extract_strided_slice %444 {offsets = [0, 384], sizes = [8, 128], strides = [1, 1]} : vector<8x512xf32> to vector<8x128xf32>
    %460 = arith.negf %459 : vector<8x128xf32>
    %461 = math.exp %460 : vector<8x128xf32>
    %cst_96 = arith.constant 1.000000e+00 : f32
    %462 = vector.broadcast %cst_96 : f32 to vector<8x128xf32>
    %463 = arith.addf %462, %461 : vector<8x128xf32>
    %464 = arith.divf %462, %463 : vector<8x128xf32>
    %465 = arith.mulf %456, %410 : vector<8x128xf32>
    %466 = arith.mulf %450, %458 : vector<8x128xf32>
    %467 = arith.addf %465, %466 : vector<8x128xf32>
    %468 = math.tanh %467 : vector<8x128xf32>
    %469 = arith.mulf %464, %468 : vector<8x128xf32>
    %c0_97 = arith.constant 0 : index
    %c0_98 = arith.constant 0 : index
    %470 = vector.load %arg7[%c0_97, %c0_98] : memref<1x128xf32, #tpu.memory_space<vmem>>, vector<1x128xf32>
    %471 = vector.broadcast %470 : vector<1x128xf32> to vector<8x128xf32>
    %472 = arith.mulf %469, %471 : vector<8x128xf32>
    %cst_99 = arith.constant dense<0.000000e+00> : vector<8xf32>
    %473 = vector.multi_reduction <add>, %472, %cst_99 [1] : vector<8x128xf32> to vector<8xf32>
    %474 = vector.shape_cast %473 : vector<8xf32> to vector<8x1xf32>
    %c0_100 = arith.constant 0 : index
    %c0_101 = arith.constant 0 : index
    %475 = vector.load %arg8[%c0_100, %c0_101] : memref<1x1xf32, #tpu.memory_space<vmem>>, vector<1x1xf32>
    %476 = vector.broadcast %475 : vector<1x1xf32> to vector<8x1xf32>
    %477 = arith.addf %474, %476 : vector<8x1xf32>
    %478 = vector.extract_strided_slice %477 {offsets = [0, 0], sizes = [2, 1], strides = [1, 1]} : vector<8x1xf32> to vector<2x1xf32>
    %c0_102 = arith.constant 0 : index
    %c0_103 = arith.constant 0 : index
    %479 = vector.load %arg9[%c0_102, %c0_103] : memref<2x1xf32, #tpu.memory_space<vmem>>, vector<2x1xf32>
    tpu.vector_store %arg9[%c0_102, %c0_103], %478 {strides = array<i32>} : memref<2x1xf32, #tpu.memory_space<vmem>>, vector<2x1xf32>,
    return
  }
}

</mosaic_0001>

<bundles_post_ra>
// kernel: tpu_custom_call.1
= control target key start
LH: loop header
LB: loop body
LE: loop exit
PB: predicated region body
PF: predicated region fallthrough
CT: control target
= control target key end

     0   :  { %s8044_s0 = inlined_call_operand.vmem [shape: f32[64,10], index: 0, kind: input, shape index: {}]   ;;  %s8045_s1 = inlined_call_operand.vmem [shape: f32[10,512], index: 1, kind: input, shape index: {}]   ;;  %s8046_s2 = inlined_call_operand.vmem [shape: f32[1,512], index: 2, kind: input, shape index: {}]   ;;  %s8047_s3 = inlined_call_operand.hbm [shape: f32[128,512], index: 3, kind: input, shape index: {}]   ;;  %s8048_s4 = inlined_call_operand.hbm [shape: f32[128,512], index: 4, kind: input, shape index: {}]   ;;  %s8049_s5 = inlined_call_operand.hbm [shape: f32[128,512], index: 5, kind: input, shape index: {}]   ;;  %s8050_s6 = inlined_call_operand.vmem [shape: f32[1,512], index: 6, kind: input, shape index: {}]   ;;  %s8051_s7 = inlined_call_operand.vmem [shape: f32[1,128], index: 7, kind: input, shape index: {}]   ;;  %s8052_s8 = inlined_call_operand.<no memory space> [shape: f32[1,1], index: 8, kind: input, shape index: {}]   ;;  %s8053_s9 = inlined_call_operand.vmem [shape: f32[2,1], index: 9, kind: output, shape index: {}]  }
   0x1   :  { %v14_v0 = vstv %s8052_s8 }
   0x2   :  { %15 = vst [vmem:[#allocation3] sm:$0x1] %v14_v0 }
   0x3   :  { %16 = vsyncpa [#allocation5], 0 }
   0x4   :  { %17 = vsyncpa [#allocation7], 0  ;;  %s6616_s11 = smov [#allocation6]   ;;  %s6617_s13 = smov [#allocation4]  }
   0x5   :  { %s41_s12 = sshll.u32 %s6616_s11, 4  ;;  %s29_s14 = sshll.u32 %s6617_s13, 4  ;;  %s42_s12 = int_to_ptr.vmem [resolvable:$true] %s41_s12  ;;  %s6676_s14 = int_to_ptr.vmem [resolvable:$true] %s29_s14 }
   0x6   :  { %s6546_s17 = scalar_lea.hbm %s8048_s4, 8192 }
   0x7   :  { %p6547_p0 = scmp.ne.s32.totalorder %s8048_s4, %s6546_s17  ;;  %p6550_p1 = scmp.lt.u32.totalorder %s6546_s17, %s8048_s4 }
   0x9   :  { %p6552_p2 = pnand %p6550_p1, %p6547_p0 }
   0xb   :  { %6555 = shalt.err (!%p6552_p2)
}
   0xc   :  { %s6556_s21 = scalar_lea.vmem %s42_s12, 8192  ;;  %p6561_p4 = scmp.lt.s32.totalorder %s42_s12, %s42_s12 }
   0xd   :  { %p6557_p3 = scmp.ne.s32.totalorder %s42_s12, %s6556_s21  ;;  %p6562_p5 = scmp.lt.s32.totalorder %s6556_s21, %s6556_s21 }
   0xf   :  { %p6563_p6 = por %p6562_p5, %p6561_p4 }
  0x11   :  { %p6564_p7 = pnand %p6563_p6, %p6557_p3 }
  0x13   :  { %6567 = shalt.err (!%p6564_p7)
}
  0x14   :  { %s6618_s22 = smov 512   ;;  %s6619_s23 = smov 32  }
  0x15   :  { %47 = dma.hbm_to_vmem [thread:$0]  %s8048_s4, 8192, %s42_s12, [#allocation7], %s6618_s22, %s6618_s22, %s6619_s23  }
  0x16   :  { %s6568_s28 = scalar_lea.hbm %s8047_s3, 8192 }
  0x17   :  { %p6569_p8 = scmp.ne.s32.totalorder %s8047_s3, %s6568_s28  ;;  %p6572_p9 = scmp.lt.u32.totalorder %s6568_s28, %s8047_s3 }
  0x19   :  { %p6574_p10 = pnand %p6572_p9, %p6569_p8 }
  0x1b   :  { %6577 = shalt.err (!%p6574_p10)
}
  0x1c   :  { %s6578_s13 = scalar_lea.vmem %s6676_s14, 8192  ;;  %p6583_p12 = scmp.lt.s32.totalorder %s6676_s14, %s6676_s14 }
  0x1d   :  { %p6579_p11 = scmp.ne.s32.totalorder %s6676_s14, %s6578_s13  ;;  %p6584_p13 = scmp.lt.s32.totalorder %s6578_s13, %s6578_s13 }
  0x1f   :  { %p6585_p0 = por %p6584_p13, %p6583_p12 }
  0x21   :  { %p6586_p1 = pnand %p6585_p0, %p6579_p11 }
  0x23   :  { %6589 = shalt.err (!%p6586_p1)
}
  0x24   :  { %35 = dma.hbm_to_vmem [thread:$0]  %s8047_s3, 8192, %s6676_s14, [#allocation5], %s6618_s22, %s6618_s22, %s6619_s23  }
  0x25   :  { %s6620_s15 = smov [#allocation8]   ;;  %s6590_s19 = scalar_lea.hbm %s8049_s5, 8192 }
  0x26   :  { %s53_s16 = sshll.u32 %s6620_s15, 4  ;;  %p6591_p2 = scmp.ne.s32.totalorder %s8049_s5, %s6590_s19  ;;  %s54_s16 = int_to_ptr.vmem [resolvable:$true] %s53_s16 }
  0x27   :  { %p6594_p3 = scmp.lt.u32.totalorder %s6590_s19, %s8049_s5 }
  0x29   :  { %p6596_p4 = pnand %p6594_p3, %p6591_p2 }
  0x2b   :  { %6599 = shalt.err (!%p6596_p4)
}
  0x2c   :  { %s6600_s25 = scalar_lea.vmem %s54_s16, 8192  ;;  %p6605_p6 = scmp.lt.s32.totalorder %s54_s16, %s54_s16 }
  0x2d   :  { %p6601_p5 = scmp.ne.s32.totalorder %s54_s16, %s6600_s25  ;;  %p6606_p7 = scmp.lt.s32.totalorder %s6600_s25, %s6600_s25 }
  0x2f   :  { %p6607_p8 = por %p6606_p7, %p6605_p6 }
  0x31   :  { %p6608_p9 = pnand %p6607_p8, %p6601_p5 }
  0x33   :  { %6611 = shalt.err (!%p6608_p9)
}
  0x34   :  { %59 = dma.hbm_to_vmem [thread:$0]  %s8049_s5, 8192, %s54_s16, [#allocation7], %s6618_s22, %s6618_s22, %s6619_s23  }
  0x35   :  { %6612 = dma.done.wait [#allocation5], 8192  }
  0x36   :  { %6613 = vsyncadd [#allocation5], 4294959104 }
  0x37   :  { %6614 = dma.done.wait [#allocation7], 16384  }
  0x38   :  { %6615 = vsyncadd [#allocation7], 4294950912  ;;  %v8054_v1 = vmov 0.0   ;;  %vm138_vm0 = vcmask 1041408   ;;  %vm6622_vm1 = vmmov 1   ;;  %v84_v3 = vld [vmem:[%s8045_s1 + $0x8] sm:$0xff] }
  0x39   :  { %215 = vmatprep.mubr.f32.mxu0 %v8054_v1  ;;  %328 = vmatprep.mubr.f32.mxu1 %v8054_v1  ;;  %vm6730_vm2 = vmpackc.low %vm138_vm0, %vm6622_vm1  ;;  %v88_v4 = vld [vmem:[%s8045_s1 + $0x28] sm:$0x3]  ;;  %v86_v5 = vld [vmem:[%s8045_s1 + $0x18] sm:$0xff]  ;;  %vm113_vm3 = vcmask 80896   ;;  %vm4529_vm4 = vcmask 1024  }
  0x3a   :  { %v4607_v6 = vpack.c.bf16 %v88_v4, %v84_v3  ;;  %v90_v7 = vld [vmem:[%s8045_s1 + $0x38] sm:$0x3]  ;;  %v83_v8 = vld [vmem:[%s8045_s1] sm:$0xff]  ;;  %v85_v12 = vld [vmem:[%s8045_s1 + $0x10] sm:$0xff] }
  0x3b   :  { %v87_v9 = vld [vmem:[%s8045_s1 + $0x20] sm:$0x3]  ;;  %v4613_v10 = vpack.c.bf16 %v90_v7, %v86_v5  ;;  %v89_v13 = vld [vmem:[%s8045_s1 + $0x30] sm:$0x3]  ;;  %v76_v34 = vld [vmem:[%s8044_s0 + $0x8] sm:$0xff] }
  0x3c   :  { %v4610_v11 = vpack.c.bf16 %v87_v9, %v83_v8  ;;  %v538_v14 = vld [vmem:[#allocation8 + $0x8] sm:$0xff]  ;;  %4609 = vmatprep.subr.msk.bf16.mxu0 %vm6730_vm2, %v4607_v6  ;;  %v4616_v15 = vpack.c.bf16 %v89_v13, %v85_v12  ;;  %v540_v17 = vld [vmem:[#allocation8 + $0x18] sm:$0xff]  ;;  %v537_v22 = vld [vmem:[#allocation8] sm:$0xff] }
  0x3d   :  { %v542_v16 = vld [vmem:[#allocation8 + $0x28] sm:$0xff]  ;;  %v544_v18 = vld [vmem:[#allocation8 + $0x38] sm:$0xff]  ;;  %4615 = vmatprep.subr.msk.bf16.mxu1 %vm6730_vm2, %v4613_v10  ;;  %v541_v23 = vld [vmem:[#allocation8 + $0x20] sm:$0xff] }
  0x3e   :  { %4612 = vmatpush1.bf16.msk.msra.mxu0 %vm6730_vm2, %v4610_v11  ;;  %v6764_v19 = vpack.c.bf16 %v542_v16, %v538_v14  ;;  %v6766_v20 = vpack.c.bf16 %v544_v18, %v540_v17  ;;  %v75_v21 = vld [vmem:[%s8044_s0] sm:$0xff]  ;;  %4618 = vmatpush1.bf16.msk.msra.mxu1 %vm6730_vm2, %v4616_v15  ;;  %v6773_v24 = vpack.c.bf16 %v541_v23, %v537_v22  ;;  %v539_v25 = vld [vmem:[#allocation8 + $0x10] sm:$0xff]  ;;  %v546_v27 = vld [vmem:[#allocation8 + $0x48] sm:$0xff] }
  0x3f   :  { %v543_v26 = vld [vmem:[#allocation8 + $0x30] sm:$0xff]  ;;  %v550_v29 = vld [vmem:[#allocation8 + $0x68] sm:$0xff]  ;;  %v548_v30 = vld [vmem:[#allocation8 + $0x58] sm:$0xff] }
  0x40   :  { %8199 = vst [vmem:[#allocation11_spill] sm:$0xff] %v6764_v19  ;;  %8200 = vst [vmem:[#allocation12_spill] sm:$0xff] %v6766_v20  ;;  %4620 = vmatprep.subr.bf16.mxu0 %v6764_v19  ;;  %4652 = vmatprep.subr.bf16.mxu1 %v6766_v20  ;;  %v6777_v28 = vpack.c.bf16 %v543_v26, %v539_v25  ;;  %v552_v31 = vld [vmem:[#allocation8 + $0x78] sm:$0xff]  ;;  %v6780_v32 = vpack.c.bf16 %v550_v29, %v546_v27  ;;  %v545_v35 = vld [vmem:[#allocation8 + $0x40] sm:$0xff] }
  0x41   :  { %4539 = vmatmul.mubr.msk.f32.vlgmr.msra.gmra.mrb[0].mxu0 %vm113_vm3, %v75_v21  ;;  %v6782_v33 = vpack.c.bf16 %v552_v31, %v548_v30  ;;  %v549_v36 = vld [vmem:[#allocation8 + $0x60] sm:$0xff]  ;;  %4549 = vmatmul.mubr.msk.f32.vlgmr.msra.gmra.mrb[0].mxu1 %vm113_vm3, %v75_v21  ;;  %v547_v38 = vld [vmem:[#allocation8 + $0x50] sm:$0xff]  ;;  %v554_v40 = vld [vmem:[#allocation8 + $0x88] sm:$0xff] }
  0x42   :  { %4622 = vmatpush1.bf16.msra.mxu0 %v6773_v24  ;;  %v6789_v37 = vpack.c.bf16 %v549_v36, %v545_v35  ;;  %v551_v39 = vld [vmem:[#allocation8 + $0x70] sm:$0xff]  ;;  %4654 = vmatpush1.bf16.msra.mxu1 %v6777_v28  ;;  %v558_v42 = vld [vmem:[#allocation8 + $0xa8] sm:$0xff]  ;;  %v556_v43 = vld [vmem:[#allocation8 + $0x98] sm:$0xff] }
  0x43   :  { %221 = vmatprep.mubr.f32.mxu0 %v8054_v1  ;;  %v6793_v41 = vpack.c.bf16 %v551_v39, %v547_v38  ;;  %v560_v44 = vld [vmem:[#allocation8 + $0xb8] sm:$0xff]  ;;  %334 = vmatprep.mubr.f32.mxu1 %v8054_v1  ;;  %v6797_v45 = vpack.c.bf16 %v558_v42, %v554_v40  ;;  %v77_v46 = vld [vmem:[%s8044_s0 + $0x10] sm:$0xff]  ;;  %v553_v47 = vld [vmem:[#allocation8 + $0x80] sm:$0xff] }
  0x44   :  { %4624 = vmatprep.subr.bf16.mxu0 %v6780_v32  ;;  %v557_v48 = vld [vmem:[#allocation8 + $0xa0] sm:$0xff]  ;;  %4656 = vmatprep.subr.bf16.mxu1 %v6782_v33  ;;  %v6804_v49 = vpack.c.bf16 %v560_v44, %v556_v43  ;;  %v555_v50 = vld [vmem:[#allocation8 + $0x90] sm:$0xff]  ;;  %v562_v52 = vld [vmem:[#allocation8 + $0xc8] sm:$0xff] }
  0x45   :  { %4540 = vmatmul.mubr.msk.f32.gmra.mrb[2].mxu0 %vm113_vm3, %v76_v34  ;;  %v559_v51 = vld [vmem:[#allocation8 + $0xb0] sm:$0xff]  ;;  %4550 = vmatmul.mubr.msk.f32.gmra.mrb[2].mxu1 %vm113_vm3, %v76_v34  ;;  %v6808_v53 = vpack.c.bf16 %v557_v48, %v553_v47  ;;  %v566_v54 = vld [vmem:[#allocation8 + $0xe8] sm:$0xff]  ;;  %v564_v55 = vld [vmem:[#allocation8 + $0xd8] sm:$0xff] }
  0x46   :  { %4626 = vmatpush1.bf16.msra.mxu0 %v6789_v37  ;;  %v568_v56 = vld [vmem:[#allocation8 + $0xf8] sm:$0xff]  ;;  %4658 = vmatpush1.bf16.msra.mxu1 %v6793_v41  ;;  %v6812_v57 = vpack.c.bf16 %v559_v51, %v555_v50  ;;  %v561_v58 = vld [vmem:[#allocation8 + $0xc0] sm:$0xff]  ;;  %v6816_v60 = vpack.c.bf16 %v566_v54, %v562_v52  ;;  %v563_v61 = vld [vmem:[#allocation8 + $0xd0] sm:$0xff] }
  0x47   :  { %227 = vmatprep.mubr.f32.mxu0 %v8054_v1  ;;  %v565_v59 = vld [vmem:[#allocation8 + $0xe0] sm:$0xff]  ;;  %340 = vmatprep.mubr.f32.mxu1 %v8054_v1  ;;  %v567_v62 = vld [vmem:[#allocation8 + $0xf0] sm:$0xff]  ;;  %v6820_v63 = vpack.c.bf16 %v568_v56, %v564_v55  ;;  %v570_v0 = vld [vmem:[#allocation8 + $0x108] sm:$0xff] }
  0x48   :  { %4628 = vmatprep.subr.bf16.mxu0 %v6797_v45  ;;  %4660 = vmatprep.subr.bf16.mxu1 %v6804_v49  ;;  %v574_v2 = vld [vmem:[#allocation8 + $0x128] sm:$0xff]  ;;  %v78_v3 = vld [vmem:[%s8044_s0 + $0x18] sm:$0xff]  ;;  %v6827_v4 = vpack.c.bf16 %v565_v59, %v561_v58  ;;  %v6831_v7 = vpack.c.bf16 %v567_v62, %v563_v61  ;;  %v569_v8 = vld [vmem:[#allocation8 + $0x100] sm:$0xff] }
  0x49   :  { %4541 = vmatmul.mubr.msk.f32.gmra.mrb[4].mxu0 %vm113_vm3, %v77_v46  ;;  %4551 = vmatmul.mubr.msk.f32.gmra.mrb[4].mxu1 %vm113_vm3, %v77_v46  ;;  %v572_v5 = vld [vmem:[#allocation8 + $0x118] sm:$0xff]  ;;  %v573_v9 = vld [vmem:[#allocation8 + $0x120] sm:$0xff]  ;;  %v6835_v10 = vpack.c.bf16 %v574_v2, %v570_v0  ;;  %v571_v11 = vld [vmem:[#allocation8 + $0x110] sm:$0xff] }
  0x4a   :  { %4630 = vmatpush1.bf16.msra.mxu0 %v6808_v53  ;;  %v576_v6 = vld [vmem:[#allocation8 + $0x138] sm:$0xff]  ;;  %4662 = vmatpush1.bf16.msra.mxu1 %v6812_v57  ;;  %v575_v12 = vld [vmem:[#allocation8 + $0x130] sm:$0xff]  ;;  %v578_v14 = vld [vmem:[#allocation8 + $0x148] sm:$0xff]  ;;  %v6846_v17 = vpack.c.bf16 %v573_v9, %v569_v8 }
  0x4b   :  { %233 = vmatprep.mubr.f32.mxu0 %v8054_v1  ;;  %346 = vmatprep.mubr.f32.mxu1 %v8054_v1  ;;  %v6839_v13 = vpack.c.bf16 %v576_v6, %v572_v5  ;;  %v582_v15 = vld [vmem:[#allocation8 + $0x168] sm:$0xff]  ;;  %v79_v16 = vld [vmem:[%s8044_s0 + $0x20] sm:$0xff]  ;;  %v6850_v22 = vpack.c.bf16 %v575_v12, %v571_v11  ;;  %v579_v27 = vld [vmem:[#allocation8 + $0x150] sm:$0xff] }
  0x4c   :  { %4632 = vmatprep.subr.bf16.mxu0 %v6816_v60  ;;  %4664 = vmatprep.subr.bf16.mxu1 %v6820_v63  ;;  %v580_v18 = vld [vmem:[#allocation8 + $0x158] sm:$0xff]  ;;  %v577_v23 = vld [vmem:[#allocation8 + $0x140] sm:$0xff]  ;;  %v6854_v26 = vpack.c.bf16 %v582_v15, %v578_v14  ;;  %v583_v29 = vld [vmem:[#allocation8 + $0x170] sm:$0xff] }
  0x4d   :  { %4542 = vmatmul.mubr.msk.f32.gmra.mrb[6].mxu0 %vm113_vm3, %v78_v3  ;;  %4552 = vmatmul.mubr.msk.f32.gmra.mrb[6].mxu1 %vm113_vm3, %v78_v3  ;;  %v584_v21 = vld [vmem:[#allocation8 + $0x178] sm:$0xff]  ;;  %v581_v25 = vld [vmem:[#allocation8 + $0x160] sm:$0xff]  ;;  %v586_v31 = vld [vmem:[#allocation8 + $0x188] sm:$0xff]  ;;  %v6869_v40 = vpack.c.bf16 %v583_v29, %v579_v27 }
  0x4e   :  { %4634 = vmatpush1.bf16.msra.mxu0 %v6827_v4  ;;  %4666 = vmatpush1.bf16.msra.mxu1 %v6831_v7  ;;  %v6858_v30 = vpack.c.bf16 %v584_v21, %v580_v18  ;;  %v590_v34 = vld [vmem:[#allocation8 + $0x1a8] sm:$0xff]  ;;  %v6865_v36 = vpack.c.bf16 %v581_v25, %v577_v23  ;;  %v588_v38 = vld [vmem:[#allocation8 + $0x198] sm:$0xff]  ;;  %v585_v42 = vld [vmem:[#allocation8 + $0x180] sm:$0xff] }
  0x4f   :  { %239 = vmatprep.mubr.f32.mxu0 %v8054_v1  ;;  %352 = vmatprep.mubr.f32.mxu1 %v8054_v1  ;;  %v80_v35 = vld [vmem:[%s8044_s0 + $0x28] sm:$0xff]  ;;  %v592_v39 = vld [vmem:[#allocation8 + $0x1b8] sm:$0xff]  ;;  %v6873_v44 = vpack.c.bf16 %v590_v34, %v586_v31  ;;  %v587_v46 = vld [vmem:[#allocation8 + $0x190] sm:$0xff] }
  0x50   :  { %4636 = vmatprep.subr.bf16.mxu0 %v6835_v10  ;;  %4668 = vmatprep.subr.bf16.mxu1 %v6839_v13  ;;  %v589_v43 = vld [vmem:[#allocation8 + $0x1a0] sm:$0xff]  ;;  %v591_v47 = vld [vmem:[#allocation8 + $0x1b0] sm:$0xff]  ;;  %v6877_v48 = vpack.c.bf16 %v592_v39, %v588_v38  ;;  %v594_v50 = vld [vmem:[#allocation8 + $0x1c8] sm:$0xff] }
  0x51   :  { %4543 = vmatmul.mubr.msk.f32.gmra.mrb[8].mxu0 %vm113_vm3, %v79_v16  ;;  %4553 = vmatmul.mubr.msk.f32.gmra.mrb[8].mxu1 %vm113_vm3, %v79_v16  ;;  %v598_v51 = vld [vmem:[#allocation8 + $0x1e8] sm:$0xff]  ;;  %v6884_v54 = vpack.c.bf16 %v589_v43, %v585_v42  ;;  %v596_v55 = vld [vmem:[#allocation8 + $0x1d8] sm:$0xff]  ;;  %v6888_v58 = vpack.c.bf16 %v591_v47, %v587_v46  ;;  %v593_v59 = vld [vmem:[#allocation8 + $0x1c0] sm:$0xff] }
  0x52   :  { %4638 = vmatpush1.bf16.msra.mxu0 %v6846_v17  ;;  %4670 = vmatpush1.bf16.msra.mxu1 %v6850_v22  ;;  %8201 = vst [vmem:[#allocation13_spill] sm:$0xff] %v6877_v48  ;;  %v81_v52 = vld [vmem:[%s8044_s0 + $0x30] sm:$0xff]  ;;  %v600_v56 = vld [vmem:[#allocation8 + $0x1f8] sm:$0xff]  ;;  %v597_v61 = vld [vmem:[#allocation8 + $0x1e0] sm:$0xff]  ;;  %v6892_v62 = vpack.c.bf16 %v598_v51, %v594_v50 }
  0x53   :  { %245 = vmatprep.mubr.f32.mxu0 %v8054_v1  ;;  %358 = vmatprep.mubr.f32.mxu1 %v8054_v1  ;;  %8202 = vst [vmem:[#allocation14_spill] sm:$0xff] %v6884_v54  ;;  %8203 = vst [vmem:[#allocation15_spill] sm:$0xff] %v6888_v58  ;;  %v595_v0 = vld [vmem:[#allocation8 + $0x1d0] sm:$0xff]  ;;  %v6896_v3 = vpack.c.bf16 %v600_v56, %v596_v55  ;;  %v410_v5 = vld [vmem:[#allocation4 + $0x8] sm:$0xff]  ;;  %v6903_v9 = vpack.c.bf16 %v597_v61, %v593_v59 }
  0x54   :  { %4640 = vmatprep.subr.bf16.mxu0 %v6854_v26  ;;  %4672 = vmatprep.subr.bf16.mxu1 %v6858_v30  ;;  %8204 = vst [vmem:[#allocation16_spill] sm:$0xff] %v6892_v62  ;;  %v599_v2 = vld [vmem:[#allocation8 + $0x1f0] sm:$0xff]  ;;  %v414_v6 = vld [vmem:[#allocation4 + $0x28] sm:$0xff]  ;;  %v412_v11 = vld [vmem:[#allocation4 + $0x18] sm:$0xff] }
  0x55   :  { %4544 = vmatmul.mubr.msk.f32.gmra.mrb[10].mxu0 %vm113_vm3, %v80_v35  ;;  %4554 = vmatmul.mubr.msk.f32.gmra.mrb[10].mxu1 %vm113_vm3, %v80_v35  ;;  %8205 = vst [vmem:[#allocation17_spill] sm:$0xff] %v6896_v3  ;;  %v82_v8 = vld [vmem:[%s8044_s0 + $0x38] sm:$0xff]  ;;  %8206 = vst [vmem:[#allocation18_spill] sm:$0xff] %v6903_v9  ;;  %v6907_v14 = vpack.c.bf16 %v599_v2, %v595_v0  ;;  %v409_v15 = vld [vmem:[#allocation4] sm:$0xff]  ;;  %v6911_v21 = vpack.c.bf16 %v414_v6, %v410_v5 }
  0x56   :  { %4642 = vmatpush1.bf16.msra.mxu0 %v6865_v36  ;;  %4674 = vmatpush1.bf16.msra.mxu1 %v6869_v40  ;;  %v416_v12 = vld [vmem:[#allocation4 + $0x38] sm:$0xff]  ;;  %v413_v16 = vld [vmem:[#allocation4 + $0x20] sm:$0xff]  ;;  %v411_v18 = vld [vmem:[#allocation4 + $0x10] sm:$0xff] }
  0x57   :  { %251 = vmatprep.mubr.f32.mxu0 %v8054_v1  ;;  %364 = vmatprep.mubr.f32.mxu1 %v8054_v1  ;;  %8207 = vst [vmem:[#allocation19_spill] sm:$0xff] %v6907_v14  ;;  %8208 = vst [vmem:[#allocation20_spill] sm:$0xff] %v6911_v21  ;;  %v415_v23 = vld [vmem:[#allocation4 + $0x30] sm:$0xff]  ;;  %v418_v25 = vld [vmem:[#allocation4 + $0x48] sm:$0xff]  ;;  %v6915_v29 = vpack.c.bf16 %v416_v12, %v412_v11  ;;  %v6919_v35 = vpack.c.bf16 %v413_v16, %v409_v15 }
  0x58   :  { %4644 = vmatprep.subr.bf16.mxu0 %v6873_v44  ;;  %4676 = vmatprep.subr.bf16.mxu1 %v6877_v48  ;;  %v422_v27 = vld [vmem:[#allocation4 + $0x68] sm:$0xff]  ;;  %v420_v31 = vld [vmem:[#allocation4 + $0x58] sm:$0xff]  ;;  %v6923_v38 = vpack.c.bf16 %v415_v23, %v411_v18  ;;  %v417_v42 = vld [vmem:[#allocation4 + $0x40] sm:$0xff] }
  0x59   :  { %4545 = vmatmul.mubr.msk.f32.gmra.mrb[12].mxu0 %vm113_vm3, %v81_v52  ;;  %4555 = vmatmul.mubr.msk.f32.gmra.mrb[12].mxu1 %vm113_vm3, %v81_v52  ;;  %8209 = vst [vmem:[#allocation21_spill] sm:$0xff] %v6915_v29  ;;  %v424_v34 = vld [vmem:[#allocation4 + $0x78] sm:$0xff]  ;;  %v6925_v39 = vpack.c.bf16 %v422_v27, %v418_v25  ;;  %v421_v43 = vld [vmem:[#allocation4 + $0x60] sm:$0xff]  ;;  %v419_v46 = vld [vmem:[#allocation4 + $0x50] sm:$0xff] }
  0x5a   :  { %4646 = vmatpush1.bf16.msra.mxu0 %v6884_v54  ;;  %4678 = vmatpush1.bf16.msra.mxu1 %v6888_v58  ;;  %v6929_v47 = vpack.c.bf16 %v424_v34, %v420_v31  ;;  %v423_v50 = vld [vmem:[#allocation4 + $0x70] sm:$0xff]  ;;  %v426_v51 = vld [vmem:[#allocation4 + $0x88] sm:$0xff]  ;;  %v428_v55 = vld [vmem:[#allocation4 + $0x98] sm:$0xff]  ;;  %v6935_v59 = vpack.c.bf16 %v421_v43, %v417_v42 }
  0x5b   :  { %257 = vmatprep.mubr.f32.mxu0 %v8054_v1  ;;  %370 = vmatprep.mubr.f32.mxu1 %v8054_v1  ;;  %v430_v52 = vld [vmem:[#allocation4 + $0xa8] sm:$0xff]  ;;  %v432_v56 = vld [vmem:[#allocation4 + $0xb8] sm:$0xff]  ;;  %v6939_v61 = vpack.c.bf16 %v423_v50, %v419_v46  ;;  %v425_v2 = vld [vmem:[#allocation4 + $0x80] sm:$0xff] }
  0x5c   :  { %4648 = vmatprep.subr.bf16.mxu0 %v6892_v62  ;;  %4680 = vmatprep.subr.bf16.mxu1 %v6896_v3  ;;  %v6941_v0 = vpack.c.bf16 %v430_v52, %v426_v51  ;;  %v429_v5 = vld [vmem:[#allocation4 + $0xa0] sm:$0xff]  ;;  %v427_v6 = vld [vmem:[#allocation4 + $0x90] sm:$0xff]  ;;  %v434_v12 = vld [vmem:[#allocation4 + $0xc8] sm:$0xff] }
  0x5d   :  { %4546 = vmatmul.mubr.msk.f32.gmra.mrb[14].mxu0 %vm113_vm3, %v82_v8  ;;  %4556 = vmatmul.mubr.msk.f32.gmra.mrb[14].mxu1 %vm113_vm3, %v82_v8  ;;  %v6944_v8 = vpack.c.bf16 %v432_v56, %v428_v55  ;;  %v431_v11 = vld [vmem:[#allocation4 + $0xb0] sm:$0xff]  ;;  %v438_v15 = vld [vmem:[#allocation4 + $0xe8] sm:$0xff]  ;;  %v436_v16 = vld [vmem:[#allocation4 + $0xd8] sm:$0xff]  ;;  %v6949_v23 = vpack.c.bf16 %v429_v5, %v425_v2 }
  0x5e   :  { %4650 = vmatpush1.bf16.msra.mxu0 %v6903_v9  ;;  %4682 = vmatpush1.bf16.msra.mxu1 %v6907_v14  ;;  %v440_v18 = vld [vmem:[#allocation4 + $0xf8] sm:$0xff]  ;;  %v6953_v25 = vpack.c.bf16 %v431_v11, %v427_v6  ;;  %v6955_v27 = vpack.c.bf16 %v438_v15, %v434_v12  ;;  %v433_v31 = vld [vmem:[#allocation4 + $0xc0] sm:$0xff]  ;;  %v435_v42 = vld [vmem:[#allocation4 + $0xd0] sm:$0xff] }
  0x5f   :  { %687 = vmatprep.mubr.f32.mxu0 %v8054_v1  ;;  %758 = vmatprep.mubr.f32.mxu1 %v8054_v1  ;;  %v437_v34 = vld [vmem:[#allocation4 + $0xe0] sm:$0xff]  ;;  %v6958_v43 = vpack.c.bf16 %v440_v18, %v436_v16  ;;  %v439_v46 = vld [vmem:[#allocation4 + $0xf0] sm:$0xff]  ;;  %v442_v50 = vld [vmem:[#allocation4 + $0x108] sm:$0xff] }
  0x60   :  { %4684 = vmatprep.subr.bf16.mxu0 %v6911_v21  ;;  %4716 = vmatprep.subr.bf16.mxu1 %v6915_v29  ;;  %8210 = vst [vmem:[#allocation22_spill] sm:$0xff] %v6953_v25  ;;  %8211 = vst [vmem:[#allocation23_spill] sm:$0xff] %v6955_v27  ;;  %v446_v51 = vld [vmem:[#allocation4 + $0x128] sm:$0xff]  ;;  %v444_v52 = vld [vmem:[#allocation4 + $0x118] sm:$0xff]  ;;  %v6961_v56 = vpack.c.bf16 %v437_v34, %v433_v31  ;;  %v6965_v2 = vpack.c.bf16 %v439_v46, %v435_v42 }
  0x61   :  { %688 = vmatmul.mubr.f32.vlgmr.msra.gmra.mrb[16].mxu0 %v8054_v1  ;;  %759 = vmatmul.mubr.f32.vlgmr.msra.gmra.mrb[16].mxu1 %v8054_v1  ;;  %8212 = vst [vmem:[#allocation24_spill] sm:$0xff] %v6958_v43  ;;  %v448_v55 = vld [vmem:[#allocation4 + $0x138] sm:$0xff]  ;;  %v6967_v5 = vpack.c.bf16 %v446_v51, %v442_v50  ;;  %v441_v6 = vld [vmem:[#allocation4 + $0x100] sm:$0xff]  ;;  %v443_v12 = vld [vmem:[#allocation4 + $0x110] sm:$0xff] }
  0x62   :  { %4686 = vmatpush1.bf16.msra.mxu0 %v6919_v35  ;;  %4718 = vmatpush1.bf16.msra.mxu1 %v6923_v38  ;;  %8213 = vst [vmem:[#allocation25_spill] sm:$0xff] %v6961_v56  ;;  %8214 = vst [vmem:[#allocation26_spill] sm:$0xff] %v6965_v2  ;;  %v445_v11 = vld [vmem:[#allocation4 + $0x120] sm:$0xff]  ;;  %v6970_v15 = vpack.c.bf16 %v448_v55, %v444_v52  ;;  %v447_v16 = vld [vmem:[#allocation4 + $0x130] sm:$0xff] }
  0x63   :  { %4688 = vmatprep.subr.bf16.mxu0 %v6925_v39  ;;  %4720 = vmatprep.subr.bf16.mxu1 %v6929_v47  ;;  %8215 = vst [vmem:[#allocation27_spill] sm:$0xff] %v6967_v5  ;;  %v450_v18 = vld [vmem:[#allocation4 + $0x148] sm:$0xff]  ;;  %v452_v31 = vld [vmem:[#allocation4 + $0x158] sm:$0xff]  ;;  %v6977_v42 = vpack.c.bf16 %v447_v16, %v443_v12  ;;  %v449_v50 = vld [vmem:[#allocation4 + $0x140] sm:$0xff] }
  0x64   :  { %833 = vmatprep.mubr.f32.mxu0 %v8054_v1  ;;  %904 = vmatprep.mubr.f32.mxu1 %v8054_v1  ;;  %8216 = vst [vmem:[#allocation28_spill] sm:$0xff] %v6970_v15  ;;  %v454_v1 = vld [vmem:[#allocation4 + $0x168] sm:$0xff]  ;;  %v456_v34 = vld [vmem:[#allocation4 + $0x178] sm:$0xff]  ;;  %v453_v51 = vld [vmem:[#allocation4 + $0x160] sm:$0xff] }
  0x65   :  { %8218 = vst [vmem:[#allocation30_spill] sm:$0xff] %v6977_v42  ;;  %v6979_v46 = vpack.c.bf16 %v454_v1, %v450_v18  ;;  %v451_v52 = vld [vmem:[#allocation4 + $0x150] sm:$0xff]  ;;  %v6982_v55 = vpack.c.bf16 %v456_v34, %v452_v31  ;;  %v457_v16 = vld [vmem:[#allocation4 + $0x180] sm:$0xff] }
  0x66   :  { %4690 = vmatpush1.bf16.msra.mxu0 %v6935_v59  ;;  %4722 = vmatpush1.bf16.msra.mxu1 %v6939_v61  ;;  %v461_v18 = vld [vmem:[#allocation4 + $0x1a0] sm:$0xff]  ;;  %v459_v31 = vld [vmem:[#allocation4 + $0x190] sm:$0xff] }
  0x67   :  { %4692 = vmatprep.subr.bf16.mxu0 %v6941_v0  ;;  %4724 = vmatprep.subr.bf16.mxu1 %v6944_v8  ;;  %8219 = vst [vmem:[#allocation31_spill] sm:$0xff] %v6979_v46  ;;  %8220 = vst [vmem:[#allocation32_spill] sm:$0xff] %v6982_v55 }
  0x6a   :  { %4694 = vmatpush1.bf16.msra.mxu0 %v6949_v23  ;;  %4726 = vmatpush1.bf16.msra.mxu1 %v6953_v25  ;;  %v6973_v25 = vpack.c.bf16 %v445_v11, %v441_v6  ;;  %v460_v6 = vld [vmem:[#allocation4 + $0x198] sm:$0xff] }
  0x6b   :  { %4696 = vmatprep.subr.bf16.mxu0 %v6955_v27  ;;  %4728 = vmatprep.subr.bf16.mxu1 %v6958_v43  ;;  %v455_v43 = vld [vmem:[#allocation4 + $0x170] sm:$0xff]  ;;  %v458_v27 = vld [vmem:[#allocation4 + $0x188] sm:$0xff]  ;;  %v464_v11 = vld [vmem:[#allocation4 + $0x1b8] sm:$0xff] }
  0x6c   :  { %8217 = vst [vmem:[#allocation29_spill] sm:$0xff] %v6973_v25  ;;  %v6989_v1 = vpack.c.bf16 %v455_v43, %v451_v52  ;;  %v6994_v34 = vpack.c.bf16 %v464_v11, %v460_v6  ;;  %v469_v52 = vld [vmem:[#allocation4 + $0x1e0] sm:$0xff]  ;;  %v467_v11 = vld [vmem:[#allocation4 + $0x1d0] sm:$0xff] }
  0x6e   :  { %4698 = vmatpush1.bf16.msra.mxu0 %v6961_v56  ;;  %4730 = vmatpush1.bf16.msra.mxu1 %v6965_v2  ;;  %v462_v56 = vld [vmem:[#allocation4 + $0x1a8] sm:$0xff]  ;;  %v6985_v2 = vpack.c.bf16 %v453_v51, %v449_v50  ;;  %8222 = vst [vmem:[#allocation34_spill] sm:$0xff] %v6989_v1  ;;  %8224 = vst [vmem:[#allocation36_spill] sm:$0xff] %v6994_v34  ;;  %v468_v50 = vld [vmem:[#allocation4 + $0x1d8] sm:$0xff] }
  0x6f   :  { %4700 = vmatprep.subr.bf16.mxu0 %v6967_v5  ;;  %4732 = vmatprep.subr.bf16.mxu1 %v6970_v15  ;;  %v6991_v12 = vpack.c.bf16 %v462_v56, %v458_v27  ;;  %v463_v15 = vld [vmem:[#allocation4 + $0x1b0] sm:$0xff]  ;;  %v466_v5 = vld [vmem:[#allocation4 + $0x1c8] sm:$0xff]  ;;  %v472_v51 = vld [vmem:[#allocation4 + $0x1f8] sm:$0xff] }
  0x70   :  { %8221 = vst [vmem:[#allocation33_spill] sm:$0xff] %v6985_v2  ;;  %v7001_v27 = vpack.c.bf16 %v463_v15, %v459_v31  ;;  %v465_v56 = vld [vmem:[#allocation4 + $0x1c0] sm:$0xff]  ;;  %v7006_v6 = vpack.c.bf16 %v472_v51, %v468_v50  ;;  %v476_v31 = vld [vmem:[#allocation6 + $0x18] sm:$0xff] }
  0x71   :  { %8223 = vst [vmem:[#allocation35_spill] sm:$0xff] %v6991_v12  ;;  %v473_v51 = vld [vmem:[#allocation6] sm:$0xff] }
  0x72   :  { %4702 = vmatpush1.bf16.msra.mxu0 %v6973_v25  ;;  %4734 = vmatpush1.bf16.msra.mxu1 %v6977_v42  ;;  %v470_v25 = vld [vmem:[#allocation4 + $0x1e8] sm:$0xff]  ;;  %v6997_v42 = vpack.c.bf16 %v461_v18, %v457_v16  ;;  %8226 = vst [vmem:[#allocation38_spill] sm:$0xff] %v7001_v27  ;;  %8228 = vst [vmem:[#allocation40_spill] sm:$0xff] %v7006_v6  ;;  %v7009_v16 = vpack.c.bf16 %v469_v52, %v465_v56  ;;  %v477_v56 = vld [vmem:[#allocation6 + $0x20] sm:$0xff] }
  0x73   :  { %4704 = vmatprep.subr.bf16.mxu0 %v6979_v46  ;;  %4736 = vmatprep.subr.bf16.mxu1 %v6982_v55  ;;  %v7003_v43 = vpack.c.bf16 %v470_v25, %v466_v5  ;;  %v471_v55 = vld [vmem:[#allocation4 + $0x1f0] sm:$0xff]  ;;  %v8231_v25 = vmov 0.0   ;;  %v474_v5 = vld [vmem:[#allocation6 + $0x8] sm:$0xff] }
  0x74   :  { %8225 = vst [vmem:[#allocation37_spill] sm:$0xff] %v6997_v42  ;;  %8229 = vst [vmem:[#allocation41_spill] sm:$0xff] %v7009_v16  ;;  %v7013_v15 = vpack.c.bf16 %v471_v55, %v467_v11  ;;  %v478_v18 = vld [vmem:[#allocation6 + $0x28] sm:$0xff]  ;;  %v480_v55 = vld [vmem:[#allocation6 + $0x38] sm:$0xff]  ;;  %v7026_v11 = vpack.c.bf16 %v477_v56, %v473_v51 }
  0x75   :  { %8227 = vst [vmem:[#allocation39_spill] sm:$0xff] %v7003_v43  ;;  %v7022_v50 = vpack.c.bf16 %v478_v18, %v474_v5  ;;  %v7024_v52 = vpack.c.bf16 %v480_v55, %v476_v31  ;;  %v486_v5 = vld [vmem:[#allocation6 + $0x68] sm:$0xff]  ;;  %v484_v18 = vld [vmem:[#allocation6 + $0x58] sm:$0xff]  ;;  %v481_v55 = vld [vmem:[#allocation6 + $0x40] sm:$0xff] }
  0x76   :  { %4706 = vmatpush1.bf16.msra.mxu0 %v6985_v2  ;;  %4738 = vmatpush1.bf16.msra.mxu1 %v6989_v1  ;;  %8230 = vst [vmem:[#allocation42_spill] sm:$0xff] %v7013_v15  ;;  %8234 = vst [vmem:[#allocation45_spill] sm:$0xff] %v7026_v11  ;;  %v488_v31 = vld [vmem:[#allocation6 + $0x78] sm:$0xff]  ;;  %v485_v51 = vld [vmem:[#allocation6 + $0x60] sm:$0xff] }
  0x77   :  { %4708 = vmatprep.subr.bf16.mxu0 %v6991_v12  ;;  %4740 = vmatprep.subr.bf16.mxu1 %v6994_v34  ;;  %8232 = vst [vmem:[#allocation43_spill] sm:$0xff] %v7022_v50  ;;  %8233 = vst [vmem:[#allocation44_spill] sm:$0xff] %v7024_v52  ;;  %v7036_v56 = vpack.c.bf16 %v488_v31, %v484_v18  ;;  %v496_v18 = vld [vmem:[#allocation6 + $0xb8] sm:$0xff]  ;;  %v489_v31 = vld [vmem:[#allocation6 + $0x80] sm:$0xff] }
  0x78   :  { %v524_v34 = vld [vmem:[#allocation6 + $0x198] sm:$0xff] }
  0x79   :  { %8237 = vst [vmem:[#allocation48_spill] sm:$0xff] %v7036_v56  ;;  %v528_v12 = vld [vmem:[#allocation6 + $0x1b8] sm:$0xff] }
  0x7a   :  { %4710 = vmatpush1.bf16.msra.mxu0 %v6997_v42  ;;  %4742 = vmatpush1.bf16.msra.mxu1 %v7001_v27  ;;  %v7038_v42 = vpack.c.bf16 %v485_v51, %v481_v55  ;;  %v493_v55 = vld [vmem:[#allocation6 + $0xa0] sm:$0xff] }
  0x7b   :  { %4712 = vmatprep.subr.bf16.mxu0 %v7003_v43  ;;  %4744 = vmatprep.subr.bf16.mxu1 %v7006_v6  ;;  %v482_v43 = vld [vmem:[#allocation6 + $0x48] sm:$0xff] }
  0x7c   :  { %v7034_v27 = vpack.c.bf16 %v486_v5, %v482_v43  ;;  %8238 = vst [vmem:[#allocation49_spill] sm:$0xff] %v7038_v42  ;;  %v494_v43 = vld [vmem:[#allocation6 + $0xa8] sm:$0xff]  ;;  %v492_v5 = vld [vmem:[#allocation6 + $0x98] sm:$0xff] }
  0x7d   :  { %v7048_v51 = vpack.c.bf16 %v496_v18, %v492_v5  ;;  %v504_v5 = vld [vmem:[#allocation6 + $0xf8] sm:$0xff]  ;;  %v497_v18 = vld [vmem:[#allocation6 + $0xc0] sm:$0xff] }
  0x7e   :  { %4714 = vmatpush1.bf16.msra.mxu0 %v7009_v16  ;;  %4746 = vmatpush1.bf16.msra.mxu1 %v7013_v15  ;;  %v475_v15 = vld [vmem:[#allocation6 + $0x10] sm:$0xff]  ;;  %8236 = vst [vmem:[#allocation47_spill] sm:$0xff] %v7034_v27 }
  0x7f   :  { %v479_v16 = vld [vmem:[#allocation6 + $0x30] sm:$0xff]  ;;  %4748 = vmatprep.subr.bf16.mxu0 %v7022_v50  ;;  %4780 = vmatprep.subr.bf16.mxu1 %v7024_v52  ;;  %8241 = vst [vmem:[#allocation52_spill] sm:$0xff] %v7048_v51  ;;  %v7050_v50 = vpack.c.bf16 %v493_v55, %v489_v31  ;;  %v501_v31 = vld [vmem:[#allocation6 + $0xe0] sm:$0xff] }
  0x80   :  { %v7029_v6 = vpack.c.bf16 %v479_v16, %v475_v15  ;;  %v483_v16 = vld [vmem:[#allocation6 + $0x50] sm:$0xff] }
  0x81   :  { %834 = vmatmul.mubr.f32.vlgmr.msra.gmra.mrb[0].mxu0 %v8231_v25  ;;  %905 = vmatmul.mubr.f32.vlgmr.msra.gmra.mrb[0].mxu1 %v8231_v25  ;;  %v487_v15 = vld [vmem:[#allocation6 + $0x70] sm:$0xff]  ;;  %8242 = vst [vmem:[#allocation53_spill] sm:$0xff] %v7050_v50 }
  0x82   :  { %1003 = vmatprep.mubr.f32.mxu0 %v8231_v25  ;;  %1074 = vmatprep.mubr.f32.mxu1 %v8231_v25  ;;  %8235 = vst [vmem:[#allocation46_spill] sm:$0xff] %v7029_v6  ;;  %v7041_v52 = vpack.c.bf16 %v487_v15, %v483_v16  ;;  %v491_v16 = vld [vmem:[#allocation6 + $0x90] sm:$0xff] }
  0x83   :  { %4750 = vmatpush1.bf16.msra.mxu0 %v7026_v11  ;;  %4782 = vmatpush1.bf16.msra.mxu1 %v7029_v6  ;;  %v490_v6 = vld [vmem:[#allocation6 + $0x88] sm:$0xff]  ;;  %v495_v15 = vld [vmem:[#allocation6 + $0xb0] sm:$0xff] }
  0x84   :  { %4752 = vmatprep.subr.bf16.mxu0 %v7034_v27  ;;  %8239 = vst [vmem:[#allocation50_spill] sm:$0xff] %v7041_v52  ;;  %4784 = vmatprep.subr.bf16.mxu1 %v7036_v56  ;;  %v7046_v11 = vpack.c.bf16 %v494_v43, %v490_v6  ;;  %v7053_v56 = vpack.c.bf16 %v495_v15, %v491_v16  ;;  %v502_v6 = vld [vmem:[#allocation6 + $0xe8] sm:$0xff]  ;;  %v500_v43 = vld [vmem:[#allocation6 + $0xd8] sm:$0xff]  ;;  %v499_v16 = vld [vmem:[#allocation6 + $0xd0] sm:$0xff] }
  0x85   :  { %v7060_v55 = vpack.c.bf16 %v504_v5, %v500_v43  ;;  %v7062_v27 = vpack.c.bf16 %v501_v31, %v497_v18  ;;  %v503_v15 = vld [vmem:[#allocation6 + $0xf0] sm:$0xff]  ;;  %v512_v43 = vld [vmem:[#allocation6 + $0x138] sm:$0xff]  ;;  %v505_v5 = vld [vmem:[#allocation6 + $0x100] sm:$0xff] }
  0x86   :  { %8240 = vst [vmem:[#allocation51_spill] sm:$0xff] %v7046_v11  ;;  %8243 = vst [vmem:[#allocation54_spill] sm:$0xff] %v7053_v56  ;;  %v509_v18 = vld [vmem:[#allocation6 + $0x120] sm:$0xff] }
  0x87   :  { %4754 = vmatpush1.bf16.msra.mxu0 %v7038_v42  ;;  %4786 = vmatpush1.bf16.msra.mxu1 %v7041_v52  ;;  %v498_v52 = vld [vmem:[#allocation6 + $0xc8] sm:$0xff]  ;;  %8245 = vst [vmem:[#allocation56_spill] sm:$0xff] %v7060_v55  ;;  %8246 = vst [vmem:[#allocation57_spill] sm:$0xff] %v7062_v27 }
  0x88   :  { %4756 = vmatprep.subr.bf16.mxu0 %v7046_v11  ;;  %4788 = vmatprep.subr.bf16.mxu1 %v7048_v51  ;;  %v7058_v42 = vpack.c.bf16 %v502_v6, %v498_v52  ;;  %v7065_v51 = vpack.c.bf16 %v503_v15, %v499_v16  ;;  %v510_v52 = vld [vmem:[#allocation6 + $0x128] sm:$0xff]  ;;  %v508_v6 = vld [vmem:[#allocation6 + $0x118] sm:$0xff]  ;;  %v7074_v11 = vpack.c.bf16 %v509_v18, %v505_v5  ;;  %v507_v16 = vld [vmem:[#allocation6 + $0x110] sm:$0xff] }
  0x89   :  { %v7072_v31 = vpack.c.bf16 %v512_v43, %v508_v6  ;;  %v511_v15 = vld [vmem:[#allocation6 + $0x130] sm:$0xff]  ;;  %v520_v6 = vld [vmem:[#allocation6 + $0x178] sm:$0xff]  ;;  %v513_v43 = vld [vmem:[#allocation6 + $0x140] sm:$0xff] }
  0x8a   :  { %8244 = vst [vmem:[#allocation55_spill] sm:$0xff] %v7058_v42  ;;  %8247 = vst [vmem:[#allocation58_spill] sm:$0xff] %v7065_v51  ;;  %v517_v5 = vld [vmem:[#allocation6 + $0x160] sm:$0xff] }
  0x8b   :  { %4758 = vmatpush1.bf16.msra.mxu0 %v7050_v50  ;;  %4790 = vmatpush1.bf16.msra.mxu1 %v7053_v56  ;;  %v506_v56 = vld [vmem:[#allocation6 + $0x108] sm:$0xff]  ;;  %8249 = vst [vmem:[#allocation60_spill] sm:$0xff] %v7072_v31  ;;  %8250 = vst [vmem:[#allocation61_spill] sm:$0xff] %v7074_v11 }
  0x8c   :  { %4760 = vmatprep.subr.bf16.mxu0 %v7058_v42  ;;  %4792 = vmatprep.subr.bf16.mxu1 %v7060_v55  ;;  %v7070_v50 = vpack.c.bf16 %v510_v52, %v506_v56  ;;  %v7077_v55 = vpack.c.bf16 %v511_v15, %v507_v16  ;;  %v518_v56 = vld [vmem:[#allocation6 + $0x168] sm:$0xff]  ;;  %v516_v52 = vld [vmem:[#allocation6 + $0x158] sm:$0xff]  ;;  %v7086_v42 = vpack.c.bf16 %v517_v5, %v513_v43  ;;  %v515_v16 = vld [vmem:[#allocation6 + $0x150] sm:$0xff] }
  0x8d   :  { %v7084_v18 = vpack.c.bf16 %v520_v6, %v516_v52  ;;  %v519_v15 = vld [vmem:[#allocation6 + $0x170] sm:$0xff]  ;;  %v521_v52 = vld [vmem:[#allocation6 + $0x180] sm:$0xff] }
  0x8e   :  { %8248 = vst [vmem:[#allocation59_spill] sm:$0xff] %v7070_v50  ;;  %8251 = vst [vmem:[#allocation62_spill] sm:$0xff] %v7077_v55  ;;  %v525_v6 = vld [vmem:[#allocation6 + $0x1a0] sm:$0xff]  ;;  %v523_v43 = vld [vmem:[#allocation6 + $0x190] sm:$0xff] }
  0x8f   :  { %4762 = vmatpush1.bf16.msra.mxu0 %v7062_v27  ;;  %4794 = vmatpush1.bf16.msra.mxu1 %v7065_v51  ;;  %v514_v51 = vld [vmem:[#allocation6 + $0x148] sm:$0xff]  ;;  %8253 = vst [vmem:[#allocation64_spill] sm:$0xff] %v7084_v18  ;;  %8254 = vst [vmem:[#allocation65_spill] sm:$0xff] %v7086_v42  ;;  %v7098_v5 = vpack.c.bf16 %v525_v6, %v521_v52  ;;  %v535_v52 = vld [vmem:[#allocation6 + $0x1f0] sm:$0xff] }
  0x90   :  { %4764 = vmatprep.subr.bf16.mxu0 %v7070_v50  ;;  %4796 = vmatprep.subr.bf16.mxu1 %v7072_v31  ;;  %v7082_v27 = vpack.c.bf16 %v518_v56, %v514_v51  ;;  %v522_v50 = vld [vmem:[#allocation6 + $0x188] sm:$0xff]  ;;  %v7095_v56 = vpack.c.bf16 %v528_v12, %v524_v34  ;;  %v532_v12 = vld [vmem:[#allocation6 + $0x1d8] sm:$0xff] }
  0x91   :  { %v526_v31 = vld [vmem:[#allocation6 + $0x1a8] sm:$0xff]  ;;  %8258 = vst [vmem:[#allocation69_spill] sm:$0xff] %v7098_v5  ;;  %v536_v34 = vld [vmem:[#allocation6 + $0x1f8] sm:$0xff] }
  0x92   :  { %8252 = vst [vmem:[#allocation63_spill] sm:$0xff] %v7082_v27  ;;  %v7093_v51 = vpack.c.bf16 %v526_v31, %v522_v50  ;;  %8257 = vst [vmem:[#allocation68_spill] sm:$0xff] %v7095_v56  ;;  %v529_v31 = vld [vmem:[#allocation6 + $0x1c0] sm:$0xff] }
  0x93   :  { %4766 = vmatpush1.bf16.msra.mxu0 %v7074_v11  ;;  %4798 = vmatpush1.bf16.msra.mxu1 %v7077_v55  ;;  %v7089_v11 = vpack.c.bf16 %v519_v15, %v515_v16  ;;  %v527_v16 = vld [vmem:[#allocation6 + $0x1b0] sm:$0xff]  ;;  %v530_v15 = vld [vmem:[#allocation6 + $0x1c8] sm:$0xff]  ;;  %v533_v55 = vld [vmem:[#allocation6 + $0x1e0] sm:$0xff] }
  0x94   :  { %4768 = vmatprep.subr.bf16.mxu0 %v7082_v27  ;;  %4800 = vmatprep.subr.bf16.mxu1 %v7084_v18  ;;  %8256 = vst [vmem:[#allocation67_spill] sm:$0xff] %v7093_v51  ;;  %v534_v27 = vld [vmem:[#allocation6 + $0x1e8] sm:$0xff]  ;;  %v7102_v18 = vpack.c.bf16 %v527_v16, %v523_v43  ;;  %v7109_v6 = vpack.c.bf16 %v533_v55, %v529_v31 }
  0x95   :  { %8255 = vst [vmem:[#allocation66_spill] sm:$0xff] %v7089_v11  ;;  %v7104_v50 = vpack.c.bf16 %v534_v27, %v530_v15  ;;  %v93_v27 = vlaneseq }
  0x96   :  { %8259 = vst [vmem:[#allocation70_spill] sm:$0xff] %v7102_v18  ;;  %8262 = vst [vmem:[#allocation73_spill] sm:$0xff] %v7109_v6 }
  0x97   :  { %4770 = vmatpush1.bf16.msra.mxu0 %v7086_v42  ;;  %4802 = vmatpush1.bf16.msra.mxu1 %v7089_v11  ;;  %8260 = vst [vmem:[#allocation71_spill] sm:$0xff] %v7104_v50  ;;  %v7106_v42 = vpack.c.bf16 %v536_v34, %v532_v12  ;;  %v531_v11 = vld [vmem:[#allocation6 + $0x1d0] sm:$0xff]  ;;  %v7120_v16 = vshrl.u32 %v93_v27, 7 }
  0x98   :  { %4772 = vmatprep.subr.bf16.mxu0 %v7093_v51  ;;  %4804 = vmatprep.subr.bf16.mxu1 %v7095_v56  ;;  %v7113_v43 = vpack.c.bf16 %v535_v52, %v531_v11  ;;  %v91_v11 = vld [vmem:[%s8046_s2] sm:$0xf] }
  0x99   :  { %8261 = vst [vmem:[#allocation72_spill] sm:$0xff] %v7106_v42  ;;  %v8152_v55 = vsub.s32 0, %v7120_v16  ;;  %v8153_v15 = vsub.s32 1, %v7120_v16  ;;  %v8160_v52 = vsub.s32 3, %v7120_v16 }
  0x9a   :  { %8263 = vst [vmem:[#allocation74_spill] sm:$0xff] %v7113_v43 }
  0x9b   :  { %4774 = vmatpush1.bf16.msra.mxu0 %v7098_v5  ;;  %4806 = vmatpush1.bf16.msra.mxu1 %v7102_v18  ;;  %v7129_v12 = vrot.slane %v91_v11, %v8152_v55  ;;  %v7133_v34 = vrot.slane %v91_v11, %v8153_v15  ;;  %v7140_v55 = vrot.slane %v91_v11, %v8160_v52  ;;  %v8169_v15 = vsub.s32 2, %v7120_v16 }
  0x9c   :  { %4776 = vmatprep.subr.bf16.mxu0 %v7104_v50  ;;  %4808 = vmatprep.subr.bf16.mxu1 %v7106_v42 }
  0x9d   :  { %8264 = vst [vmem:[#allocation75_spill] sm:$0xff] %v7129_v12  ;;  %8265 = vst [vmem:[#allocation76_spill] sm:$0xff] %v7133_v34 }
  0x9e   :  { %8266 = vst [vmem:[#allocation77_spill] sm:$0xff] %v7140_v55 }
  0x9f   :  { %4778 = vmatpush1.bf16.msra.mxu0 %v7109_v6  ;;  %4810 = vmatpush1.bf16.msra.mxu1 %v7113_v43 }
  0xa0   :  { %4812 = vmatprep.subr.bf16.mxu0 %v6764_v19  ;;  %4844 = vmatprep.subr.bf16.mxu1 %v6766_v20 }
 0x154   :  { %v835_v31 = vpop.f32.mrb[0].mxu0  ;;  %v906_v20 = vpop.f32.mrb[0].mxu1 }
 0x155   :  { %v6155_v27 = vadd.f32 %v835_v31, %v7129_v12  ;;  %v837_v19 = vpop.f32.mrb[1].mxu0  ;;  %v908_v6 = vpop.f32.mrb[1].mxu1  ;;  %v7146_v31 = vrot.slane %v91_v11, %v8169_v15 }
 0x156   :  { %v6156_v43 = vadd.f32 %v837_v19, %v7133_v34  ;;  %v6172_v18 = vadd.f32 %v908_v6, %v7140_v55 }
 0x157   :  { %v4557_v42 = vmul.f32 -1.442695, %v6155_v27  ;;  %v6171_v19 = vadd.f32 %v906_v20, %v7146_v31 }
 0x158   :  { %v4558_v50 = vmul.f32 -1.442695, %v6156_v43  ;;  %v4559_v12 = vmul.f32 -1.442695, %v6172_v18 }
 0x159   :  { %6290 = vpow2.f32 %v4557_v42 }
 0x15a   :  { %6292 = vpow2.f32 %v4558_v50 }
 0x15b   :  { %6294 = vpow2.f32 %v4559_v12 }
 0x15c   :  { %6296 = vtanh.f32 %v6171_v19 }
 0x163   :  { %v6291_v34 = vpop.eup %6290 }
 0x164   :  { %v6293_v27 = vpop.eup %6292  ;;  %v918_v43 = vadd.f32 1.0, %v6291_v34 }
 0x165   :  { %v924_v52 = vadd.f32 1.0, %v6293_v27  ;;  %v6295_v42 = vpop.eup %6294 }
 0x166   :  { %6298 = vrcp.f32 %v918_v43  ;;  %v6297_v5 = vpop.eup %6296  ;;  %v931_v55 = vadd.f32 1.0, %v6295_v42 }
 0x167   :  { %6300 = vrcp.f32 %v924_v52 }
 0x168   :  { %6302 = vrcp.f32 %v931_v55  ;;  %v8269_v55 = vsub.s32 1, %v7120_v16 }
 0x170   :  { %v6299_v50 = vpop.eup %6298 }
 0x171   :  { %v6301_v56 = vpop.eup %6300  ;;  %v935_v6 = vmul.f32 %v6299_v50, %v6297_v5 }
 0x172   :  { %v934_v51 = vmul.f32 0.0, %v6301_v56  ;;  %v6303_v20 = vpop.eup %6302  ;;  %v8267_v56 = vsub.s32 0, %v7120_v16 }
 0x174   :  { %v7149_v11 = vadd.f32 %v935_v6, %v934_v51  ;;  %v601_v51 = vld [vmem:[%s8050_s6] sm:$0xf] }
 0x175   :  { %v7195_v5 = vrot.slane %v601_v51, %v8267_v56  ;;  %v7199_v12 = vrot.slane %v601_v51, %v8269_v55  ;;  %v8272_v55 = vsub.s32 2, %v7120_v16 }
 0x176   :  { %6304 = vtanh.f32 %v7149_v11 }
 0x177   :  { %8268 = vst [vmem:[#allocation78_spill] sm:$0xff] %v7195_v5 }
 0x180   :  { %v6305_v18 = vpop.eup %6304 }
 0x181   :  { %v7152_v34 = vmul.f32 %v6305_v18, %v6303_v20  ;;  %v8270_v18 = vsub.s32 3, %v7120_v16 }
 0x183   :  { %1004 = vmatmul.mubr.f32.vlgmr.msra.gmra.mrb[16].mxu0 %v7152_v34  ;;  %1075 = vmatmul.mubr.f32.vlgmr.msra.gmra.mrb[16].mxu1 %v7152_v34  ;;  %v7205_v15 = vrot.slane %v601_v51, %v8270_v18 }
 0x184   :  { %4814 = vmatpush1.bf16.msra.mxu0 %v6773_v24  ;;  %4846 = vmatpush1.bf16.msra.mxu1 %v6777_v28 }
 0x185   :  { %4816 = vmatprep.subr.bf16.mxu0 %v6780_v32  ;;  %4848 = vmatprep.subr.bf16.mxu1 %v6782_v33  ;;  %8271 = vst [vmem:[#allocation79_spill] sm:$0xff] %v7205_v15 }
 0x186   :  { %1173 = vmatprep.mubr.f32.mxu0 %v8231_v25  ;;  %1244 = vmatprep.mubr.f32.mxu1 %v8231_v25 }
 0x188   :  { %4818 = vmatpush1.bf16.msra.mxu0 %v6789_v37  ;;  %4850 = vmatpush1.bf16.msra.mxu1 %v6793_v41 }
 0x189   :  { %4820 = vmatprep.subr.bf16.mxu0 %v6797_v45  ;;  %4852 = vmatprep.subr.bf16.mxu1 %v6804_v49 }
 0x18c   :  { %4822 = vmatpush1.bf16.msra.mxu0 %v6808_v53  ;;  %4854 = vmatpush1.bf16.msra.mxu1 %v6812_v57 }
 0x18d   :  { %4824 = vmatprep.subr.bf16.mxu0 %v6816_v60  ;;  %4856 = vmatprep.subr.bf16.mxu1 %v6820_v63 }
 0x190   :  { %4826 = vmatpush1.bf16.msra.mxu0 %v6827_v4  ;;  %4858 = vmatpush1.bf16.msra.mxu1 %v6831_v7 }
 0x191   :  { %4828 = vmatprep.subr.bf16.mxu0 %v6835_v10  ;;  %4860 = vmatprep.subr.bf16.mxu1 %v6839_v13 }
 0x194   :  { %4830 = vmatpush1.bf16.msra.mxu0 %v6846_v17  ;;  %4862 = vmatpush1.bf16.msra.mxu1 %v6850_v22 }
 0x195   :  { %4832 = vmatprep.subr.bf16.mxu0 %v6854_v26  ;;  %4864 = vmatprep.subr.bf16.mxu1 %v6858_v30 }
 0x198   :  { %4834 = vmatpush1.bf16.msra.mxu0 %v6865_v36  ;;  %4866 = vmatpush1.bf16.msra.mxu1 %v6869_v40 }
 0x199   :  { %4836 = vmatprep.subr.bf16.mxu0 %v6873_v44  ;;  %4868 = vmatprep.subr.bf16.mxu1 %v6877_v48 }
 0x19c   :  { %4838 = vmatpush1.bf16.msra.mxu0 %v6884_v54  ;;  %4870 = vmatpush1.bf16.msra.mxu1 %v6888_v58 }
 0x19d   :  { %4840 = vmatprep.subr.bf16.mxu0 %v6892_v62  ;;  %4872 = vmatprep.subr.bf16.mxu1 %v6896_v3 }
 0x1a0   :  { %4842 = vmatpush1.bf16.msra.mxu0 %v6903_v9  ;;  %4874 = vmatpush1.bf16.msra.mxu1 %v6907_v14 }
 0x1a1   :  { %4876 = vmatprep.subr.bf16.mxu0 %v6911_v21  ;;  %4908 = vmatprep.subr.bf16.mxu1 %v6915_v29  ;;  %v7210_v29 = vrot.slane %v601_v51, %v8272_v55  ;;  %v8276_v55 = vld [vmem:[#allocation25_spill] sm:$0xff] }
 0x256   :  { %v1005_v52 = vpop.f32.mrb[16].mxu0  ;;  %v1076_v19 = vpop.f32.mrb[16].mxu1 }
 0x257   :  { %v6187_v27 = vadd.f32 %v1005_v52, %v7195_v5  ;;  %v1007_v43 = vpop.f32.mrb[17].mxu0  ;;  %v1078_v42 = vpop.f32.mrb[17].mxu1  ;;  %v6189_v52 = vadd.f32 %v1076_v19, %v7210_v29 }
 0x258   :  { %v6188_v50 = vadd.f32 %v1007_v43, %v7199_v12  ;;  %v6190_v56 = vadd.f32 %v1078_v42, %v7205_v15 }
 0x259   :  { %v4560_v6 = vmul.f32 -1.442695, %v6187_v27 }
 0x25a   :  { %v4561_v20 = vmul.f32 -1.442695, %v6188_v50  ;;  %v4562_v21 = vmul.f32 -1.442695, %v6190_v56 }
 0x25b   :  { %6306 = vpow2.f32 %v4560_v6 }
 0x25c   :  { %6308 = vpow2.f32 %v4561_v20 }
 0x25d   :  { %6310 = vpow2.f32 %v4562_v21  ;;  %v8274_v21 = vld [vmem:[#allocation23_spill] sm:$0xff] }
 0x25e   :  { %6312 = vtanh.f32 %v6189_v52  ;;  %v8277_v52 = vld [vmem:[#allocation26_spill] sm:$0xff] }
 0x265   :  { %v6307_v5 = vpop.eup %6306 }
 0x266   :  { %v6309_v14 = vpop.eup %6308  ;;  %v1088_v43 = vadd.f32 1.0, %v6307_v5 }
 0x267   :  { %v1094_v27 = vadd.f32 1.0, %v6309_v14  ;;  %v6311_v50 = vpop.eup %6310  ;;  %v8273_v14 = vld [vmem:[#allocation22_spill] sm:$0xff] }
 0x268   :  { %6314 = vrcp.f32 %v1088_v43  ;;  %v6313_v6 = vpop.eup %6312  ;;  %v1101_v15 = vadd.f32 1.0, %v6311_v50  ;;  %v8278_v43 = vld [vmem:[#allocation27_spill] sm:$0xff]  ;;  %v8280_v50 = vld [vmem:[#allocation29_spill] sm:$0xff] }
 0x269   :  { %6316 = vrcp.f32 %v1094_v27  ;;  %v8279_v27 = vld [vmem:[#allocation28_spill] sm:$0xff] }
 0x26a   :  { %6318 = vrcp.f32 %v1101_v15  ;;  %v8275_v15 = vld [vmem:[#allocation24_spill] sm:$0xff] }
 0x272   :  { %v6315_v20 = vpop.eup %6314 }
 0x273   :  { %v6317_v18 = vpop.eup %6316  ;;  %v1105_v42 = vmul.f32 %v6315_v20, %v6313_v6  ;;  %v8281_v6 = vld [vmem:[#allocation30_spill] sm:$0xff]  ;;  %v8282_v20 = vld [vmem:[#allocation32_spill] sm:$0xff] }
 0x274   :  { %v1104_v16 = vmul.f32 0.0, %v6317_v18  ;;  %v6319_v19 = vpop.eup %6318  ;;  %v8283_v18 = vld [vmem:[#allocation35_spill] sm:$0xff] }
 0x276   :  { %v7213_v51 = vadd.f32 %v1105_v42, %v1104_v16  ;;  %v8284_v42 = vld [vmem:[#allocation36_spill] sm:$0xff]  ;;  %v8285_v16 = vld [vmem:[#allocation37_spill] sm:$0xff] }
 0x278   :  { %6320 = vtanh.f32 %v7213_v51 }
 0x282   :  { %v6321_v56 = vpop.eup %6320 }
 0x283   :  { %v1108_v5 = vmul.f32 %v6321_v56, %v6319_v19  ;;  %v8286_v19 = vld [vmem:[#allocation38_spill] sm:$0xff]  ;;  %v8287_v56 = vld [vmem:[#allocation39_spill] sm:$0xff] }
 0x285   :  { %1174 = vmatmul.mubr.f32.vlgmr.msra.gmra.mrb[18].mxu0 %v1108_v5  ;;  %1245 = vmatmul.mubr.f32.vlgmr.msra.gmra.mrb[18].mxu1 %v1108_v5  ;;  %v8288_v5 = vld [vmem:[#allocation40_spill] sm:$0xff] }
 0x286   :  { %4878 = vmatpush1.bf16.msra.mxu0 %v6919_v35  ;;  %4910 = vmatpush1.bf16.msra.mxu1 %v6923_v38 }
 0x287   :  { %4880 = vmatprep.subr.bf16.mxu0 %v6925_v39  ;;  %4912 = vmatprep.subr.bf16.mxu1 %v6929_v47 }
 0x288   :  { %1319 = vmatprep.mubr.f32.mxu0 %v8231_v25  ;;  %1390 = vmatprep.mubr.f32.mxu1 %v8231_v25 }
 0x28a   :  { %4882 = vmatpush1.bf16.msra.mxu0 %v6935_v59  ;;  %4914 = vmatpush1.bf16.msra.mxu1 %v6939_v61 }
 0x28b   :  { %4884 = vmatprep.subr.bf16.mxu0 %v6941_v0  ;;  %4916 = vmatprep.subr.bf16.mxu1 %v6944_v8 }
 0x28e   :  { %4886 = vmatpush1.bf16.msra.mxu0 %v6949_v23  ;;  %4918 = vmatpush1.bf16.msra.mxu1 %v8273_v14 }
 0x28f   :  { %4888 = vmatprep.subr.bf16.mxu0 %v8274_v21  ;;  %4920 = vmatprep.subr.bf16.mxu1 %v8275_v15 }
 0x292   :  { %4890 = vmatpush1.bf16.msra.mxu0 %v8276_v55  ;;  %4922 = vmatpush1.bf16.msra.mxu1 %v8277_v52 }
 0x293   :  { %4892 = vmatprep.subr.bf16.mxu0 %v8278_v43  ;;  %4924 = vmatprep.subr.bf16.mxu1 %v8279_v27  ;;  %v8326_v27 = vld [vmem:[#allocation76_spill] sm:$0xff] }
 0x296   :  { %4894 = vmatpush1.bf16.msra.mxu0 %v8280_v50  ;;  %4926 = vmatpush1.bf16.msra.mxu1 %v8281_v6  ;;  %v8289_v6 = vld [vmem:[#allocation41_spill] sm:$0xff] }
 0x297   :  { %4896 = vmatprep.subr.bf16.mxu0 %v6979_v46  ;;  %4928 = vmatprep.subr.bf16.mxu1 %v8282_v20  ;;  %v8290_v46 = vld [vmem:[#allocation42_spill] sm:$0xff]  ;;  %v8291_v20 = vld [vmem:[#allocation43_spill] sm:$0xff] }
 0x29a   :  { %4898 = vmatpush1.bf16.msra.mxu0 %v6985_v2  ;;  %4930 = vmatpush1.bf16.msra.mxu1 %v6989_v1  ;;  %v8292_v2 = vld [vmem:[#allocation44_spill] sm:$0xff]  ;;  %v8325_v1 = vld [vmem:[#allocation75_spill] sm:$0xff] }
 0x29b   :  { %4900 = vmatprep.subr.bf16.mxu0 %v8283_v18  ;;  %4932 = vmatprep.subr.bf16.mxu1 %v8284_v42  ;;  %v8293_v42 = vld [vmem:[#allocation45_spill] sm:$0xff]  ;;  %v8307_v18 = vld [vmem:[#allocation59_spill] sm:$0xff] }
 0x29e   :  { %4902 = vmatpush1.bf16.msra.mxu0 %v8285_v16  ;;  %4934 = vmatpush1.bf16.msra.mxu1 %v8286_v19  ;;  %v8294_v16 = vld [vmem:[#allocation46_spill] sm:$0xff]  ;;  %v8295_v19 = vld [vmem:[#allocation47_spill] sm:$0xff] }
 0x29f   :  { %4904 = vmatprep.subr.bf16.mxu0 %v8287_v56  ;;  %4936 = vmatprep.subr.bf16.mxu1 %v8288_v5  ;;  %v8296_v56 = vld [vmem:[#allocation48_spill] sm:$0xff]  ;;  %v8306_v5 = vld [vmem:[#allocation58_spill] sm:$0xff] }
 0x2a2   :  { %4906 = vmatpush1.bf16.msra.mxu0 %v8289_v6  ;;  %4938 = vmatpush1.bf16.msra.mxu1 %v8290_v46  ;;  %v8297_v46 = vld [vmem:[#allocation49_spill] sm:$0xff]  ;;  %v8300_v6 = vld [vmem:[#allocation52_spill] sm:$0xff] }
 0x2a3   :  { %4940 = vmatprep.subr.bf16.mxu0 %v8291_v20  ;;  %4972 = vmatprep.subr.bf16.mxu1 %v8292_v2  ;;  %v8298_v20 = vld [vmem:[#allocation50_spill] sm:$0xff]  ;;  %v8299_v2 = vld [vmem:[#allocation51_spill] sm:$0xff] }
 0x2a5   :  { %1320 = vmatmul.mubr.f32.vlgmr.msra.gmra.mrb[2].mxu0 %v7152_v34  ;;  %1391 = vmatmul.mubr.f32.vlgmr.msra.gmra.mrb[2].mxu1 %v7152_v34  ;;  %v8301_v34 = vld [vmem:[#allocation53_spill] sm:$0xff] }
 0x2a6   :  { %4942 = vmatpush1.bf16.msra.mxu0 %v8293_v42  ;;  %4974 = vmatpush1.bf16.msra.mxu1 %v8294_v16  ;;  %v8302_v42 = vld [vmem:[#allocation54_spill] sm:$0xff]  ;;  %v8303_v16 = vld [vmem:[#allocation55_spill] sm:$0xff] }
 0x2a7   :  { %4944 = vmatprep.subr.bf16.mxu0 %v8295_v19  ;;  %4976 = vmatprep.subr.bf16.mxu1 %v8296_v56  ;;  %v8304_v19 = vld [vmem:[#allocation56_spill] sm:$0xff]  ;;  %v8305_v56 = vld [vmem:[#allocation57_spill] sm:$0xff] }
 0x2a8   :  { %1489 = vmatprep.mubr.f32.mxu0 %v8231_v25  ;;  %1560 = vmatprep.mubr.f32.mxu1 %v8231_v25 }
 0x2aa   :  { %4946 = vmatpush1.bf16.msra.mxu0 %v8297_v46  ;;  %4978 = vmatpush1.bf16.msra.mxu1 %v8298_v20  ;;  %v8308_v46 = vld [vmem:[#allocation60_spill] sm:$0xff]  ;;  %v8309_v20 = vld [vmem:[#allocation61_spill] sm:$0xff] }
 0x2ab   :  { %4948 = vmatprep.subr.bf16.mxu0 %v8299_v2  ;;  %4980 = vmatprep.subr.bf16.mxu1 %v8300_v6  ;;  %v8310_v2 = vld [vmem:[#allocation62_spill] sm:$0xff]  ;;  %v8311_v6 = vld [vmem:[#allocation63_spill] sm:$0xff] }
 0x2ae   :  { %4950 = vmatpush1.bf16.msra.mxu0 %v8301_v34  ;;  %4982 = vmatpush1.bf16.msra.mxu1 %v8302_v42  ;;  %v8312_v34 = vld [vmem:[#allocation64_spill] sm:$0xff]  ;;  %v8313_v42 = vld [vmem:[#allocation65_spill] sm:$0xff] }
 0x2af   :  { %4952 = vmatprep.subr.bf16.mxu0 %v8303_v16  ;;  %4984 = vmatprep.subr.bf16.mxu1 %v8304_v19  ;;  %v8314_v16 = vld [vmem:[#allocation66_spill] sm:$0xff]  ;;  %v8315_v19 = vld [vmem:[#allocation67_spill] sm:$0xff] }
 0x2b2   :  { %4954 = vmatpush1.bf16.msra.mxu0 %v8305_v56  ;;  %4986 = vmatpush1.bf16.msra.mxu1 %v8306_v5  ;;  %v8316_v56 = vld [vmem:[#allocation68_spill] sm:$0xff]  ;;  %v8317_v5 = vld [vmem:[#allocation69_spill] sm:$0xff] }
 0x2b3   :  { %4956 = vmatprep.subr.bf16.mxu0 %v8307_v18  ;;  %4988 = vmatprep.subr.bf16.mxu1 %v8308_v46  ;;  %v8318_v18 = vld [vmem:[#allocation70_spill] sm:$0xff]  ;;  %v8319_v46 = vld [vmem:[#allocation71_spill] sm:$0xff] }
 0x2b6   :  { %4958 = vmatpush1.bf16.msra.mxu0 %v8309_v20  ;;  %4990 = vmatpush1.bf16.msra.mxu1 %v8310_v2  ;;  %v8320_v20 = vld [vmem:[#allocation72_spill] sm:$0xff]  ;;  %v8321_v2 = vld [vmem:[#allocation73_spill] sm:$0xff] }
 0x2b7   :  { %4960 = vmatprep.subr.bf16.mxu0 %v8311_v6  ;;  %4992 = vmatprep.subr.bf16.mxu1 %v8312_v34  ;;  %v8322_v6 = vld [vmem:[#allocation74_spill] sm:$0xff]  ;;  %v8323_v34 = vld [vmem:[#allocation11_spill] sm:$0xff] }
 0x2ba   :  { %4962 = vmatpush1.bf16.msra.mxu0 %v8313_v42  ;;  %4994 = vmatpush1.bf16.msra.mxu1 %v8314_v16  ;;  %v8324_v42 = vld [vmem:[#allocation12_spill] sm:$0xff] }
 0x2bb   :  { %4964 = vmatprep.subr.bf16.mxu0 %v8315_v19  ;;  %4996 = vmatprep.subr.bf16.mxu1 %v8316_v56 }
 0x2be   :  { %4966 = vmatpush1.bf16.msra.mxu0 %v8317_v5  ;;  %4998 = vmatpush1.bf16.msra.mxu1 %v8318_v18 }
 0x2bf   :  { %4968 = vmatprep.subr.bf16.mxu0 %v8319_v46  ;;  %5000 = vmatprep.subr.bf16.mxu1 %v8320_v20  ;;  %v8327_v20 = vld [vmem:[#allocation77_spill] sm:$0xff] }
 0x2c2   :  { %4970 = vmatpush1.bf16.msra.mxu0 %v8321_v2  ;;  %5002 = vmatpush1.bf16.msra.mxu1 %v8322_v6 }
 0x2c3   :  { %5004 = vmatprep.subr.bf16.mxu0 %v8323_v34  ;;  %5036 = vmatprep.subr.bf16.mxu1 %v8324_v42 }
 0x378   :  { %v1321_v16 = vpop.f32.mrb[2].mxu0  ;;  %v1392_v19 = vpop.f32.mrb[2].mxu1 }
 0x379   :  { %v6157_v56 = vadd.f32 %v1321_v16, %v8325_v1  ;;  %v1323_v50 = vpop.f32.mrb[3].mxu0  ;;  %v1394_v5 = vpop.f32.mrb[3].mxu1  ;;  %v6173_v6 = vadd.f32 %v1392_v19, %v7146_v31 }
 0x37a   :  { %v6158_v18 = vadd.f32 %v1323_v50, %v8326_v27  ;;  %v6174_v2 = vadd.f32 %v1394_v5, %v8327_v20 }
 0x37b   :  { %v4563_v43 = vmul.f32 -1.442695, %v6157_v56 }
 0x37c   :  { %v4564_v46 = vmul.f32 -1.442695, %v6158_v18  ;;  %v4565_v52 = vmul.f32 -1.442695, %v6174_v2 }
 0x37d   :  { %6322 = vpow2.f32 %v4563_v43 }
 0x37e   :  { %6324 = vpow2.f32 %v4564_v46 }
 0x37f   :  { %6326 = vpow2.f32 %v4565_v52 }
 0x380   :  { %6328 = vtanh.f32 %v6173_v6 }
 0x387   :  { %v6323_v34 = vpop.eup %6322 }
 0x388   :  { %v6325_v55 = vpop.eup %6324  ;;  %v1404_v42 = vadd.f32 1.0, %v6323_v34 }
 0x389   :  { %v1410_v15 = vadd.f32 1.0, %v6325_v55  ;;  %v6327_v16 = vpop.eup %6326 }
 0x38a   :  { %6330 = vrcp.f32 %v1404_v42  ;;  %v6329_v1 = vpop.eup %6328  ;;  %v1417_v43 = vadd.f32 1.0, %v6327_v16  ;;  %v8331_v42 = vld [vmem:[#allocation78_spill] sm:$0xff] }
 0x38b   :  { %6332 = vrcp.f32 %v1410_v15  ;;  %v8330_v15 = vld [vmem:[#allocation21_spill] sm:$0xff] }
 0x38c   :  { %6334 = vrcp.f32 %v1417_v43 }
 0x394   :  { %v6331_v50 = vpop.eup %6330 }
 0x395   :  { %v6333_v56 = vpop.eup %6332  ;;  %v1421_v18 = vmul.f32 %v6331_v50, %v6329_v1  ;;  %v8328_v1 = vld [vmem:[#allocation19_spill] sm:$0xff] }
 0x396   :  { %v1420_v46 = vmul.f32 %v6333_v56, %v7149_v11  ;;  %v6335_v2 = vpop.eup %6334  ;;  %v8329_v11 = vld [vmem:[#allocation20_spill] sm:$0xff] }
 0x398   :  { %v7291_v5 = vadd.f32 %v1421_v18, %v1420_v46  ;;  %v8332_v46 = vld [vmem:[#allocation79_spill] sm:$0xff] }
 0x39a   :  { %6336 = vtanh.f32 %v7291_v5 }
 0x3a4   :  { %v6337_v19 = vpop.eup %6336 }
 0x3a5   :  { %v7294_v52 = vmul.f32 %v6337_v19, %v6335_v2 }
 0x3a7   :  { %1490 = vmatmul.mubr.f32.vlgmr.msra.gmra.mrb[18].mxu0 %v7294_v52  ;;  %1561 = vmatmul.mubr.f32.vlgmr.msra.gmra.mrb[18].mxu1 %v7294_v52 }
 0x3a8   :  { %5006 = vmatpush1.bf16.msra.mxu0 %v6773_v24  ;;  %5038 = vmatpush1.bf16.msra.mxu1 %v6777_v28 }
 0x3a9   :  { %5008 = vmatprep.subr.bf16.mxu0 %v6780_v32  ;;  %5040 = vmatprep.subr.bf16.mxu1 %v6782_v33 }
 0x3aa   :  { %1659 = vmatprep.mubr.f32.mxu0 %v8231_v25  ;;  %1730 = vmatprep.mubr.f32.mxu1 %v8231_v25 }
 0x3ac   :  { %5010 = vmatpush1.bf16.msra.mxu0 %v6789_v37  ;;  %5042 = vmatpush1.bf16.msra.mxu1 %v6793_v41 }
 0x3ad   :  { %5012 = vmatprep.subr.bf16.mxu0 %v6797_v45  ;;  %5044 = vmatprep.subr.bf16.mxu1 %v6804_v49 }
 0x3b0   :  { %5014 = vmatpush1.bf16.msra.mxu0 %v6808_v53  ;;  %5046 = vmatpush1.bf16.msra.mxu1 %v6812_v57 }
 0x3b1   :  { %5016 = vmatprep.subr.bf16.mxu0 %v6816_v60  ;;  %5048 = vmatprep.subr.bf16.mxu1 %v6820_v63 }
 0x3b4   :  { %5018 = vmatpush1.bf16.msra.mxu0 %v6827_v4  ;;  %5050 = vmatpush1.bf16.msra.mxu1 %v6831_v7 }
 0x3b5   :  { %5020 = vmatprep.subr.bf16.mxu0 %v6835_v10  ;;  %5052 = vmatprep.subr.bf16.mxu1 %v6839_v13 }
 0x3b8   :  { %5022 = vmatpush1.bf16.msra.mxu0 %v6846_v17  ;;  %5054 = vmatpush1.bf16.msra.mxu1 %v6850_v22 }
 0x3b9   :  { %5024 = vmatprep.subr.bf16.mxu0 %v6854_v26  ;;  %5056 = vmatprep.subr.bf16.mxu1 %v6858_v30 }
 0x3bc   :  { %5026 = vmatpush1.bf16.msra.mxu0 %v6865_v36  ;;  %5058 = vmatpush1.bf16.msra.mxu1 %v6869_v40 }
 0x3bd   :  { %5028 = vmatprep.subr.bf16.mxu0 %v6873_v44  ;;  %5060 = vmatprep.subr.bf16.mxu1 %v6877_v48 }
 0x3c0   :  { %5030 = vmatpush1.bf16.msra.mxu0 %v6884_v54  ;;  %5062 = vmatpush1.bf16.msra.mxu1 %v6888_v58 }
 0x3c1   :  { %5032 = vmatprep.subr.bf16.mxu0 %v6892_v62  ;;  %5064 = vmatprep.subr.bf16.mxu1 %v6896_v3 }
 0x3c4   :  { %5034 = vmatpush1.bf16.msra.mxu0 %v6903_v9  ;;  %5066 = vmatpush1.bf16.msra.mxu1 %v8328_v1 }
 0x3c5   :  { %5068 = vmatprep.subr.bf16.mxu0 %v8329_v11  ;;  %5100 = vmatprep.subr.bf16.mxu1 %v8330_v15 }
 0x47a   :  { %v1491_v55 = vpop.f32.mrb[18].mxu0  ;;  %v1562_v6 = vpop.f32.mrb[18].mxu1 }
 0x47b   :  { %v6191_v34 = vadd.f32 %v1491_v55, %v8331_v42  ;;  %v1493_v16 = vpop.f32.mrb[19].mxu0  ;;  %v1564_v50 = vpop.f32.mrb[19].mxu1  ;;  %v6193_v1 = vadd.f32 %v1562_v6, %v7210_v29 }
 0x47c   :  { %v6192_v56 = vadd.f32 %v1493_v16, %v7199_v12  ;;  %v6194_v2 = vadd.f32 %v1564_v50, %v8332_v46 }
 0x47d   :  { %v4566_v18 = vmul.f32 -1.442695, %v6191_v34 }
 0x47e   :  { %v4567_v43 = vmul.f32 -1.442695, %v6192_v56  ;;  %v4568_v19 = vmul.f32 -1.442695, %v6194_v2 }
 0x47f   :  { %6338 = vpow2.f32 %v4566_v18 }
 0x480   :  { %6340 = vpow2.f32 %v4567_v43 }
 0x481   :  { %6342 = vpow2.f32 %v4568_v19  ;;  %v8339_v19 = vld [vmem:[#allocation30_spill] sm:$0xff] }
 0x482   :  { %6344 = vtanh.f32 %v6193_v1  ;;  %v8336_v1 = vld [vmem:[#allocation27_spill] sm:$0xff] }
 0x489   :  { %v6339_v11 = vpop.eup %6338 }
 0x48a   :  { %v6341_v9 = vpop.eup %6340  ;;  %v1574_v15 = vadd.f32 1.0, %v6339_v11 }
 0x48b   :  { %v1580_v3 = vadd.f32 1.0, %v6341_v9  ;;  %v6343_v55 = vpop.eup %6342  ;;  %v8334_v9 = vld [vmem:[#allocation25_spill] sm:$0xff] }
 0x48c   :  { %6346 = vrcp.f32 %v1574_v15  ;;  %v6345_v42 = vpop.eup %6344  ;;  %v1587_v18 = vadd.f32 1.0, %v6343_v55  ;;  %v8337_v15 = vld [vmem:[#allocation28_spill] sm:$0xff]  ;;  %v8340_v55 = vld [vmem:[#allocation31_spill] sm:$0xff] }
 0x48d   :  { %6348 = vrcp.f32 %v1580_v3  ;;  %v8333_v3 = vld [vmem:[#allocation24_spill] sm:$0xff] }
 0x48e   :  { %6350 = vrcp.f32 %v1587_v18  ;;  %v8344_v18 = vld [vmem:[#allocation35_spill] sm:$0xff] }
 0x496   :  { %v6347_v16 = vpop.eup %6346 }
 0x497   :  { %v6349_v34 = vpop.eup %6348  ;;  %v1591_v56 = vmul.f32 %v6347_v16, %v6345_v42  ;;  %v8338_v42 = vld [vmem:[#allocation29_spill] sm:$0xff]  ;;  %v8341_v16 = vld [vmem:[#allocation32_spill] sm:$0xff] }
 0x498   :  { %v1590_v43 = vmul.f32 %v6349_v34, %v7213_v51  ;;  %v6351_v6 = vpop.eup %6350  ;;  %v8335_v51 = vld [vmem:[#allocation26_spill] sm:$0xff]  ;;  %v8342_v34 = vld [vmem:[#allocation33_spill] sm:$0xff] }
 0x49a   :  { %v7337_v50 = vadd.f32 %v1591_v56, %v1590_v43  ;;  %v8343_v56 = vld [vmem:[#allocation34_spill] sm:$0xff]  ;;  %v8345_v43 = vld [vmem:[#allocation36_spill] sm:$0xff] }
 0x49c   :  { %6352 = vtanh.f32 %v7337_v50 }
 0x4a6   :  { %v6353_v11 = vpop.eup %6352 }
 0x4a7   :  { %v1594_v2 = vmul.f32 %v6353_v11, %v6351_v6  ;;  %v8346_v6 = vld [vmem:[#allocation37_spill] sm:$0xff]  ;;  %v8347_v11 = vld [vmem:[#allocation38_spill] sm:$0xff] }
 0x4a9   :  { %1660 = vmatmul.mubr.f32.vlgmr.msra.gmra.mrb[20].mxu0 %v1594_v2  ;;  %1731 = vmatmul.mubr.f32.vlgmr.msra.gmra.mrb[20].mxu1 %v1594_v2  ;;  %v8348_v2 = vld [vmem:[#allocation39_spill] sm:$0xff] }
 0x4aa   :  { %5070 = vmatpush1.bf16.msra.mxu0 %v6919_v35  ;;  %5102 = vmatpush1.bf16.msra.mxu1 %v6923_v38 }
 0x4ab   :  { %5072 = vmatprep.subr.bf16.mxu0 %v6925_v39  ;;  %5104 = vmatprep.subr.bf16.mxu1 %v6929_v47 }
 0x4ac   :  { %1805 = vmatprep.mubr.f32.mxu0 %v8231_v25  ;;  %1876 = vmatprep.mubr.f32.mxu1 %v8231_v25 }
 0x4ae   :  { %5074 = vmatpush1.bf16.msra.mxu0 %v6935_v59  ;;  %5106 = vmatpush1.bf16.msra.mxu1 %v6939_v61 }
 0x4af   :  { %5076 = vmatprep.subr.bf16.mxu0 %v6941_v0  ;;  %5108 = vmatprep.subr.bf16.mxu1 %v6944_v8 }
 0x4b2   :  { %5078 = vmatpush1.bf16.msra.mxu0 %v6949_v23  ;;  %5110 = vmatpush1.bf16.msra.mxu1 %v8273_v14 }
 0x4b3   :  { %5080 = vmatprep.subr.bf16.mxu0 %v8274_v21  ;;  %5112 = vmatprep.subr.bf16.mxu1 %v8333_v3 }
 0x4b6   :  { %5082 = vmatpush1.bf16.msra.mxu0 %v8334_v9  ;;  %5114 = vmatpush1.bf16.msra.mxu1 %v8335_v51 }
 0x4b7   :  { %5084 = vmatprep.subr.bf16.mxu0 %v8336_v1  ;;  %5116 = vmatprep.subr.bf16.mxu1 %v8337_v15 }
 0x4ba   :  { %5086 = vmatpush1.bf16.msra.mxu0 %v8338_v42  ;;  %5118 = vmatpush1.bf16.msra.mxu1 %v8339_v19  ;;  %v8349_v42 = vld [vmem:[#allocation40_spill] sm:$0xff]  ;;  %v8350_v19 = vld [vmem:[#allocation41_spill] sm:$0xff] }
 0x4bb   :  { %5088 = vmatprep.subr.bf16.mxu0 %v8340_v55  ;;  %5120 = vmatprep.subr.bf16.mxu1 %v8341_v16  ;;  %v8351_v55 = vld [vmem:[#allocation42_spill] sm:$0xff]  ;;  %v8352_v16 = vld [vmem:[#allocation43_spill] sm:$0xff] }
 0x4be   :  { %5090 = vmatpush1.bf16.msra.mxu0 %v8342_v34  ;;  %5122 = vmatpush1.bf16.msra.mxu1 %v8343_v56  ;;  %v8353_v34 = vld [vmem:[#allocation44_spill] sm:$0xff]  ;;  %v8386_v56 = vld [vmem:[#allocation75_spill] sm:$0xff] }
 0x4bf   :  { %5092 = vmatprep.subr.bf16.mxu0 %v8344_v18  ;;  %5124 = vmatprep.subr.bf16.mxu1 %v8345_v43  ;;  %v8354_v43 = vld [vmem:[#allocation45_spill] sm:$0xff]  ;;  %v8368_v18 = vld [vmem:[#allocation59_spill] sm:$0xff] }
 0x4c2   :  { %5094 = vmatpush1.bf16.msra.mxu0 %v8346_v6  ;;  %5126 = vmatpush1.bf16.msra.mxu1 %v8347_v11  ;;  %v8355_v6 = vld [vmem:[#allocation46_spill] sm:$0xff]  ;;  %v8356_v11 = vld [vmem:[#allocation47_spill] sm:$0xff] }
 0x4c3   :  { %5096 = vmatprep.subr.bf16.mxu0 %v8348_v2  ;;  %5128 = vmatprep.subr.bf16.mxu1 %v8349_v42  ;;  %v8357_v2 = vld [vmem:[#allocation48_spill] sm:$0xff]  ;;  %v8367_v42 = vld [vmem:[#allocation58_spill] sm:$0xff] }
 0x4c6   :  { %5098 = vmatpush1.bf16.msra.mxu0 %v8350_v19  ;;  %5130 = vmatpush1.bf16.msra.mxu1 %v8351_v55  ;;  %v8358_v55 = vld [vmem:[#allocation49_spill] sm:$0xff]  ;;  %v8361_v19 = vld [vmem:[#allocation52_spill] sm:$0xff] }
 0x4c7   :  { %5132 = vmatprep.subr.bf16.mxu0 %v8352_v16  ;;  %5164 = vmatprep.subr.bf16.mxu1 %v8353_v34  ;;  %v8359_v16 = vld [vmem:[#allocation50_spill] sm:$0xff]  ;;  %v8360_v34 = vld [vmem:[#allocation51_spill] sm:$0xff] }
 0x4c9   :  { %1806 = vmatmul.mubr.f32.vlgmr.msra.gmra.mrb[4].mxu0 %v7294_v52  ;;  %1877 = vmatmul.mubr.f32.vlgmr.msra.gmra.mrb[4].mxu1 %v7294_v52  ;;  %v8362_v52 = vld [vmem:[#allocation53_spill] sm:$0xff] }
 0x4ca   :  { %5134 = vmatpush1.bf16.msra.mxu0 %v8354_v43  ;;  %5166 = vmatpush1.bf16.msra.mxu1 %v8355_v6  ;;  %v8363_v43 = vld [vmem:[#allocation54_spill] sm:$0xff]  ;;  %v8364_v6 = vld [vmem:[#allocation55_spill] sm:$0xff] }
 0x4cb   :  { %5136 = vmatprep.subr.bf16.mxu0 %v8356_v11  ;;  %5168 = vmatprep.subr.bf16.mxu1 %v8357_v2  ;;  %v8365_v11 = vld [vmem:[#allocation56_spill] sm:$0xff]  ;;  %v8366_v2 = vld [vmem:[#allocation57_spill] sm:$0xff] }
 0x4cc   :  { %1975 = vmatprep.mubr.f32.mxu0 %v8231_v25  ;;  %2046 = vmatprep.mubr.f32.mxu1 %v8231_v25 }
 0x4ce   :  { %5138 = vmatpush1.bf16.msra.mxu0 %v8358_v55  ;;  %5170 = vmatpush1.bf16.msra.mxu1 %v8359_v16  ;;  %v8369_v55 = vld [vmem:[#allocation60_spill] sm:$0xff]  ;;  %v8370_v16 = vld [vmem:[#allocation61_spill] sm:$0xff] }
 0x4cf   :  { %5140 = vmatprep.subr.bf16.mxu0 %v8360_v34  ;;  %5172 = vmatprep.subr.bf16.mxu1 %v8361_v19  ;;  %v8371_v34 = vld [vmem:[#allocation62_spill] sm:$0xff]  ;;  %v8372_v19 = vld [vmem:[#allocation63_spill] sm:$0xff] }
 0x4d2   :  { %5142 = vmatpush1.bf16.msra.mxu0 %v8362_v52  ;;  %5174 = vmatpush1.bf16.msra.mxu1 %v8363_v43  ;;  %v8373_v52 = vld [vmem:[#allocation64_spill] sm:$0xff]  ;;  %v8374_v43 = vld [vmem:[#allocation65_spill] sm:$0xff] }
 0x4d3   :  { %5144 = vmatprep.subr.bf16.mxu0 %v8364_v6  ;;  %5176 = vmatprep.subr.bf16.mxu1 %v8365_v11  ;;  %v8375_v6 = vld [vmem:[#allocation66_spill] sm:$0xff]  ;;  %v8376_v11 = vld [vmem:[#allocation67_spill] sm:$0xff] }
 0x4d6   :  { %5146 = vmatpush1.bf16.msra.mxu0 %v8366_v2  ;;  %5178 = vmatpush1.bf16.msra.mxu1 %v8367_v42  ;;  %v8377_v2 = vld [vmem:[#allocation68_spill] sm:$0xff]  ;;  %v8378_v42 = vld [vmem:[#allocation69_spill] sm:$0xff] }
 0x4d7   :  { %5148 = vmatprep.subr.bf16.mxu0 %v8368_v18  ;;  %5180 = vmatprep.subr.bf16.mxu1 %v8369_v55  ;;  %v8379_v18 = vld [vmem:[#allocation70_spill] sm:$0xff]  ;;  %v8380_v55 = vld [vmem:[#allocation71_spill] sm:$0xff] }
 0x4da   :  { %5150 = vmatpush1.bf16.msra.mxu0 %v8370_v16  ;;  %5182 = vmatpush1.bf16.msra.mxu1 %v8371_v34  ;;  %v8381_v16 = vld [vmem:[#allocation72_spill] sm:$0xff]  ;;  %v8382_v34 = vld [vmem:[#allocation73_spill] sm:$0xff] }
 0x4db   :  { %5152 = vmatprep.subr.bf16.mxu0 %v8372_v19  ;;  %5184 = vmatprep.subr.bf16.mxu1 %v8373_v52  ;;  %v8383_v19 = vld [vmem:[#allocation74_spill] sm:$0xff]  ;;  %v8384_v52 = vld [vmem:[#allocation11_spill] sm:$0xff] }
 0x4de   :  { %5154 = vmatpush1.bf16.msra.mxu0 %v8374_v43  ;;  %5186 = vmatpush1.bf16.msra.mxu1 %v8375_v6  ;;  %v8385_v43 = vld [vmem:[#allocation12_spill] sm:$0xff] }
 0x4df   :  { %5156 = vmatprep.subr.bf16.mxu0 %v8376_v11  ;;  %5188 = vmatprep.subr.bf16.mxu1 %v8377_v2 }
 0x4e2   :  { %5158 = vmatpush1.bf16.msra.mxu0 %v8378_v42  ;;  %5190 = vmatpush1.bf16.msra.mxu1 %v8379_v18 }
 0x4e3   :  { %5160 = vmatprep.subr.bf16.mxu0 %v8380_v55  ;;  %5192 = vmatprep.subr.bf16.mxu1 %v8381_v16 }
 0x4e6   :  { %5162 = vmatpush1.bf16.msra.mxu0 %v8382_v34  ;;  %5194 = vmatpush1.bf16.msra.mxu1 %v8383_v19 }
 0x4e7   :  { %5196 = vmatprep.subr.bf16.mxu0 %v8384_v52  ;;  %5228 = vmatprep.subr.bf16.mxu1 %v8385_v43 }
 0x59c   :  { %v1807_v6 = vpop.f32.mrb[4].mxu0  ;;  %v1878_v11 = vpop.f32.mrb[4].mxu1 }
 0x59d   :  { %v6159_v2 = vadd.f32 %v1807_v6, %v8386_v56  ;;  %v1809_v15 = vpop.f32.mrb[5].mxu0  ;;  %v1880_v42 = vpop.f32.mrb[5].mxu1  ;;  %v6175_v19 = vadd.f32 %v1878_v11, %v7146_v31 }
 0x59e   :  { %v6160_v18 = vadd.f32 %v1809_v15, %v8326_v27  ;;  %v6176_v34 = vadd.f32 %v1880_v42, %v8327_v20 }
 0x59f   :  { %v4569_v1 = vmul.f32 -1.442695, %v6159_v2 }
 0x5a0   :  { %v4570_v55 = vmul.f32 -1.442695, %v6160_v18  ;;  %v4571_v16 = vmul.f32 -1.442695, %v6176_v34 }
 0x5a1   :  { %6354 = vpow2.f32 %v4569_v1 }
 0x5a2   :  { %6356 = vpow2.f32 %v4570_v55 }
 0x5a3   :  { %6358 = vpow2.f32 %v4571_v16 }
 0x5a4   :  { %6360 = vtanh.f32 %v6175_v19  ;;  %v8390_v19 = vld [vmem:[#allocation20_spill] sm:$0xff] }
 0x5ab   :  { %v6355_v52 = vpop.eup %6354 }
 0x5ac   :  { %v6357_v51 = vpop.eup %6356  ;;  %v1890_v43 = vadd.f32 1.0, %v6355_v52 }
 0x5ad   :  { %v1896_v9 = vadd.f32 1.0, %v6357_v51  ;;  %v6359_v6 = vpop.eup %6358  ;;  %v8389_v51 = vld [vmem:[#allocation19_spill] sm:$0xff] }
 0x5ae   :  { %6362 = vrcp.f32 %v1890_v43  ;;  %v6361_v56 = vpop.eup %6360  ;;  %v1903_v1 = vadd.f32 1.0, %v6359_v6  ;;  %v8392_v6 = vld [vmem:[#allocation78_spill] sm:$0xff] }
 0x5af   :  { %6364 = vrcp.f32 %v1896_v9  ;;  %v8388_v9 = vld [vmem:[#allocation18_spill] sm:$0xff] }
 0x5b0   :  { %6366 = vrcp.f32 %v1903_v1 }
 0x5b8   :  { %v6363_v15 = vpop.eup %6362 }
 0x5b9   :  { %v6365_v2 = vpop.eup %6364  ;;  %v1907_v18 = vmul.f32 %v6363_v15, %v6361_v56  ;;  %v8391_v56 = vld [vmem:[#allocation21_spill] sm:$0xff] }
 0x5ba   :  { %v1906_v55 = vmul.f32 %v6365_v2, %v7291_v5  ;;  %v6367_v34 = vpop.eup %6366  ;;  %v8387_v5 = vld [vmem:[#allocation17_spill] sm:$0xff] }
 0x5bc   :  { %v7415_v42 = vadd.f32 %v1907_v18, %v1906_v55 }
 0x5be   :  { %6368 = vtanh.f32 %v7415_v42 }
 0x5c8   :  { %v6369_v11 = vpop.eup %6368 }
 0x5c9   :  { %v7418_v16 = vmul.f32 %v6369_v11, %v6367_v34 }
 0x5cb   :  { %1976 = vmatmul.mubr.f32.vlgmr.msra.gmra.mrb[20].mxu0 %v7418_v16  ;;  %2047 = vmatmul.mubr.f32.vlgmr.msra.gmra.mrb[20].mxu1 %v7418_v16 }
 0x5cc   :  { %5198 = vmatpush1.bf16.msra.mxu0 %v6773_v24  ;;  %5230 = vmatpush1.bf16.msra.mxu1 %v6777_v28 }
 0x5cd   :  { %5200 = vmatprep.subr.bf16.mxu0 %v6780_v32  ;;  %5232 = vmatprep.subr.bf16.mxu1 %v6782_v33 }
 0x5ce   :  { %2145 = vmatprep.mubr.f32.mxu0 %v8231_v25  ;;  %2216 = vmatprep.mubr.f32.mxu1 %v8231_v25 }
 0x5d0   :  { %5202 = vmatpush1.bf16.msra.mxu0 %v6789_v37  ;;  %5234 = vmatpush1.bf16.msra.mxu1 %v6793_v41 }
 0x5d1   :  { %5204 = vmatprep.subr.bf16.mxu0 %v6797_v45  ;;  %5236 = vmatprep.subr.bf16.mxu1 %v6804_v49 }
 0x5d4   :  { %5206 = vmatpush1.bf16.msra.mxu0 %v6808_v53  ;;  %5238 = vmatpush1.bf16.msra.mxu1 %v6812_v57 }
 0x5d5   :  { %5208 = vmatprep.subr.bf16.mxu0 %v6816_v60  ;;  %5240 = vmatprep.subr.bf16.mxu1 %v6820_v63 }
 0x5d8   :  { %5210 = vmatpush1.bf16.msra.mxu0 %v6827_v4  ;;  %5242 = vmatpush1.bf16.msra.mxu1 %v6831_v7 }
 0x5d9   :  { %5212 = vmatprep.subr.bf16.mxu0 %v6835_v10  ;;  %5244 = vmatprep.subr.bf16.mxu1 %v6839_v13 }
 0x5dc   :  { %5214 = vmatpush1.bf16.msra.mxu0 %v6846_v17  ;;  %5246 = vmatpush1.bf16.msra.mxu1 %v6850_v22 }
 0x5dd   :  { %5216 = vmatprep.subr.bf16.mxu0 %v6854_v26  ;;  %5248 = vmatprep.subr.bf16.mxu1 %v6858_v30 }
 0x5e0   :  { %5218 = vmatpush1.bf16.msra.mxu0 %v6865_v36  ;;  %5250 = vmatpush1.bf16.msra.mxu1 %v6869_v40 }
 0x5e1   :  { %5220 = vmatprep.subr.bf16.mxu0 %v6873_v44  ;;  %5252 = vmatprep.subr.bf16.mxu1 %v6877_v48 }
 0x5e4   :  { %5222 = vmatpush1.bf16.msra.mxu0 %v6884_v54  ;;  %5254 = vmatpush1.bf16.msra.mxu1 %v6888_v58 }
 0x5e5   :  { %5224 = vmatprep.subr.bf16.mxu0 %v6892_v62  ;;  %5256 = vmatprep.subr.bf16.mxu1 %v8387_v5 }
 0x5e8   :  { %5226 = vmatpush1.bf16.msra.mxu0 %v8388_v9  ;;  %5258 = vmatpush1.bf16.msra.mxu1 %v8389_v51 }
 0x5e9   :  { %5260 = vmatprep.subr.bf16.mxu0 %v8390_v19  ;;  %5292 = vmatprep.subr.bf16.mxu1 %v8391_v56 }
 0x69e   :  { %v1977_v43 = vpop.f32.mrb[20].mxu0  ;;  %v2048_v52 = vpop.f32.mrb[20].mxu1 }
 0x69f   :  { %v6195_v15 = vadd.f32 %v1977_v43, %v8392_v6  ;;  %v1979_v2 = vpop.f32.mrb[21].mxu0  ;;  %v2050_v18 = vpop.f32.mrb[21].mxu1  ;;  %v6197_v51 = vadd.f32 %v2048_v52, %v7210_v29 }
 0x6a0   :  { %v6196_v1 = vadd.f32 %v1979_v2, %v7199_v12  ;;  %v6198_v11 = vadd.f32 %v2050_v18, %v8332_v46 }
 0x6a1   :  { %v4572_v55 = vmul.f32 -1.442695, %v6195_v15 }
 0x6a2   :  { %v4573_v34 = vmul.f32 -1.442695, %v6196_v1  ;;  %v4574_v9 = vmul.f32 -1.442695, %v6198_v11  ;;  %v8399_v11 = vld [vmem:[#allocation31_spill] sm:$0xff] }
 0x6a3   :  { %6370 = vpow2.f32 %v4572_v55 }
 0x6a4   :  { %6372 = vpow2.f32 %v4573_v34 }
 0x6a5   :  { %6374 = vpow2.f32 %v4574_v9 }
 0x6a6   :  { %6376 = vtanh.f32 %v6197_v51  ;;  %v8396_v51 = vld [vmem:[#allocation28_spill] sm:$0xff] }
 0x6ad   :  { %v6371_v19 = vpop.eup %6370 }
 0x6ae   :  { %v6373_v5 = vpop.eup %6372  ;;  %v2060_v56 = vadd.f32 1.0, %v6371_v19 }
 0x6af   :  { %v2066_v62 = vadd.f32 1.0, %v6373_v5  ;;  %v6375_v43 = vpop.eup %6374  ;;  %v8395_v5 = vld [vmem:[#allocation27_spill] sm:$0xff] }
 0x6b0   :  { %6378 = vrcp.f32 %v2060_v56  ;;  %v6377_v6 = vpop.eup %6376  ;;  %v2073_v55 = vadd.f32 1.0, %v6375_v43  ;;  %v8397_v56 = vld [vmem:[#allocation29_spill] sm:$0xff]  ;;  %v8400_v43 = vld [vmem:[#allocation32_spill] sm:$0xff] }
 0x6b1   :  { %6380 = vrcp.f32 %v2066_v62  ;;  %v8393_v62 = vld [vmem:[#allocation25_spill] sm:$0xff] }
 0x6b2   :  { %6382 = vrcp.f32 %v2073_v55  ;;  %v8404_v55 = vld [vmem:[#allocation36_spill] sm:$0xff] }
 0x6ba   :  { %v6379_v2 = vpop.eup %6378 }
 0x6bb   :  { %v6381_v15 = vpop.eup %6380  ;;  %v2077_v1 = vmul.f32 %v6379_v2, %v6377_v6  ;;  %v8398_v6 = vld [vmem:[#allocation30_spill] sm:$0xff]  ;;  %v8401_v2 = vld [vmem:[#allocation33_spill] sm:$0xff] }
 0x6bc   :  { %v2076_v34 = vmul.f32 %v6381_v15, %v7337_v50  ;;  %v6383_v52 = vpop.eup %6382  ;;  %v8394_v50 = vld [vmem:[#allocation26_spill] sm:$0xff] }
 0x6bd   :  { %v8402_v15 = vld [vmem:[#allocation34_spill] sm:$0xff] }
 0x6be   :  { %v7461_v18 = vadd.f32 %v2077_v1, %v2076_v34  ;;  %v8403_v1 = vld [vmem:[#allocation35_spill] sm:$0xff]  ;;  %v8405_v34 = vld [vmem:[#allocation37_spill] sm:$0xff] }
 0x6c0   :  { %6384 = vtanh.f32 %v7461_v18 }
 0x6ca   :  { %v6385_v19 = vpop.eup %6384 }
 0x6cb   :  { %v2080_v9 = vmul.f32 %v6385_v19, %v6383_v52  ;;  %v8406_v52 = vld [vmem:[#allocation38_spill] sm:$0xff]  ;;  %v8407_v19 = vld [vmem:[#allocation39_spill] sm:$0xff] }
 0x6cd   :  { %2146 = vmatmul.mubr.f32.vlgmr.msra.gmra.mrb[22].mxu0 %v2080_v9  ;;  %2217 = vmatmul.mubr.f32.vlgmr.msra.gmra.mrb[22].mxu1 %v2080_v9  ;;  %v8408_v9 = vld [vmem:[#allocation40_spill] sm:$0xff] }
 0x6ce   :  { %5262 = vmatpush1.bf16.msra.mxu0 %v6919_v35  ;;  %5294 = vmatpush1.bf16.msra.mxu1 %v6923_v38 }
 0x6cf   :  { %5264 = vmatprep.subr.bf16.mxu0 %v6925_v39  ;;  %5296 = vmatprep.subr.bf16.mxu1 %v6929_v47 }
 0x6d0   :  { %2291 = vmatprep.mubr.f32.mxu0 %v8231_v25  ;;  %2362 = vmatprep.mubr.f32.mxu1 %v8231_v25 }
 0x6d2   :  { %5266 = vmatpush1.bf16.msra.mxu0 %v6935_v59  ;;  %5298 = vmatpush1.bf16.msra.mxu1 %v6939_v61 }
 0x6d3   :  { %5268 = vmatprep.subr.bf16.mxu0 %v6941_v0  ;;  %5300 = vmatprep.subr.bf16.mxu1 %v6944_v8 }
 0x6d6   :  { %5270 = vmatpush1.bf16.msra.mxu0 %v6949_v23  ;;  %5302 = vmatpush1.bf16.msra.mxu1 %v8273_v14 }
 0x6d7   :  { %5272 = vmatprep.subr.bf16.mxu0 %v8274_v21  ;;  %5304 = vmatprep.subr.bf16.mxu1 %v8333_v3 }
 0x6da   :  { %5274 = vmatpush1.bf16.msra.mxu0 %v8393_v62  ;;  %5306 = vmatpush1.bf16.msra.mxu1 %v8394_v50 }
 0x6db   :  { %5276 = vmatprep.subr.bf16.mxu0 %v8395_v5  ;;  %5308 = vmatprep.subr.bf16.mxu1 %v8396_v51 }
 0x6de   :  { %5278 = vmatpush1.bf16.msra.mxu0 %v8397_v56  ;;  %5310 = vmatpush1.bf16.msra.mxu1 %v8398_v6  ;;  %v8409_v6 = vld [vmem:[#allocation41_spill] sm:$0xff] }
 0x6df   :  { %5280 = vmatprep.subr.bf16.mxu0 %v8399_v11  ;;  %5312 = vmatprep.subr.bf16.mxu1 %v8400_v43  ;;  %v8410_v11 = vld [vmem:[#allocation42_spill] sm:$0xff]  ;;  %v8411_v43 = vld [vmem:[#allocation43_spill] sm:$0xff] }
 0x6e2   :  { %5282 = vmatpush1.bf16.msra.mxu0 %v8401_v2  ;;  %5314 = vmatpush1.bf16.msra.mxu1 %v8402_v15  ;;  %v8412_v2 = vld [vmem:[#allocation44_spill] sm:$0xff]  ;;  %v8445_v15 = vld [vmem:[#allocation75_spill] sm:$0xff] }
 0x6e3   :  { %5284 = vmatprep.subr.bf16.mxu0 %v8403_v1  ;;  %5316 = vmatprep.subr.bf16.mxu1 %v8404_v55  ;;  %v8413_v55 = vld [vmem:[#allocation45_spill] sm:$0xff]  ;;  %v8427_v1 = vld [vmem:[#allocation59_spill] sm:$0xff] }
 0x6e6   :  { %5286 = vmatpush1.bf16.msra.mxu0 %v8405_v34  ;;  %5318 = vmatpush1.bf16.msra.mxu1 %v8406_v52  ;;  %v8414_v34 = vld [vmem:[#allocation46_spill] sm:$0xff]  ;;  %v8415_v52 = vld [vmem:[#allocation47_spill] sm:$0xff] }
 0x6e7   :  { %5288 = vmatprep.subr.bf16.mxu0 %v8407_v19  ;;  %5320 = vmatprep.subr.bf16.mxu1 %v8408_v9  ;;  %v8416_v19 = vld [vmem:[#allocation48_spill] sm:$0xff]  ;;  %v8426_v9 = vld [vmem:[#allocation58_spill] sm:$0xff] }
 0x6ea   :  { %5290 = vmatpush1.bf16.msra.mxu0 %v8409_v6  ;;  %5322 = vmatpush1.bf16.msra.mxu1 %v8410_v11  ;;  %v8417_v11 = vld [vmem:[#allocation49_spill] sm:$0xff]  ;;  %v8420_v6 = vld [vmem:[#allocation52_spill] sm:$0xff] }
 0x6eb   :  { %5324 = vmatprep.subr.bf16.mxu0 %v8411_v43  ;;  %5356 = vmatprep.subr.bf16.mxu1 %v8412_v2  ;;  %v8418_v43 = vld [vmem:[#allocation50_spill] sm:$0xff]  ;;  %v8419_v2 = vld [vmem:[#allocation51_spill] sm:$0xff] }
 0x6ed   :  { %2292 = vmatmul.mubr.f32.vlgmr.msra.gmra.mrb[6].mxu0 %v7418_v16  ;;  %2363 = vmatmul.mubr.f32.vlgmr.msra.gmra.mrb[6].mxu1 %v7418_v16  ;;  %v8421_v16 = vld [vmem:[#allocation53_spill] sm:$0xff] }
 0x6ee   :  { %5326 = vmatpush1.bf16.msra.mxu0 %v8413_v55  ;;  %5358 = vmatpush1.bf16.msra.mxu1 %v8414_v34  ;;  %v8422_v55 = vld [vmem:[#allocation54_spill] sm:$0xff]  ;;  %v8423_v34 = vld [vmem:[#allocation55_spill] sm:$0xff] }
 0x6ef   :  { %5328 = vmatprep.subr.bf16.mxu0 %v8415_v52  ;;  %5360 = vmatprep.subr.bf16.mxu1 %v8416_v19  ;;  %v8424_v52 = vld [vmem:[#allocation56_spill] sm:$0xff]  ;;  %v8425_v19 = vld [vmem:[#allocation57_spill] sm:$0xff] }
 0x6f0   :  { %2461 = vmatprep.mubr.f32.mxu0 %v8231_v25  ;;  %2532 = vmatprep.mubr.f32.mxu1 %v8231_v25 }
 0x6f2   :  { %5330 = vmatpush1.bf16.msra.mxu0 %v8417_v11  ;;  %5362 = vmatpush1.bf16.msra.mxu1 %v8418_v43  ;;  %v8428_v11 = vld [vmem:[#allocation60_spill] sm:$0xff]  ;;  %v8429_v43 = vld [vmem:[#allocation61_spill] sm:$0xff] }
 0x6f3   :  { %5332 = vmatprep.subr.bf16.mxu0 %v8419_v2  ;;  %5364 = vmatprep.subr.bf16.mxu1 %v8420_v6  ;;  %v8430_v2 = vld [vmem:[#allocation62_spill] sm:$0xff]  ;;  %v8431_v6 = vld [vmem:[#allocation63_spill] sm:$0xff] }
 0x6f6   :  { %5334 = vmatpush1.bf16.msra.mxu0 %v8421_v16  ;;  %5366 = vmatpush1.bf16.msra.mxu1 %v8422_v55  ;;  %v8432_v16 = vld [vmem:[#allocation64_spill] sm:$0xff]  ;;  %v8433_v55 = vld [vmem:[#allocation65_spill] sm:$0xff] }
 0x6f7   :  { %5336 = vmatprep.subr.bf16.mxu0 %v8423_v34  ;;  %5368 = vmatprep.subr.bf16.mxu1 %v8424_v52  ;;  %v8434_v34 = vld [vmem:[#allocation66_spill] sm:$0xff]  ;;  %v8435_v52 = vld [vmem:[#allocation67_spill] sm:$0xff] }
 0x6fa   :  { %5338 = vmatpush1.bf16.msra.mxu0 %v8425_v19  ;;  %5370 = vmatpush1.bf16.msra.mxu1 %v8426_v9  ;;  %v8436_v19 = vld [vmem:[#allocation68_spill] sm:$0xff]  ;;  %v8437_v9 = vld [vmem:[#allocation69_spill] sm:$0xff] }
 0x6fb   :  { %5340 = vmatprep.subr.bf16.mxu0 %v8427_v1  ;;  %5372 = vmatprep.subr.bf16.mxu1 %v8428_v11  ;;  %v8438_v1 = vld [vmem:[#allocation70_spill] sm:$0xff]  ;;  %v8439_v11 = vld [vmem:[#allocation71_spill] sm:$0xff] }
 0x6fe   :  { %5342 = vmatpush1.bf16.msra.mxu0 %v8429_v43  ;;  %5374 = vmatpush1.bf16.msra.mxu1 %v8430_v2  ;;  %v8440_v43 = vld [vmem:[#allocation72_spill] sm:$0xff]  ;;  %v8441_v2 = vld [vmem:[#allocation73_spill] sm:$0xff] }
 0x6ff   :  { %5344 = vmatprep.subr.bf16.mxu0 %v8431_v6  ;;  %5376 = vmatprep.subr.bf16.mxu1 %v8432_v16  ;;  %v8442_v6 = vld [vmem:[#allocation74_spill] sm:$0xff]  ;;  %v8443_v16 = vld [vmem:[#allocation11_spill] sm:$0xff] }
 0x702   :  { %5346 = vmatpush1.bf16.msra.mxu0 %v8433_v55  ;;  %5378 = vmatpush1.bf16.msra.mxu1 %v8434_v34  ;;  %v8444_v55 = vld [vmem:[#allocation12_spill] sm:$0xff] }
 0x703   :  { %5348 = vmatprep.subr.bf16.mxu0 %v8435_v52  ;;  %5380 = vmatprep.subr.bf16.mxu1 %v8436_v19 }
 0x706   :  { %5350 = vmatpush1.bf16.msra.mxu0 %v8437_v9  ;;  %5382 = vmatpush1.bf16.msra.mxu1 %v8438_v1 }
 0x707   :  { %5352 = vmatprep.subr.bf16.mxu0 %v8439_v11  ;;  %5384 = vmatprep.subr.bf16.mxu1 %v8440_v43 }
 0x70a   :  { %5354 = vmatpush1.bf16.msra.mxu0 %v8441_v2  ;;  %5386 = vmatpush1.bf16.msra.mxu1 %v8442_v6 }
 0x70b   :  { %5388 = vmatprep.subr.bf16.mxu0 %v8443_v16  ;;  %5420 = vmatprep.subr.bf16.mxu1 %v8444_v55 }
 0x7c0   :  { %v2293_v34 = vpop.f32.mrb[6].mxu0  ;;  %v2364_v52 = vpop.f32.mrb[6].mxu1 }
 0x7c1   :  { %v6161_v19 = vadd.f32 %v2293_v34, %v8445_v15  ;;  %v2295_v56 = vpop.f32.mrb[7].mxu0  ;;  %v2366_v9 = vpop.f32.mrb[7].mxu1  ;;  %v6177_v6 = vadd.f32 %v2364_v52, %v7146_v31 }
 0x7c2   :  { %v6162_v1 = vadd.f32 %v2295_v56, %v8326_v27  ;;  %v6178_v2 = vadd.f32 %v2366_v9, %v8327_v20 }
 0x7c3   :  { %v4575_v51 = vmul.f32 -1.442695, %v6161_v19 }
 0x7c4   :  { %v4576_v11 = vmul.f32 -1.442695, %v6162_v1  ;;  %v4577_v43 = vmul.f32 -1.442695, %v6178_v2 }
 0x7c5   :  { %6386 = vpow2.f32 %v4575_v51 }
 0x7c6   :  { %6388 = vpow2.f32 %v4576_v11 }
 0x7c7   :  { %6390 = vpow2.f32 %v4577_v43 }
 0x7c8   :  { %6392 = vtanh.f32 %v6177_v6  ;;  %v8449_v6 = vld [vmem:[#allocation19_spill] sm:$0xff] }
 0x7cf   :  { %v6387_v16 = vpop.eup %6386 }
 0x7d0   :  { %v6389_v5 = vpop.eup %6388  ;;  %v2376_v55 = vadd.f32 1.0, %v6387_v16 }
 0x7d1   :  { %v2382_v50 = vadd.f32 1.0, %v6389_v5  ;;  %v6391_v34 = vpop.eup %6390  ;;  %v8448_v5 = vld [vmem:[#allocation18_spill] sm:$0xff] }
 0x7d2   :  { %6394 = vrcp.f32 %v2376_v55  ;;  %v6393_v15 = vpop.eup %6392  ;;  %v2389_v51 = vadd.f32 1.0, %v6391_v34  ;;  %v8451_v55 = vld [vmem:[#allocation21_spill] sm:$0xff] }
 0x7d3   :  { %6396 = vrcp.f32 %v2382_v50  ;;  %v8447_v50 = vld [vmem:[#allocation17_spill] sm:$0xff] }
 0x7d4   :  { %6398 = vrcp.f32 %v2389_v51 }
 0x7dc   :  { %v6395_v56 = vpop.eup %6394 }
 0x7dd   :  { %v6397_v19 = vpop.eup %6396  ;;  %v2393_v1 = vmul.f32 %v6395_v56, %v6393_v15  ;;  %v8450_v15 = vld [vmem:[#allocation20_spill] sm:$0xff]  ;;  %v8452_v56 = vld [vmem:[#allocation78_spill] sm:$0xff] }
 0x7de   :  { %v2392_v11 = vmul.f32 %v6397_v19, %v7415_v42  ;;  %v6399_v2 = vpop.eup %6398  ;;  %v8446_v42 = vld [vmem:[#allocation16_spill] sm:$0xff] }
 0x7e0   :  { %v7539_v9 = vadd.f32 %v2393_v1, %v2392_v11 }
 0x7e2   :  { %6400 = vtanh.f32 %v7539_v9 }
 0x7ec   :  { %v6401_v52 = vpop.eup %6400 }
 0x7ed   :  { %v7542_v43 = vmul.f32 %v6401_v52, %v6399_v2 }
 0x7ef   :  { %2462 = vmatmul.mubr.f32.vlgmr.msra.gmra.mrb[22].mxu0 %v7542_v43  ;;  %2533 = vmatmul.mubr.f32.vlgmr.msra.gmra.mrb[22].mxu1 %v7542_v43 }
 0x7f0   :  { %5390 = vmatpush1.bf16.msra.mxu0 %v6773_v24  ;;  %5422 = vmatpush1.bf16.msra.mxu1 %v6777_v28 }
 0x7f1   :  { %5392 = vmatprep.subr.bf16.mxu0 %v6780_v32  ;;  %5424 = vmatprep.subr.bf16.mxu1 %v6782_v33 }
 0x7f2   :  { %2631 = vmatprep.mubr.f32.mxu0 %v8231_v25  ;;  %2702 = vmatprep.mubr.f32.mxu1 %v8231_v25 }
 0x7f4   :  { %5394 = vmatpush1.bf16.msra.mxu0 %v6789_v37  ;;  %5426 = vmatpush1.bf16.msra.mxu1 %v6793_v41 }
 0x7f5   :  { %5396 = vmatprep.subr.bf16.mxu0 %v6797_v45  ;;  %5428 = vmatprep.subr.bf16.mxu1 %v6804_v49 }
 0x7f8   :  { %5398 = vmatpush1.bf16.msra.mxu0 %v6808_v53  ;;  %5430 = vmatpush1.bf16.msra.mxu1 %v6812_v57 }
 0x7f9   :  { %5400 = vmatprep.subr.bf16.mxu0 %v6816_v60  ;;  %5432 = vmatprep.subr.bf16.mxu1 %v6820_v63 }
 0x7fc   :  { %5402 = vmatpush1.bf16.msra.mxu0 %v6827_v4  ;;  %5434 = vmatpush1.bf16.msra.mxu1 %v6831_v7 }
 0x7fd   :  { %5404 = vmatprep.subr.bf16.mxu0 %v6835_v10  ;;  %5436 = vmatprep.subr.bf16.mxu1 %v6839_v13 }
 0x800   :  { %5406 = vmatpush1.bf16.msra.mxu0 %v6846_v17  ;;  %5438 = vmatpush1.bf16.msra.mxu1 %v6850_v22 }
 0x801   :  { %5408 = vmatprep.subr.bf16.mxu0 %v6854_v26  ;;  %5440 = vmatprep.subr.bf16.mxu1 %v6858_v30 }
 0x804   :  { %5410 = vmatpush1.bf16.msra.mxu0 %v6865_v36  ;;  %5442 = vmatpush1.bf16.msra.mxu1 %v6869_v40 }
 0x805   :  { %5412 = vmatprep.subr.bf16.mxu0 %v6873_v44  ;;  %5444 = vmatprep.subr.bf16.mxu1 %v6877_v48 }
 0x808   :  { %5414 = vmatpush1.bf16.msra.mxu0 %v6884_v54  ;;  %5446 = vmatpush1.bf16.msra.mxu1 %v6888_v58 }
 0x809   :  { %5416 = vmatprep.subr.bf16.mxu0 %v8446_v42  ;;  %5448 = vmatprep.subr.bf16.mxu1 %v8447_v50 }
 0x80c   :  { %5418 = vmatpush1.bf16.msra.mxu0 %v8448_v5  ;;  %5450 = vmatpush1.bf16.msra.mxu1 %v8449_v6 }
 0x80d   :  { %5452 = vmatprep.subr.bf16.mxu0 %v8450_v15  ;;  %5484 = vmatprep.subr.bf16.mxu1 %v8451_v55 }
 0x8c2   :  { %v2463_v16 = vpop.f32.mrb[22].mxu0  ;;  %v2534_v34 = vpop.f32.mrb[22].mxu1 }
 0x8c3   :  { %v6199_v19 = vadd.f32 %v2463_v16, %v8452_v56  ;;  %v2465_v1 = vpop.f32.mrb[23].mxu0  ;;  %v2536_v51 = vpop.f32.mrb[23].mxu1  ;;  %v6201_v6 = vadd.f32 %v2534_v34, %v7210_v29  ;;  %v8458_v34 = vld [vmem:[#allocation31_spill] sm:$0xff] }
 0x8c4   :  { %v6200_v11 = vadd.f32 %v2465_v1, %v7199_v12  ;;  %v6202_v5 = vadd.f32 %v2536_v51, %v8332_v46 }
 0x8c5   :  { %v4578_v2 = vmul.f32 -1.442695, %v6199_v19 }
 0x8c6   :  { %v4579_v52 = vmul.f32 -1.442695, %v6200_v11  ;;  %v4580_v50 = vmul.f32 -1.442695, %v6202_v5 }
 0x8c7   :  { %6402 = vpow2.f32 %v4578_v2 }
 0x8c8   :  { %6404 = vpow2.f32 %v4579_v52 }
 0x8c9   :  { %6406 = vpow2.f32 %v4580_v50 }
 0x8ca   :  { %6408 = vtanh.f32 %v6201_v6  ;;  %v8456_v6 = vld [vmem:[#allocation29_spill] sm:$0xff] }
 0x8d1   :  { %v6403_v15 = vpop.eup %6402 }
 0x8d2   :  { %v6405_v42 = vpop.eup %6404  ;;  %v2546_v55 = vadd.f32 1.0, %v6403_v15 }
 0x8d3   :  { %v2552_v58 = vadd.f32 1.0, %v6405_v42  ;;  %v6407_v16 = vpop.eup %6406  ;;  %v8455_v42 = vld [vmem:[#allocation28_spill] sm:$0xff] }
 0x8d4   :  { %6410 = vrcp.f32 %v2546_v55  ;;  %v6409_v56 = vpop.eup %6408  ;;  %v2559_v2 = vadd.f32 1.0, %v6407_v16  ;;  %v8457_v55 = vld [vmem:[#allocation30_spill] sm:$0xff]  ;;  %v8460_v16 = vld [vmem:[#allocation33_spill] sm:$0xff] }
 0x8d5   :  { %6412 = vrcp.f32 %v2552_v58  ;;  %v8453_v58 = vld [vmem:[#allocation26_spill] sm:$0xff] }
 0x8d6   :  { %6414 = vrcp.f32 %v2559_v2  ;;  %v8464_v2 = vld [vmem:[#allocation37_spill] sm:$0xff] }
 0x8de   :  { %v6411_v1 = vpop.eup %6410 }
 0x8df   :  { %v6413_v19 = vpop.eup %6412  ;;  %v2563_v11 = vmul.f32 %v6411_v1, %v6409_v56  ;;  %v8459_v56 = vld [vmem:[#allocation32_spill] sm:$0xff]  ;;  %v8461_v1 = vld [vmem:[#allocation34_spill] sm:$0xff] }
 0x8e0   :  { %v2562_v52 = vmul.f32 %v6413_v19, %v7461_v18  ;;  %v6415_v5 = vpop.eup %6414  ;;  %v8454_v18 = vld [vmem:[#allocation27_spill] sm:$0xff] }
 0x8e1   :  { %v8462_v19 = vld [vmem:[#allocation35_spill] sm:$0xff] }
 0x8e2   :  { %v7585_v51 = vadd.f32 %v2563_v11, %v2562_v52  ;;  %v8463_v11 = vld [vmem:[#allocation36_spill] sm:$0xff]  ;;  %v8465_v52 = vld [vmem:[#allocation38_spill] sm:$0xff] }
 0x8e4   :  { %6416 = vtanh.f32 %v7585_v51 }
 0x8ee   :  { %v6417_v15 = vpop.eup %6416 }
 0x8ef   :  { %v2566_v50 = vmul.f32 %v6417_v15, %v6415_v5  ;;  %v8466_v5 = vld [vmem:[#allocation39_spill] sm:$0xff]  ;;  %v8467_v15 = vld [vmem:[#allocation40_spill] sm:$0xff] }
 0x8f1   :  { %2632 = vmatmul.mubr.f32.vlgmr.msra.gmra.mrb[24].mxu0 %v2566_v50  ;;  %2703 = vmatmul.mubr.f32.vlgmr.msra.gmra.mrb[24].mxu1 %v2566_v50  ;;  %v8468_v50 = vld [vmem:[#allocation41_spill] sm:$0xff] }
 0x8f2   :  { %5454 = vmatpush1.bf16.msra.mxu0 %v6919_v35  ;;  %5486 = vmatpush1.bf16.msra.mxu1 %v6923_v38 }
 0x8f3   :  { %5456 = vmatprep.subr.bf16.mxu0 %v6925_v39  ;;  %5488 = vmatprep.subr.bf16.mxu1 %v6929_v47 }
 0x8f4   :  { %2777 = vmatprep.mubr.f32.mxu0 %v8231_v25  ;;  %2848 = vmatprep.mubr.f32.mxu1 %v8231_v25 }
 0x8f6   :  { %5458 = vmatpush1.bf16.msra.mxu0 %v6935_v59  ;;  %5490 = vmatpush1.bf16.msra.mxu1 %v6939_v61 }
 0x8f7   :  { %5460 = vmatprep.subr.bf16.mxu0 %v6941_v0  ;;  %5492 = vmatprep.subr.bf16.mxu1 %v6944_v8 }
 0x8fa   :  { %5462 = vmatpush1.bf16.msra.mxu0 %v6949_v23  ;;  %5494 = vmatpush1.bf16.msra.mxu1 %v8273_v14 }
 0x8fb   :  { %5464 = vmatprep.subr.bf16.mxu0 %v8274_v21  ;;  %5496 = vmatprep.subr.bf16.mxu1 %v8333_v3 }
 0x8fe   :  { %5466 = vmatpush1.bf16.msra.mxu0 %v8393_v62  ;;  %5498 = vmatpush1.bf16.msra.mxu1 %v8453_v58 }
 0x8ff   :  { %5468 = vmatprep.subr.bf16.mxu0 %v8454_v18  ;;  %5500 = vmatprep.subr.bf16.mxu1 %v8455_v42 }
 0x902   :  { %5470 = vmatpush1.bf16.msra.mxu0 %v8456_v6  ;;  %5502 = vmatpush1.bf16.msra.mxu1 %v8457_v55 }
 0x903   :  { %5472 = vmatprep.subr.bf16.mxu0 %v8458_v34  ;;  %5504 = vmatprep.subr.bf16.mxu1 %v8459_v56  ;;  %v8469_v34 = vld [vmem:[#allocation42_spill] sm:$0xff]  ;;  %v8470_v56 = vld [vmem:[#allocation43_spill] sm:$0xff] }
 0x906   :  { %5474 = vmatpush1.bf16.msra.mxu0 %v8460_v16  ;;  %5506 = vmatpush1.bf16.msra.mxu1 %v8461_v1  ;;  %v8471_v16 = vld [vmem:[#allocation44_spill] sm:$0xff]  ;;  %v8504_v1 = vld [vmem:[#allocation75_spill] sm:$0xff] }
 0x907   :  { %5476 = vmatprep.subr.bf16.mxu0 %v8462_v19  ;;  %5508 = vmatprep.subr.bf16.mxu1 %v8463_v11  ;;  %v8472_v11 = vld [vmem:[#allocation45_spill] sm:$0xff]  ;;  %v8486_v19 = vld [vmem:[#allocation59_spill] sm:$0xff] }
 0x90a   :  { %5478 = vmatpush1.bf16.msra.mxu0 %v8464_v2  ;;  %5510 = vmatpush1.bf16.msra.mxu1 %v8465_v52  ;;  %v8473_v2 = vld [vmem:[#allocation46_spill] sm:$0xff]  ;;  %v8474_v52 = vld [vmem:[#allocation47_spill] sm:$0xff] }
 0x90b   :  { %5480 = vmatprep.subr.bf16.mxu0 %v8466_v5  ;;  %5512 = vmatprep.subr.bf16.mxu1 %v8467_v15  ;;  %v8475_v5 = vld [vmem:[#allocation48_spill] sm:$0xff]  ;;  %v8485_v15 = vld [vmem:[#allocation58_spill] sm:$0xff] }
 0x90e   :  { %5482 = vmatpush1.bf16.msra.mxu0 %v8468_v50  ;;  %5514 = vmatpush1.bf16.msra.mxu1 %v8469_v34  ;;  %v8476_v34 = vld [vmem:[#allocation49_spill] sm:$0xff]  ;;  %v8479_v50 = vld [vmem:[#allocation52_spill] sm:$0xff] }
 0x90f   :  { %5516 = vmatprep.subr.bf16.mxu0 %v8470_v56  ;;  %5548 = vmatprep.subr.bf16.mxu1 %v8471_v16  ;;  %v8477_v56 = vld [vmem:[#allocation50_spill] sm:$0xff]  ;;  %v8478_v16 = vld [vmem:[#allocation51_spill] sm:$0xff] }
 0x911   :  { %2778 = vmatmul.mubr.f32.vlgmr.msra.gmra.mrb[8].mxu0 %v7542_v43  ;;  %2849 = vmatmul.mubr.f32.vlgmr.msra.gmra.mrb[8].mxu1 %v7542_v43  ;;  %v8480_v43 = vld [vmem:[#allocation53_spill] sm:$0xff] }
 0x912   :  { %5518 = vmatpush1.bf16.msra.mxu0 %v8472_v11  ;;  %5550 = vmatpush1.bf16.msra.mxu1 %v8473_v2  ;;  %v8481_v11 = vld [vmem:[#allocation54_spill] sm:$0xff]  ;;  %v8482_v2 = vld [vmem:[#allocation55_spill] sm:$0xff] }
 0x913   :  { %5520 = vmatprep.subr.bf16.mxu0 %v8474_v52  ;;  %5552 = vmatprep.subr.bf16.mxu1 %v8475_v5  ;;  %v8483_v52 = vld [vmem:[#allocation56_spill] sm:$0xff]  ;;  %v8484_v5 = vld [vmem:[#allocation57_spill] sm:$0xff] }
 0x914   :  { %2947 = vmatprep.mubr.f32.mxu0 %v8231_v25  ;;  %3018 = vmatprep.mubr.f32.mxu1 %v8231_v25 }
 0x916   :  { %5522 = vmatpush1.bf16.msra.mxu0 %v8476_v34  ;;  %5554 = vmatpush1.bf16.msra.mxu1 %v8477_v56  ;;  %v8487_v34 = vld [vmem:[#allocation60_spill] sm:$0xff]  ;;  %v8488_v56 = vld [vmem:[#allocation61_spill] sm:$0xff] }
 0x917   :  { %5524 = vmatprep.subr.bf16.mxu0 %v8478_v16  ;;  %5556 = vmatprep.subr.bf16.mxu1 %v8479_v50  ;;  %v8489_v16 = vld [vmem:[#allocation62_spill] sm:$0xff]  ;;  %v8490_v50 = vld [vmem:[#allocation63_spill] sm:$0xff] }
 0x91a   :  { %5526 = vmatpush1.bf16.msra.mxu0 %v8480_v43  ;;  %5558 = vmatpush1.bf16.msra.mxu1 %v8481_v11  ;;  %v8491_v43 = vld [vmem:[#allocation64_spill] sm:$0xff]  ;;  %v8492_v11 = vld [vmem:[#allocation65_spill] sm:$0xff] }
 0x91b   :  { %5528 = vmatprep.subr.bf16.mxu0 %v8482_v2  ;;  %5560 = vmatprep.subr.bf16.mxu1 %v8483_v52  ;;  %v8493_v2 = vld [vmem:[#allocation66_spill] sm:$0xff]  ;;  %v8494_v52 = vld [vmem:[#allocation67_spill] sm:$0xff] }
 0x91e   :  { %5530 = vmatpush1.bf16.msra.mxu0 %v8484_v5  ;;  %5562 = vmatpush1.bf16.msra.mxu1 %v8485_v15  ;;  %v8495_v5 = vld [vmem:[#allocation68_spill] sm:$0xff]  ;;  %v8496_v15 = vld [vmem:[#allocation69_spill] sm:$0xff] }
 0x91f   :  { %5532 = vmatprep.subr.bf16.mxu0 %v8486_v19  ;;  %5564 = vmatprep.subr.bf16.mxu1 %v8487_v34  ;;  %v8497_v19 = vld [vmem:[#allocation70_spill] sm:$0xff]  ;;  %v8498_v34 = vld [vmem:[#allocation71_spill] sm:$0xff] }
 0x922   :  { %5534 = vmatpush1.bf16.msra.mxu0 %v8488_v56  ;;  %5566 = vmatpush1.bf16.msra.mxu1 %v8489_v16  ;;  %v8499_v56 = vld [vmem:[#allocation72_spill] sm:$0xff]  ;;  %v8500_v16 = vld [vmem:[#allocation73_spill] sm:$0xff] }
 0x923   :  { %5536 = vmatprep.subr.bf16.mxu0 %v8490_v50  ;;  %5568 = vmatprep.subr.bf16.mxu1 %v8491_v43  ;;  %v8501_v50 = vld [vmem:[#allocation74_spill] sm:$0xff]  ;;  %v8502_v43 = vld [vmem:[#allocation11_spill] sm:$0xff] }
 0x926   :  { %5538 = vmatpush1.bf16.msra.mxu0 %v8492_v11  ;;  %5570 = vmatpush1.bf16.msra.mxu1 %v8493_v2  ;;  %v8503_v11 = vld [vmem:[#allocation12_spill] sm:$0xff] }
 0x927   :  { %5540 = vmatprep.subr.bf16.mxu0 %v8494_v52  ;;  %5572 = vmatprep.subr.bf16.mxu1 %v8495_v5 }
 0x92a   :  { %5542 = vmatpush1.bf16.msra.mxu0 %v8496_v15  ;;  %5574 = vmatpush1.bf16.msra.mxu1 %v8497_v19 }
 0x92b   :  { %5544 = vmatprep.subr.bf16.mxu0 %v8498_v34  ;;  %5576 = vmatprep.subr.bf16.mxu1 %v8499_v56 }
 0x92e   :  { %5546 = vmatpush1.bf16.msra.mxu0 %v8500_v16  ;;  %5578 = vmatpush1.bf16.msra.mxu1 %v8501_v50 }
 0x92f   :  { %5580 = vmatprep.subr.bf16.mxu0 %v8502_v43  ;;  %5612 = vmatprep.subr.bf16.mxu1 %v8503_v11 }
 0x9e4   :  { %v2779_v2 = vpop.f32.mrb[8].mxu0  ;;  %v2850_v52 = vpop.f32.mrb[8].mxu1 }
 0x9e5   :  { %v6163_v5 = vadd.f32 %v2779_v2, %v8504_v1  ;;  %v2781_v55 = vpop.f32.mrb[9].mxu0  ;;  %v2852_v15 = vpop.f32.mrb[9].mxu1  ;;  %v6179_v50 = vadd.f32 %v2850_v52, %v7146_v31 }
 0x9e6   :  { %v6164_v19 = vadd.f32 %v2781_v55, %v8326_v27  ;;  %v6180_v16 = vadd.f32 %v2852_v15, %v8327_v20 }
 0x9e7   :  { %v4581_v6 = vmul.f32 -1.442695, %v6163_v5 }
 0x9e8   :  { %v4582_v34 = vmul.f32 -1.442695, %v6164_v19  ;;  %v4583_v56 = vmul.f32 -1.442695, %v6180_v16 }
 0x9e9   :  { %6418 = vpow2.f32 %v4581_v6 }
 0x9ea   :  { %6420 = vpow2.f32 %v4582_v34 }
 0x9eb   :  { %6422 = vpow2.f32 %v4583_v56 }
 0x9ec   :  { %6424 = vtanh.f32 %v6179_v50  ;;  %v8510_v50 = vld [vmem:[#allocation20_spill] sm:$0xff] }
 0x9f3   :  { %v6419_v43 = vpop.eup %6418 }
 0x9f4   :  { %v6421_v42 = vpop.eup %6420  ;;  %v2862_v11 = vadd.f32 1.0, %v6419_v43  ;;  %v8511_v43 = vld [vmem:[#allocation21_spill] sm:$0xff] }
 0x9f5   :  { %v2868_v18 = vadd.f32 1.0, %v6421_v42  ;;  %v6423_v2 = vpop.eup %6422  ;;  %v8507_v42 = vld [vmem:[#allocation17_spill] sm:$0xff] }
 0x9f6   :  { %6426 = vrcp.f32 %v2862_v11  ;;  %v6425_v1 = vpop.eup %6424  ;;  %v2875_v6 = vadd.f32 1.0, %v6423_v2  ;;  %v8509_v11 = vld [vmem:[#allocation19_spill] sm:$0xff] }
 0x9f7   :  { %6428 = vrcp.f32 %v2868_v18  ;;  %v8506_v18 = vld [vmem:[#allocation16_spill] sm:$0xff] }
 0x9f8   :  { %6430 = vrcp.f32 %v2875_v6 }
 0xa00   :  { %v6427_v55 = vpop.eup %6426 }
 0xa01   :  { %v6429_v5 = vpop.eup %6428  ;;  %v2879_v19 = vmul.f32 %v6427_v55, %v6425_v1  ;;  %v8508_v1 = vld [vmem:[#allocation18_spill] sm:$0xff] }
 0xa02   :  { %v2878_v34 = vmul.f32 %v6429_v5, %v7539_v9  ;;  %v6431_v16 = vpop.eup %6430  ;;  %v8505_v9 = vld [vmem:[#allocation15_spill] sm:$0xff]  ;;  %v8512_v5 = vld [vmem:[#allocation78_spill] sm:$0xff] }
 0xa04   :  { %v7663_v15 = vadd.f32 %v2879_v19, %v2878_v34 }
 0xa06   :  { %6432 = vtanh.f32 %v7663_v15 }
 0xa10   :  { %v6433_v52 = vpop.eup %6432 }
 0xa11   :  { %v7666_v56 = vmul.f32 %v6433_v52, %v6431_v16 }
 0xa13   :  { %2948 = vmatmul.mubr.f32.vlgmr.msra.gmra.mrb[24].mxu0 %v7666_v56  ;;  %3019 = vmatmul.mubr.f32.vlgmr.msra.gmra.mrb[24].mxu1 %v7666_v56 }
 0xa14   :  { %5582 = vmatpush1.bf16.msra.mxu0 %v6773_v24  ;;  %5614 = vmatpush1.bf16.msra.mxu1 %v6777_v28 }
 0xa15   :  { %5584 = vmatprep.subr.bf16.mxu0 %v6780_v32  ;;  %5616 = vmatprep.subr.bf16.mxu1 %v6782_v33 }
 0xa16   :  { %3117 = vmatprep.mubr.f32.mxu0 %v8231_v25  ;;  %3188 = vmatprep.mubr.f32.mxu1 %v8231_v25 }
 0xa18   :  { %5586 = vmatpush1.bf16.msra.mxu0 %v6789_v37  ;;  %5618 = vmatpush1.bf16.msra.mxu1 %v6793_v41 }
 0xa19   :  { %5588 = vmatprep.subr.bf16.mxu0 %v6797_v45  ;;  %5620 = vmatprep.subr.bf16.mxu1 %v6804_v49 }
 0xa1c   :  { %5590 = vmatpush1.bf16.msra.mxu0 %v6808_v53  ;;  %5622 = vmatpush1.bf16.msra.mxu1 %v6812_v57 }
 0xa1d   :  { %5592 = vmatprep.subr.bf16.mxu0 %v6816_v60  ;;  %5624 = vmatprep.subr.bf16.mxu1 %v6820_v63 }
 0xa20   :  { %5594 = vmatpush1.bf16.msra.mxu0 %v6827_v4  ;;  %5626 = vmatpush1.bf16.msra.mxu1 %v6831_v7 }
 0xa21   :  { %5596 = vmatprep.subr.bf16.mxu0 %v6835_v10  ;;  %5628 = vmatprep.subr.bf16.mxu1 %v6839_v13 }
 0xa24   :  { %5598 = vmatpush1.bf16.msra.mxu0 %v6846_v17  ;;  %5630 = vmatpush1.bf16.msra.mxu1 %v6850_v22 }
 0xa25   :  { %5600 = vmatprep.subr.bf16.mxu0 %v6854_v26  ;;  %5632 = vmatprep.subr.bf16.mxu1 %v6858_v30 }
 0xa28   :  { %5602 = vmatpush1.bf16.msra.mxu0 %v6865_v36  ;;  %5634 = vmatpush1.bf16.msra.mxu1 %v6869_v40 }
 0xa29   :  { %5604 = vmatprep.subr.bf16.mxu0 %v6873_v44  ;;  %5636 = vmatprep.subr.bf16.mxu1 %v6877_v48 }
 0xa2c   :  { %5606 = vmatpush1.bf16.msra.mxu0 %v6884_v54  ;;  %5638 = vmatpush1.bf16.msra.mxu1 %v8505_v9 }
 0xa2d   :  { %5608 = vmatprep.subr.bf16.mxu0 %v8506_v18  ;;  %5640 = vmatprep.subr.bf16.mxu1 %v8507_v42 }
 0xa30   :  { %5610 = vmatpush1.bf16.msra.mxu0 %v8508_v1  ;;  %5642 = vmatpush1.bf16.msra.mxu1 %v8509_v11 }
 0xa31   :  { %5644 = vmatprep.subr.bf16.mxu0 %v8510_v50  ;;  %5676 = vmatprep.subr.bf16.mxu1 %v8511_v43 }
 0xae6   :  { %v2949_v2 = vpop.f32.mrb[24].mxu0  ;;  %v3020_v55 = vpop.f32.mrb[24].mxu1 }
 0xae7   :  { %v6203_v19 = vadd.f32 %v2949_v2, %v8512_v5  ;;  %v2951_v6 = vpop.f32.mrb[25].mxu0  ;;  %v3022_v34 = vpop.f32.mrb[25].mxu1  ;;  %v6205_v11 = vadd.f32 %v3020_v55, %v7210_v29  ;;  %v8518_v55 = vld [vmem:[#allocation32_spill] sm:$0xff] }
 0xae8   :  { %v6204_v16 = vadd.f32 %v2951_v6, %v7199_v12  ;;  %v6206_v1 = vadd.f32 %v3022_v34, %v8332_v46 }
 0xae9   :  { %v4584_v52 = vmul.f32 -1.442695, %v6203_v19 }
 0xaea   :  { %v4585_v18 = vmul.f32 -1.442695, %v6204_v16  ;;  %v4586_v42 = vmul.f32 -1.442695, %v6206_v1 }
 0xaeb   :  { %6434 = vpow2.f32 %v4584_v52 }
 0xaec   :  { %6436 = vpow2.f32 %v4585_v18 }
 0xaed   :  { %6438 = vpow2.f32 %v4586_v42 }
 0xaee   :  { %6440 = vtanh.f32 %v6205_v11  ;;  %v8516_v11 = vld [vmem:[#allocation30_spill] sm:$0xff] }
 0xaf5   :  { %v6435_v50 = vpop.eup %6434 }
 0xaf6   :  { %v6437_v9 = vpop.eup %6436  ;;  %v3032_v43 = vadd.f32 1.0, %v6435_v50 }
 0xaf7   :  { %v3038_v54 = vadd.f32 1.0, %v6437_v9  ;;  %v6439_v2 = vpop.eup %6438  ;;  %v8515_v9 = vld [vmem:[#allocation29_spill] sm:$0xff] }
 0xaf8   :  { %6442 = vrcp.f32 %v3032_v43  ;;  %v6441_v5 = vpop.eup %6440  ;;  %v3045_v52 = vadd.f32 1.0, %v6439_v2  ;;  %v8517_v43 = vld [vmem:[#allocation31_spill] sm:$0xff]  ;;  %v8520_v2 = vld [vmem:[#allocation34_spill] sm:$0xff] }
 0xaf9   :  { %6444 = vrcp.f32 %v3038_v54  ;;  %v8513_v54 = vld [vmem:[#allocation27_spill] sm:$0xff] }
 0xafa   :  { %6446 = vrcp.f32 %v3045_v52  ;;  %v8524_v52 = vld [vmem:[#allocation38_spill] sm:$0xff] }
 0xb02   :  { %v6443_v6 = vpop.eup %6442 }
 0xb03   :  { %v6445_v19 = vpop.eup %6444  ;;  %v3049_v16 = vmul.f32 %v6443_v6, %v6441_v5  ;;  %v8519_v5 = vld [vmem:[#allocation33_spill] sm:$0xff]  ;;  %v8521_v6 = vld [vmem:[#allocation35_spill] sm:$0xff] }
 0xb04   :  { %v3048_v18 = vmul.f32 %v6445_v19, %v7585_v51  ;;  %v6447_v1 = vpop.eup %6446  ;;  %v8514_v51 = vld [vmem:[#allocation28_spill] sm:$0xff] }
 0xb05   :  { %v8522_v19 = vld [vmem:[#allocation36_spill] sm:$0xff] }
 0xb06   :  { %v7709_v34 = vadd.f32 %v3049_v16, %v3048_v18  ;;  %v8523_v16 = vld [vmem:[#allocation37_spill] sm:$0xff]  ;;  %v8525_v18 = vld [vmem:[#allocation39_spill] sm:$0xff] }
 0xb08   :  { %6448 = vtanh.f32 %v7709_v34 }
 0xb12   :  { %v6449_v50 = vpop.eup %6448 }
 0xb13   :  { %v3052_v42 = vmul.f32 %v6449_v50, %v6447_v1  ;;  %v8526_v1 = vld [vmem:[#allocation40_spill] sm:$0xff]  ;;  %v8527_v50 = vld [vmem:[#allocation41_spill] sm:$0xff] }
 0xb15   :  { %3118 = vmatmul.mubr.f32.vlgmr.msra.gmra.mrb[26].mxu0 %v3052_v42  ;;  %3189 = vmatmul.mubr.f32.vlgmr.msra.gmra.mrb[26].mxu1 %v3052_v42  ;;  %v8528_v42 = vld [vmem:[#allocation42_spill] sm:$0xff] }
 0xb16   :  { %5646 = vmatpush1.bf16.msra.mxu0 %v6919_v35  ;;  %5678 = vmatpush1.bf16.msra.mxu1 %v6923_v38 }
 0xb17   :  { %5648 = vmatprep.subr.bf16.mxu0 %v6925_v39  ;;  %5680 = vmatprep.subr.bf16.mxu1 %v6929_v47 }
 0xb18   :  { %3263 = vmatprep.mubr.f32.mxu0 %v8231_v25  ;;  %3334 = vmatprep.mubr.f32.mxu1 %v8231_v25 }
 0xb1a   :  { %5650 = vmatpush1.bf16.msra.mxu0 %v6935_v59  ;;  %5682 = vmatpush1.bf16.msra.mxu1 %v6939_v61 }
 0xb1b   :  { %5652 = vmatprep.subr.bf16.mxu0 %v6941_v0  ;;  %5684 = vmatprep.subr.bf16.mxu1 %v6944_v8 }
 0xb1e   :  { %5654 = vmatpush1.bf16.msra.mxu0 %v6949_v23  ;;  %5686 = vmatpush1.bf16.msra.mxu1 %v8273_v14 }
 0xb1f   :  { %5656 = vmatprep.subr.bf16.mxu0 %v8274_v21  ;;  %5688 = vmatprep.subr.bf16.mxu1 %v8333_v3 }
 0xb22   :  { %5658 = vmatpush1.bf16.msra.mxu0 %v8393_v62  ;;  %5690 = vmatpush1.bf16.msra.mxu1 %v8453_v58 }
 0xb23   :  { %5660 = vmatprep.subr.bf16.mxu0 %v8513_v54  ;;  %5692 = vmatprep.subr.bf16.mxu1 %v8514_v51 }
 0xb26   :  { %5662 = vmatpush1.bf16.msra.mxu0 %v8515_v9  ;;  %5694 = vmatpush1.bf16.msra.mxu1 %v8516_v11 }
 0xb27   :  { %5664 = vmatprep.subr.bf16.mxu0 %v8517_v43  ;;  %5696 = vmatprep.subr.bf16.mxu1 %v8518_v55  ;;  %v8529_v55 = vld [vmem:[#allocation43_spill] sm:$0xff] }
 0xb2a   :  { %5666 = vmatpush1.bf16.msra.mxu0 %v8519_v5  ;;  %5698 = vmatpush1.bf16.msra.mxu1 %v8520_v2  ;;  %v8530_v5 = vld [vmem:[#allocation44_spill] sm:$0xff]  ;;  %v8563_v2 = vld [vmem:[#allocation75_spill] sm:$0xff] }
 0xb2b   :  { %5668 = vmatprep.subr.bf16.mxu0 %v8521_v6  ;;  %5700 = vmatprep.subr.bf16.mxu1 %v8522_v19  ;;  %v8531_v19 = vld [vmem:[#allocation45_spill] sm:$0xff]  ;;  %v8545_v6 = vld [vmem:[#allocation59_spill] sm:$0xff] }
 0xb2e   :  { %5670 = vmatpush1.bf16.msra.mxu0 %v8523_v16  ;;  %5702 = vmatpush1.bf16.msra.mxu1 %v8524_v52  ;;  %v8532_v16 = vld [vmem:[#allocation46_spill] sm:$0xff]  ;;  %v8533_v52 = vld [vmem:[#allocation47_spill] sm:$0xff] }
 0xb2f   :  { %5672 = vmatprep.subr.bf16.mxu0 %v8525_v18  ;;  %5704 = vmatprep.subr.bf16.mxu1 %v8526_v1  ;;  %v8534_v18 = vld [vmem:[#allocation48_spill] sm:$0xff]  ;;  %v8544_v1 = vld [vmem:[#allocation58_spill] sm:$0xff] }
 0xb32   :  { %5674 = vmatpush1.bf16.msra.mxu0 %v8527_v50  ;;  %5706 = vmatpush1.bf16.msra.mxu1 %v8528_v42  ;;  %v8535_v42 = vld [vmem:[#allocation49_spill] sm:$0xff]  ;;  %v8538_v50 = vld [vmem:[#allocation52_spill] sm:$0xff] }
 0xb33   :  { %5708 = vmatprep.subr.bf16.mxu0 %v8529_v55  ;;  %5740 = vmatprep.subr.bf16.mxu1 %v8530_v5  ;;  %v8536_v55 = vld [vmem:[#allocation50_spill] sm:$0xff]  ;;  %v8537_v5 = vld [vmem:[#allocation51_spill] sm:$0xff] }
 0xb35   :  { %3264 = vmatmul.mubr.f32.vlgmr.msra.gmra.mrb[10].mxu0 %v7666_v56  ;;  %3335 = vmatmul.mubr.f32.vlgmr.msra.gmra.mrb[10].mxu1 %v7666_v56  ;;  %v8539_v56 = vld [vmem:[#allocation53_spill] sm:$0xff] }
 0xb36   :  { %5710 = vmatpush1.bf16.msra.mxu0 %v8531_v19  ;;  %5742 = vmatpush1.bf16.msra.mxu1 %v8532_v16  ;;  %v8540_v19 = vld [vmem:[#allocation54_spill] sm:$0xff]  ;;  %v8541_v16 = vld [vmem:[#allocation55_spill] sm:$0xff] }
 0xb37   :  { %5712 = vmatprep.subr.bf16.mxu0 %v8533_v52  ;;  %5744 = vmatprep.subr.bf16.mxu1 %v8534_v18  ;;  %v8542_v52 = vld [vmem:[#allocation56_spill] sm:$0xff]  ;;  %v8543_v18 = vld [vmem:[#allocation57_spill] sm:$0xff] }
 0xb38   :  { %3433 = vmatprep.mubr.f32.mxu0 %v8231_v25  ;;  %3504 = vmatprep.mubr.f32.mxu1 %v8231_v25 }
 0xb3a   :  { %5714 = vmatpush1.bf16.msra.mxu0 %v8535_v42  ;;  %5746 = vmatpush1.bf16.msra.mxu1 %v8536_v55  ;;  %v8546_v42 = vld [vmem:[#allocation60_spill] sm:$0xff]  ;;  %v8547_v55 = vld [vmem:[#allocation61_spill] sm:$0xff] }
 0xb3b   :  { %5716 = vmatprep.subr.bf16.mxu0 %v8537_v5  ;;  %5748 = vmatprep.subr.bf16.mxu1 %v8538_v50  ;;  %v8548_v5 = vld [vmem:[#allocation62_spill] sm:$0xff]  ;;  %v8549_v50 = vld [vmem:[#allocation63_spill] sm:$0xff] }
 0xb3e   :  { %5718 = vmatpush1.bf16.msra.mxu0 %v8539_v56  ;;  %5750 = vmatpush1.bf16.msra.mxu1 %v8540_v19  ;;  %v8550_v56 = vld [vmem:[#allocation64_spill] sm:$0xff]  ;;  %v8551_v19 = vld [vmem:[#allocation65_spill] sm:$0xff] }
 0xb3f   :  { %5720 = vmatprep.subr.bf16.mxu0 %v8541_v16  ;;  %5752 = vmatprep.subr.bf16.mxu1 %v8542_v52  ;;  %v8552_v16 = vld [vmem:[#allocation66_spill] sm:$0xff]  ;;  %v8553_v52 = vld [vmem:[#allocation67_spill] sm:$0xff] }
 0xb42   :  { %5722 = vmatpush1.bf16.msra.mxu0 %v8543_v18  ;;  %5754 = vmatpush1.bf16.msra.mxu1 %v8544_v1  ;;  %v8554_v18 = vld [vmem:[#allocation68_spill] sm:$0xff]  ;;  %v8555_v1 = vld [vmem:[#allocation69_spill] sm:$0xff] }
 0xb43   :  { %5724 = vmatprep.subr.bf16.mxu0 %v8545_v6  ;;  %5756 = vmatprep.subr.bf16.mxu1 %v8546_v42  ;;  %v8556_v6 = vld [vmem:[#allocation70_spill] sm:$0xff]  ;;  %v8557_v42 = vld [vmem:[#allocation71_spill] sm:$0xff] }
 0xb46   :  { %5726 = vmatpush1.bf16.msra.mxu0 %v8547_v55  ;;  %5758 = vmatpush1.bf16.msra.mxu1 %v8548_v5  ;;  %v8558_v55 = vld [vmem:[#allocation72_spill] sm:$0xff]  ;;  %v8559_v5 = vld [vmem:[#allocation73_spill] sm:$0xff] }
 0xb47   :  { %5728 = vmatprep.subr.bf16.mxu0 %v8549_v50  ;;  %5760 = vmatprep.subr.bf16.mxu1 %v8550_v56  ;;  %v8560_v50 = vld [vmem:[#allocation74_spill] sm:$0xff]  ;;  %v8561_v56 = vld [vmem:[#allocation11_spill] sm:$0xff] }
 0xb4a   :  { %5730 = vmatpush1.bf16.msra.mxu0 %v8551_v19  ;;  %5762 = vmatpush1.bf16.msra.mxu1 %v8552_v16  ;;  %v8562_v19 = vld [vmem:[#allocation12_spill] sm:$0xff] }
 0xb4b   :  { %5732 = vmatprep.subr.bf16.mxu0 %v8553_v52  ;;  %5764 = vmatprep.subr.bf16.mxu1 %v8554_v18 }
 0xb4e   :  { %5734 = vmatpush1.bf16.msra.mxu0 %v8555_v1  ;;  %5766 = vmatpush1.bf16.msra.mxu1 %v8556_v6 }
 0xb4f   :  { %5736 = vmatprep.subr.bf16.mxu0 %v8557_v42  ;;  %5768 = vmatprep.subr.bf16.mxu1 %v8558_v55 }
 0xb52   :  { %5738 = vmatpush1.bf16.msra.mxu0 %v8559_v5  ;;  %5770 = vmatpush1.bf16.msra.mxu1 %v8560_v50 }
 0xb53   :  { %5772 = vmatprep.subr.bf16.mxu0 %v8561_v56  ;;  %5804 = vmatprep.subr.bf16.mxu1 %v8562_v19 }
 0xc08   :  { %v3265_v16 = vpop.f32.mrb[10].mxu0  ;;  %v3336_v52 = vpop.f32.mrb[10].mxu1 }
 0xc09   :  { %v6165_v18 = vadd.f32 %v3265_v16, %v8563_v2  ;;  %v3267_v43 = vpop.f32.mrb[11].mxu0  ;;  %v3338_v1 = vpop.f32.mrb[11].mxu1  ;;  %v6181_v50 = vadd.f32 %v3336_v52, %v7146_v31 }
 0xc0a   :  { %v6166_v6 = vadd.f32 %v3267_v43, %v8326_v27  ;;  %v6182_v5 = vadd.f32 %v3338_v1, %v8327_v20 }
 0xc0b   :  { %v4587_v11 = vmul.f32 -1.442695, %v6165_v18 }
 0xc0c   :  { %v4588_v42 = vmul.f32 -1.442695, %v6166_v6  ;;  %v4589_v55 = vmul.f32 -1.442695, %v6182_v5 }
 0xc0d   :  { %6450 = vpow2.f32 %v4587_v11 }
 0xc0e   :  { %6452 = vpow2.f32 %v4588_v42 }
 0xc0f   :  { %6454 = vpow2.f32 %v4589_v55 }
 0xc10   :  { %6456 = vtanh.f32 %v6181_v50  ;;  %v8569_v50 = vld [vmem:[#allocation19_spill] sm:$0xff] }
 0xc17   :  { %v6451_v56 = vpop.eup %6450 }
 0xc18   :  { %v6453_v9 = vpop.eup %6452  ;;  %v3348_v19 = vadd.f32 1.0, %v6451_v56  ;;  %v8570_v56 = vld [vmem:[#allocation20_spill] sm:$0xff] }
 0xc19   :  { %v3354_v51 = vadd.f32 1.0, %v6453_v9  ;;  %v6455_v16 = vpop.eup %6454  ;;  %v8566_v9 = vld [vmem:[#allocation16_spill] sm:$0xff] }
 0xc1a   :  { %6458 = vrcp.f32 %v3348_v19  ;;  %v6457_v2 = vpop.eup %6456  ;;  %v3361_v11 = vadd.f32 1.0, %v6455_v16  ;;  %v8568_v19 = vld [vmem:[#allocation18_spill] sm:$0xff]  ;;  %v8571_v16 = vld [vmem:[#allocation21_spill] sm:$0xff] }
 0xc1b   :  { %6460 = vrcp.f32 %v3354_v51  ;;  %v8565_v51 = vld [vmem:[#allocation15_spill] sm:$0xff] }
 0xc1c   :  { %6462 = vrcp.f32 %v3361_v11 }
 0xc24   :  { %v6459_v43 = vpop.eup %6458 }
 0xc25   :  { %v6461_v18 = vpop.eup %6460  ;;  %v3365_v6 = vmul.f32 %v6459_v43, %v6457_v2  ;;  %v8567_v2 = vld [vmem:[#allocation17_spill] sm:$0xff] }
 0xc26   :  { %v3364_v42 = vmul.f32 %v6461_v18, %v7663_v15  ;;  %v6463_v5 = vpop.eup %6462  ;;  %v8564_v15 = vld [vmem:[#allocation14_spill] sm:$0xff] }
 0xc28   :  { %v7787_v1 = vadd.f32 %v3365_v6, %v3364_v42  ;;  %v8572_v6 = vld [vmem:[#allocation78_spill] sm:$0xff] }
 0xc2a   :  { %6464 = vtanh.f32 %v7787_v1 }
 0xc34   :  { %v6465_v52 = vpop.eup %6464 }
 0xc35   :  { %v7790_v55 = vmul.f32 %v6465_v52, %v6463_v5 }
 0xc37   :  { %3434 = vmatmul.mubr.f32.vlgmr.msra.gmra.mrb[26].mxu0 %v7790_v55  ;;  %3505 = vmatmul.mubr.f32.vlgmr.msra.gmra.mrb[26].mxu1 %v7790_v55 }
 0xc38   :  { %5774 = vmatpush1.bf16.msra.mxu0 %v6773_v24  ;;  %5806 = vmatpush1.bf16.msra.mxu1 %v6777_v28 }
 0xc39   :  { %5776 = vmatprep.subr.bf16.mxu0 %v6780_v32  ;;  %5808 = vmatprep.subr.bf16.mxu1 %v6782_v33 }
 0xc3a   :  { %3603 = vmatprep.mubr.f32.mxu0 %v8231_v25  ;;  %3674 = vmatprep.mubr.f32.mxu1 %v8231_v25 }
 0xc3c   :  { %5778 = vmatpush1.bf16.msra.mxu0 %v6789_v37  ;;  %5810 = vmatpush1.bf16.msra.mxu1 %v6793_v41 }
 0xc3d   :  { %5780 = vmatprep.subr.bf16.mxu0 %v6797_v45  ;;  %5812 = vmatprep.subr.bf16.mxu1 %v6804_v49 }
 0xc40   :  { %5782 = vmatpush1.bf16.msra.mxu0 %v6808_v53  ;;  %5814 = vmatpush1.bf16.msra.mxu1 %v6812_v57 }
 0xc41   :  { %5784 = vmatprep.subr.bf16.mxu0 %v6816_v60  ;;  %5816 = vmatprep.subr.bf16.mxu1 %v6820_v63 }
 0xc44   :  { %5786 = vmatpush1.bf16.msra.mxu0 %v6827_v4  ;;  %5818 = vmatpush1.bf16.msra.mxu1 %v6831_v7 }
 0xc45   :  { %5788 = vmatprep.subr.bf16.mxu0 %v6835_v10  ;;  %5820 = vmatprep.subr.bf16.mxu1 %v6839_v13 }
 0xc48   :  { %5790 = vmatpush1.bf16.msra.mxu0 %v6846_v17  ;;  %5822 = vmatpush1.bf16.msra.mxu1 %v6850_v22 }
 0xc49   :  { %5792 = vmatprep.subr.bf16.mxu0 %v6854_v26  ;;  %5824 = vmatprep.subr.bf16.mxu1 %v6858_v30 }
 0xc4c   :  { %5794 = vmatpush1.bf16.msra.mxu0 %v6865_v36  ;;  %5826 = vmatpush1.bf16.msra.mxu1 %v6869_v40 }
 0xc4d   :  { %5796 = vmatprep.subr.bf16.mxu0 %v6873_v44  ;;  %5828 = vmatprep.subr.bf16.mxu1 %v6877_v48 }
 0xc50   :  { %5798 = vmatpush1.bf16.msra.mxu0 %v8564_v15  ;;  %5830 = vmatpush1.bf16.msra.mxu1 %v8565_v51 }
 0xc51   :  { %5800 = vmatprep.subr.bf16.mxu0 %v8566_v9  ;;  %5832 = vmatprep.subr.bf16.mxu1 %v8567_v2 }
 0xc54   :  { %5802 = vmatpush1.bf16.msra.mxu0 %v8568_v19  ;;  %5834 = vmatpush1.bf16.msra.mxu1 %v8569_v50 }
 0xc55   :  { %5836 = vmatprep.subr.bf16.mxu0 %v8570_v56  ;;  %5868 = vmatprep.subr.bf16.mxu1 %v8571_v16 }
 0xd0a   :  { %v3435_v43 = vpop.f32.mrb[26].mxu0  ;;  %v3506_v18 = vpop.f32.mrb[26].mxu1 }
 0xd0b   :  { %v6207_v11 = vadd.f32 %v3435_v43, %v8572_v6  ;;  %v3437_v42 = vpop.f32.mrb[27].mxu0  ;;  %v3508_v5 = vpop.f32.mrb[27].mxu1  ;;  %v6209_v50 = vadd.f32 %v3506_v18, %v7210_v29  ;;  %v8578_v18 = vld [vmem:[#allocation33_spill] sm:$0xff] }
 0xd0c   :  { %v6208_v52 = vadd.f32 %v3437_v42, %v7199_v12  ;;  %v6210_v19 = vadd.f32 %v3508_v5, %v8332_v46 }
 0xd0d   :  { %v4590_v51 = vmul.f32 -1.442695, %v6207_v11 }
 0xd0e   :  { %v4591_v9 = vmul.f32 -1.442695, %v6208_v52  ;;  %v4592_v2 = vmul.f32 -1.442695, %v6210_v19 }
 0xd0f   :  { %6466 = vpow2.f32 %v4590_v51 }
 0xd10   :  { %6468 = vpow2.f32 %v4591_v9 }
 0xd11   :  { %6470 = vpow2.f32 %v4592_v2 }
 0xd12   :  { %6472 = vtanh.f32 %v6209_v50  ;;  %v8576_v50 = vld [vmem:[#allocation31_spill] sm:$0xff] }
 0xd19   :  { %v6467_v56 = vpop.eup %6466 }
 0xd1a   :  { %v6469_v15 = vpop.eup %6468  ;;  %v3518_v16 = vadd.f32 1.0, %v6467_v56 }
 0xd1b   :  { %v3524_v48 = vadd.f32 1.0, %v6469_v15  ;;  %v6471_v43 = vpop.eup %6470  ;;  %v8575_v15 = vld [vmem:[#allocation30_spill] sm:$0xff] }
 0xd1c   :  { %6474 = vrcp.f32 %v3518_v16  ;;  %v6473_v6 = vpop.eup %6472  ;;  %v3531_v51 = vadd.f32 1.0, %v6471_v43  ;;  %v8577_v16 = vld [vmem:[#allocation32_spill] sm:$0xff]  ;;  %v8580_v43 = vld [vmem:[#allocation35_spill] sm:$0xff] }
 0xd1d   :  { %6476 = vrcp.f32 %v3524_v48  ;;  %v8573_v48 = vld [vmem:[#allocation28_spill] sm:$0xff] }
 0xd1e   :  { %6478 = vrcp.f32 %v3531_v51  ;;  %v8584_v51 = vld [vmem:[#allocation39_spill] sm:$0xff] }
 0xd26   :  { %v6475_v42 = vpop.eup %6474 }
 0xd27   :  { %v6477_v11 = vpop.eup %6476  ;;  %v3535_v52 = vmul.f32 %v6475_v42, %v6473_v6  ;;  %v8579_v6 = vld [vmem:[#allocation34_spill] sm:$0xff]  ;;  %v8581_v42 = vld [vmem:[#allocation36_spill] sm:$0xff] }
 0xd28   :  { %v3534_v9 = vmul.f32 %v6477_v11, %v7709_v34  ;;  %v6479_v19 = vpop.eup %6478  ;;  %v8574_v34 = vld [vmem:[#allocation29_spill] sm:$0xff] }
 0xd29   :  { %v8582_v11 = vld [vmem:[#allocation37_spill] sm:$0xff] }
 0xd2a   :  { %v7833_v5 = vadd.f32 %v3535_v52, %v3534_v9  ;;  %v8583_v52 = vld [vmem:[#allocation38_spill] sm:$0xff]  ;;  %v8585_v9 = vld [vmem:[#allocation40_spill] sm:$0xff] }
 0xd2c   :  { %6480 = vtanh.f32 %v7833_v5 }
 0xd36   :  { %v6481_v56 = vpop.eup %6480 }
 0xd37   :  { %v3538_v2 = vmul.f32 %v6481_v56, %v6479_v19  ;;  %v8586_v19 = vld [vmem:[#allocation41_spill] sm:$0xff]  ;;  %v8587_v56 = vld [vmem:[#allocation42_spill] sm:$0xff] }
 0xd39   :  { %3604 = vmatmul.mubr.f32.vlgmr.msra.gmra.mrb[28].mxu0 %v3538_v2  ;;  %3675 = vmatmul.mubr.f32.vlgmr.msra.gmra.mrb[28].mxu1 %v3538_v2  ;;  %v8588_v2 = vld [vmem:[#allocation43_spill] sm:$0xff] }
 0xd3a   :  { %5838 = vmatpush1.bf16.msra.mxu0 %v6919_v35  ;;  %5870 = vmatpush1.bf16.msra.mxu1 %v6923_v38 }
 0xd3b   :  { %5840 = vmatprep.subr.bf16.mxu0 %v6925_v39  ;;  %5872 = vmatprep.subr.bf16.mxu1 %v6929_v47 }
 0xd3c   :  { %3749 = vmatprep.mubr.f32.mxu0 %v8231_v25  ;;  %3820 = vmatprep.mubr.f32.mxu1 %v8231_v25 }
 0xd3e   :  { %5842 = vmatpush1.bf16.msra.mxu0 %v6935_v59  ;;  %5874 = vmatpush1.bf16.msra.mxu1 %v6939_v61 }
 0xd3f   :  { %5844 = vmatprep.subr.bf16.mxu0 %v6941_v0  ;;  %5876 = vmatprep.subr.bf16.mxu1 %v6944_v8 }
 0xd42   :  { %5846 = vmatpush1.bf16.msra.mxu0 %v6949_v23  ;;  %5878 = vmatpush1.bf16.msra.mxu1 %v8273_v14 }
 0xd43   :  { %5848 = vmatprep.subr.bf16.mxu0 %v8274_v21  ;;  %5880 = vmatprep.subr.bf16.mxu1 %v8333_v3 }
 0xd46   :  { %5850 = vmatpush1.bf16.msra.mxu0 %v8393_v62  ;;  %5882 = vmatpush1.bf16.msra.mxu1 %v8453_v58 }
 0xd47   :  { %5852 = vmatprep.subr.bf16.mxu0 %v8513_v54  ;;  %5884 = vmatprep.subr.bf16.mxu1 %v8573_v48 }
 0xd4a   :  { %5854 = vmatpush1.bf16.msra.mxu0 %v8574_v34  ;;  %5886 = vmatpush1.bf16.msra.mxu1 %v8575_v15 }
 0xd4b   :  { %5856 = vmatprep.subr.bf16.mxu0 %v8576_v50  ;;  %5888 = vmatprep.subr.bf16.mxu1 %v8577_v16 }
 0xd4e   :  { %5858 = vmatpush1.bf16.msra.mxu0 %v8578_v18  ;;  %5890 = vmatpush1.bf16.msra.mxu1 %v8579_v6  ;;  %v8589_v18 = vld [vmem:[#allocation44_spill] sm:$0xff]  ;;  %v8622_v6 = vld [vmem:[#allocation75_spill] sm:$0xff] }
 0xd4f   :  { %5860 = vmatprep.subr.bf16.mxu0 %v8580_v43  ;;  %5892 = vmatprep.subr.bf16.mxu1 %v8581_v42  ;;  %v8590_v42 = vld [vmem:[#allocation45_spill] sm:$0xff]  ;;  %v8604_v43 = vld [vmem:[#allocation59_spill] sm:$0xff] }
 0xd52   :  { %5862 = vmatpush1.bf16.msra.mxu0 %v8582_v11  ;;  %5894 = vmatpush1.bf16.msra.mxu1 %v8583_v52  ;;  %v8591_v11 = vld [vmem:[#allocation46_spill] sm:$0xff]  ;;  %v8592_v52 = vld [vmem:[#allocation47_spill] sm:$0xff] }
 0xd53   :  { %5864 = vmatprep.subr.bf16.mxu0 %v8584_v51  ;;  %5896 = vmatprep.subr.bf16.mxu1 %v8585_v9  ;;  %v8593_v51 = vld [vmem:[#allocation48_spill] sm:$0xff]  ;;  %v8603_v9 = vld [vmem:[#allocation58_spill] sm:$0xff] }
 0xd56   :  { %5866 = vmatpush1.bf16.msra.mxu0 %v8586_v19  ;;  %5898 = vmatpush1.bf16.msra.mxu1 %v8587_v56  ;;  %v8594_v56 = vld [vmem:[#allocation49_spill] sm:$0xff]  ;;  %v8597_v19 = vld [vmem:[#allocation52_spill] sm:$0xff] }
 0xd57   :  { %5900 = vmatprep.subr.bf16.mxu0 %v8588_v2  ;;  %5932 = vmatprep.subr.bf16.mxu1 %v8589_v18  ;;  %v8595_v2 = vld [vmem:[#allocation50_spill] sm:$0xff]  ;;  %v8596_v18 = vld [vmem:[#allocation51_spill] sm:$0xff] }
 0xd59   :  { %3750 = vmatmul.mubr.f32.vlgmr.msra.gmra.mrb[12].mxu0 %v7790_v55  ;;  %3821 = vmatmul.mubr.f32.vlgmr.msra.gmra.mrb[12].mxu1 %v7790_v55  ;;  %v8598_v55 = vld [vmem:[#allocation53_spill] sm:$0xff] }
 0xd5a   :  { %5902 = vmatpush1.bf16.msra.mxu0 %v8590_v42  ;;  %5934 = vmatpush1.bf16.msra.mxu1 %v8591_v11  ;;  %v8599_v42 = vld [vmem:[#allocation54_spill] sm:$0xff]  ;;  %v8600_v11 = vld [vmem:[#allocation55_spill] sm:$0xff] }
 0xd5b   :  { %5904 = vmatprep.subr.bf16.mxu0 %v8592_v52  ;;  %5936 = vmatprep.subr.bf16.mxu1 %v8593_v51  ;;  %v8601_v52 = vld [vmem:[#allocation56_spill] sm:$0xff]  ;;  %v8602_v51 = vld [vmem:[#allocation57_spill] sm:$0xff] }
 0xd5c   :  { %3919 = vmatprep.mubr.f32.mxu0 %v8231_v25  ;;  %3990 = vmatprep.mubr.f32.mxu1 %v8231_v25 }
 0xd5e   :  { %5906 = vmatpush1.bf16.msra.mxu0 %v8594_v56  ;;  %5938 = vmatpush1.bf16.msra.mxu1 %v8595_v2  ;;  %v8605_v56 = vld [vmem:[#allocation60_spill] sm:$0xff]  ;;  %v8606_v2 = vld [vmem:[#allocation61_spill] sm:$0xff] }
 0xd5f   :  { %5908 = vmatprep.subr.bf16.mxu0 %v8596_v18  ;;  %5940 = vmatprep.subr.bf16.mxu1 %v8597_v19  ;;  %v8607_v18 = vld [vmem:[#allocation62_spill] sm:$0xff]  ;;  %v8608_v19 = vld [vmem:[#allocation63_spill] sm:$0xff] }
 0xd62   :  { %5910 = vmatpush1.bf16.msra.mxu0 %v8598_v55  ;;  %5942 = vmatpush1.bf16.msra.mxu1 %v8599_v42  ;;  %v8609_v55 = vld [vmem:[#allocation64_spill] sm:$0xff]  ;;  %v8610_v42 = vld [vmem:[#allocation65_spill] sm:$0xff] }
 0xd63   :  { %5912 = vmatprep.subr.bf16.mxu0 %v8600_v11  ;;  %5944 = vmatprep.subr.bf16.mxu1 %v8601_v52  ;;  %v8611_v11 = vld [vmem:[#allocation66_spill] sm:$0xff]  ;;  %v8612_v52 = vld [vmem:[#allocation67_spill] sm:$0xff] }
 0xd66   :  { %5914 = vmatpush1.bf16.msra.mxu0 %v8602_v51  ;;  %5946 = vmatpush1.bf16.msra.mxu1 %v8603_v9  ;;  %v8613_v51 = vld [vmem:[#allocation68_spill] sm:$0xff]  ;;  %v8614_v9 = vld [vmem:[#allocation69_spill] sm:$0xff] }
 0xd67   :  { %5916 = vmatprep.subr.bf16.mxu0 %v8604_v43  ;;  %5948 = vmatprep.subr.bf16.mxu1 %v8605_v56  ;;  %v8615_v43 = vld [vmem:[#allocation70_spill] sm:$0xff]  ;;  %v8616_v56 = vld [vmem:[#allocation71_spill] sm:$0xff] }
 0xd6a   :  { %5918 = vmatpush1.bf16.msra.mxu0 %v8606_v2  ;;  %5950 = vmatpush1.bf16.msra.mxu1 %v8607_v18  ;;  %v8617_v2 = vld [vmem:[#allocation72_spill] sm:$0xff]  ;;  %v8618_v18 = vld [vmem:[#allocation73_spill] sm:$0xff] }
 0xd6b   :  { %5920 = vmatprep.subr.bf16.mxu0 %v8608_v19  ;;  %5952 = vmatprep.subr.bf16.mxu1 %v8609_v55  ;;  %v8619_v19 = vld [vmem:[#allocation74_spill] sm:$0xff]  ;;  %v8620_v55 = vld [vmem:[#allocation11_spill] sm:$0xff] }
 0xd6e   :  { %5922 = vmatpush1.bf16.msra.mxu0 %v8610_v42  ;;  %5954 = vmatpush1.bf16.msra.mxu1 %v8611_v11  ;;  %v8621_v42 = vld [vmem:[#allocation12_spill] sm:$0xff] }
 0xd6f   :  { %5924 = vmatprep.subr.bf16.mxu0 %v8612_v52  ;;  %5956 = vmatprep.subr.bf16.mxu1 %v8613_v51 }
 0xd72   :  { %5926 = vmatpush1.bf16.msra.mxu0 %v8614_v9  ;;  %5958 = vmatpush1.bf16.msra.mxu1 %v8615_v43 }
 0xd73   :  { %5928 = vmatprep.subr.bf16.mxu0 %v8616_v56  ;;  %5960 = vmatprep.subr.bf16.mxu1 %v8617_v2 }
 0xd76   :  { %5930 = vmatpush1.bf16.msra.mxu0 %v8618_v18  ;;  %5962 = vmatpush1.bf16.msra.mxu1 %v8619_v19 }
 0xd77   :  { %5964 = vmatprep.subr.bf16.mxu0 %v8620_v55  ;;  %5996 = vmatprep.subr.bf16.mxu1 %v8621_v42 }
 0xe2c   :  { %v3751_v11 = vpop.f32.mrb[12].mxu0  ;;  %v3822_v52 = vpop.f32.mrb[12].mxu1 }
 0xe2d   :  { %v6167_v51 = vadd.f32 %v3751_v11, %v8622_v6  ;;  %v3753_v16 = vpop.f32.mrb[13].mxu0  ;;  %v3824_v9 = vpop.f32.mrb[13].mxu1  ;;  %v6183_v19 = vadd.f32 %v3822_v52, %v7146_v31 }
 0xe2e   :  { %v6168_v43 = vadd.f32 %v3753_v16, %v8326_v27  ;;  %v6184_v18 = vadd.f32 %v3824_v9, %v8327_v20 }
 0xe2f   :  { %v4593_v50 = vmul.f32 -1.442695, %v6167_v51 }
 0xe30   :  { %v4594_v56 = vmul.f32 -1.442695, %v6168_v43  ;;  %v4595_v2 = vmul.f32 -1.442695, %v6184_v18 }
 0xe31   :  { %6482 = vpow2.f32 %v4593_v50 }
 0xe32   :  { %6484 = vpow2.f32 %v4594_v56 }
 0xe33   :  { %6486 = vpow2.f32 %v4595_v2 }
 0xe34   :  { %6488 = vtanh.f32 %v6183_v19 }
 0xe3b   :  { %v6483_v55 = vpop.eup %6482 }
 0xe3c   :  { %v6485_v15 = vpop.eup %6484  ;;  %v3834_v42 = vadd.f32 1.0, %v6483_v55 }
 0xe3d   :  { %v3840_v34 = vadd.f32 1.0, %v6485_v15  ;;  %v6487_v11 = vpop.eup %6486 }
 0xe3e   :  { %6490 = vrcp.f32 %v3834_v42  ;;  %v6489_v6 = vpop.eup %6488  ;;  %v3847_v50 = vadd.f32 1.0, %v6487_v11 }
 0xe3f   :  { %6492 = vrcp.f32 %v3840_v34 }
 0xe40   :  { %6494 = vrcp.f32 %v3847_v50 }
 0xe48   :  { %v6491_v16 = vpop.eup %6490 }
 0xe49   :  { %v6493_v51 = vpop.eup %6492  ;;  %v3851_v43 = vmul.f32 %v6491_v16, %v6489_v6 }
 0xe4a   :  { %v3850_v56 = vmul.f32 %v6493_v51, %v7787_v1  ;;  %v6495_v18 = vpop.eup %6494 }
 0xe4c   :  { %v7911_v9 = vadd.f32 %v3851_v43, %v3850_v56 }
 0xe4e   :  { %6496 = vtanh.f32 %v7911_v9 }
 0xe58   :  { %v6497_v52 = vpop.eup %6496 }
 0xe59   :  { %v7914_v2 = vmul.f32 %v6497_v52, %v6495_v18  ;;  %v8650_v18 = vld [vmem:[#allocation46_spill] sm:$0xff]  ;;  %v8651_v52 = vld [vmem:[#allocation47_spill] sm:$0xff] }
 0xe5b   :  { %3920 = vmatmul.mubr.f32.vlgmr.msra.gmra.mrb[28].mxu0 %v7914_v2  ;;  %3991 = vmatmul.mubr.f32.vlgmr.msra.gmra.mrb[28].mxu1 %v7914_v2 }
 0xe5c   :  { %5966 = vmatpush1.bf16.msra.mxu0 %v6773_v24  ;;  %5998 = vmatpush1.bf16.msra.mxu1 %v6777_v28  ;;  %v8623_v24 = vld [vmem:[#allocation13_spill] sm:$0xff]  ;;  %v8624_v28 = vld [vmem:[#allocation14_spill] sm:$0xff] }
 0xe5d   :  { %5968 = vmatprep.subr.bf16.mxu0 %v6780_v32  ;;  %6000 = vmatprep.subr.bf16.mxu1 %v6782_v33  ;;  %v8625_v32 = vld [vmem:[#allocation15_spill] sm:$0xff]  ;;  %v8626_v33 = vld [vmem:[#allocation16_spill] sm:$0xff] }
 0xe5e   :  { %4089 = vmatprep.mubr.f32.mxu0 %v8231_v25  ;;  %4160 = vmatprep.mubr.f32.mxu1 %v8231_v25 }
 0xe60   :  { %5970 = vmatpush1.bf16.msra.mxu0 %v6789_v37  ;;  %6002 = vmatpush1.bf16.msra.mxu1 %v6793_v41  ;;  %v8627_v37 = vld [vmem:[#allocation17_spill] sm:$0xff]  ;;  %v8628_v41 = vld [vmem:[#allocation18_spill] sm:$0xff] }
 0xe61   :  { %5972 = vmatprep.subr.bf16.mxu0 %v6797_v45  ;;  %6004 = vmatprep.subr.bf16.mxu1 %v6804_v49  ;;  %v8629_v45 = vld [vmem:[#allocation19_spill] sm:$0xff]  ;;  %v8630_v49 = vld [vmem:[#allocation20_spill] sm:$0xff] }
 0xe64   :  { %5974 = vmatpush1.bf16.msra.mxu0 %v6808_v53  ;;  %6006 = vmatpush1.bf16.msra.mxu1 %v6812_v57  ;;  %v8631_v53 = vld [vmem:[#allocation21_spill] sm:$0xff] }
 0xe65   :  { %5976 = vmatprep.subr.bf16.mxu0 %v6816_v60  ;;  %6008 = vmatprep.subr.bf16.mxu1 %v6820_v63  ;;  %v8632_v63 = vld [vmem:[#allocation78_spill] sm:$0xff] }
 0xe68   :  { %5978 = vmatpush1.bf16.msra.mxu0 %v6827_v4  ;;  %6010 = vmatpush1.bf16.msra.mxu1 %v6831_v7 }
 0xe69   :  { %5980 = vmatprep.subr.bf16.mxu0 %v6835_v10  ;;  %6012 = vmatprep.subr.bf16.mxu1 %v6839_v13 }
 0xe6c   :  { %5982 = vmatpush1.bf16.msra.mxu0 %v6846_v17  ;;  %6014 = vmatpush1.bf16.msra.mxu1 %v6850_v22 }
 0xe6d   :  { %5984 = vmatprep.subr.bf16.mxu0 %v6854_v26  ;;  %6016 = vmatprep.subr.bf16.mxu1 %v6858_v30 }
 0xe70   :  { %5986 = vmatpush1.bf16.msra.mxu0 %v6865_v36  ;;  %6018 = vmatpush1.bf16.msra.mxu1 %v6869_v40 }
 0xe71   :  { %5988 = vmatprep.subr.bf16.mxu0 %v6873_v44  ;;  %6020 = vmatprep.subr.bf16.mxu1 %v8623_v24  ;;  %v8652_v24 = vld [vmem:[#allocation48_spill] sm:$0xff] }
 0xe74   :  { %5990 = vmatpush1.bf16.msra.mxu0 %v8624_v28  ;;  %6022 = vmatpush1.bf16.msra.mxu1 %v8625_v32  ;;  %v8653_v28 = vld [vmem:[#allocation49_spill] sm:$0xff]  ;;  %v8654_v32 = vld [vmem:[#allocation50_spill] sm:$0xff] }
 0xe75   :  { %5992 = vmatprep.subr.bf16.mxu0 %v8626_v33  ;;  %6024 = vmatprep.subr.bf16.mxu1 %v8627_v37  ;;  %v8655_v33 = vld [vmem:[#allocation51_spill] sm:$0xff]  ;;  %v8656_v37 = vld [vmem:[#allocation52_spill] sm:$0xff] }
 0xe78   :  { %5994 = vmatpush1.bf16.msra.mxu0 %v8628_v41  ;;  %6026 = vmatpush1.bf16.msra.mxu1 %v8629_v45  ;;  %v8658_v41 = vld [vmem:[#allocation54_spill] sm:$0xff]  ;;  %v8659_v45 = vld [vmem:[#allocation55_spill] sm:$0xff] }
 0xe79   :  { %6028 = vmatprep.subr.bf16.mxu0 %v8630_v49  ;;  %6060 = vmatprep.subr.bf16.mxu1 %v8631_v53  ;;  %v8660_v49 = vld [vmem:[#allocation56_spill] sm:$0xff]  ;;  %v8661_v53 = vld [vmem:[#allocation57_spill] sm:$0xff] }
 0xf2e   :  { %v3921_v57 = vpop.f32.mrb[28].mxu0  ;;  %v3992_v60 = vpop.f32.mrb[28].mxu1 }
 0xf2f   :  { %v6211_v4 = vadd.f32 %v3921_v57, %v8632_v63  ;;  %v3923_v7 = vpop.f32.mrb[29].mxu0  ;;  %v3994_v10 = vpop.f32.mrb[29].mxu1  ;;  %v6213_v36 = vadd.f32 %v3992_v60, %v7210_v29  ;;  %v8662_v57 = vld [vmem:[#allocation58_spill] sm:$0xff]  ;;  %v8664_v60 = vld [vmem:[#allocation60_spill] sm:$0xff] }
 0xf30   :  { %v6212_v13 = vadd.f32 %v3923_v7, %v7199_v12  ;;  %v6214_v26 = vadd.f32 %v3994_v10, %v8332_v46  ;;  %v8666_v7 = vld [vmem:[#allocation62_spill] sm:$0xff]  ;;  %v8667_v10 = vld [vmem:[#allocation63_spill] sm:$0xff] }
 0xf31   :  { %v4596_v17 = vmul.f32 -1.442695, %v6211_v4  ;;  %v8665_v4 = vld [vmem:[#allocation61_spill] sm:$0xff] }
 0xf32   :  { %v4597_v22 = vmul.f32 -1.442695, %v6212_v13  ;;  %v4598_v30 = vmul.f32 -1.442695, %v6214_v26  ;;  %v8668_v13 = vld [vmem:[#allocation64_spill] sm:$0xff]  ;;  %v8671_v26 = vld [vmem:[#allocation67_spill] sm:$0xff] }
 0xf33   :  { %6498 = vpow2.f32 %v4596_v17  ;;  %v8669_v17 = vld [vmem:[#allocation65_spill] sm:$0xff] }
 0xf34   :  { %6500 = vpow2.f32 %v4597_v22  ;;  %v8670_v22 = vld [vmem:[#allocation66_spill] sm:$0xff] }
 0xf35   :  { %6502 = vpow2.f32 %v4598_v30  ;;  %v8672_v30 = vld [vmem:[#allocation68_spill] sm:$0xff] }
 0xf36   :  { %6504 = vtanh.f32 %v6213_v36  ;;  %v8673_v36 = vld [vmem:[#allocation69_spill] sm:$0xff] }
 0xf3d   :  { %v6499_v40 = vpop.eup %6498 }
 0xf3e   :  { %v6501_v44 = vpop.eup %6500  ;;  %v4004_v1 = vadd.f32 1.0, %v6499_v40  ;;  %v8674_v40 = vld [vmem:[#allocation70_spill] sm:$0xff] }
 0xf3f   :  { %v4010_v34 = vadd.f32 1.0, %v6501_v44  ;;  %v6503_v15 = vpop.eup %6502  ;;  %v8675_v44 = vld [vmem:[#allocation71_spill] sm:$0xff] }
 0xf40   :  { %6506 = vrcp.f32 %v4004_v1  ;;  %v6505_v6 = vpop.eup %6504  ;;  %v4017_v11 = vadd.f32 1.0, %v6503_v15  ;;  %v8676_v1 = vld [vmem:[#allocation72_spill] sm:$0xff]  ;;  %v8678_v15 = vld [vmem:[#allocation74_spill] sm:$0xff] }
 0xf41   :  { %6508 = vrcp.f32 %v4010_v34  ;;  %v8677_v34 = vld [vmem:[#allocation73_spill] sm:$0xff] }
 0xf42   :  { %6510 = vrcp.f32 %v4017_v11 }
 0xf4a   :  { %v6507_v19 = vpop.eup %6506 }
 0xf4b   :  { %v6509_v55 = vpop.eup %6508  ;;  %v4021_v42 = vmul.f32 %v6507_v19, %v6505_v6 }
 0xf4c   :  { %v4020_v16 = vmul.f32 %v6509_v55, %v7833_v5  ;;  %v6511_v43 = vpop.eup %6510  ;;  %v8648_v5 = vld [vmem:[#allocation44_spill] sm:$0xff]  ;;  %v8679_v55 = vld [vmem:[#allocation75_spill] sm:$0xff] }
 0xf4e   :  { %v7957_v51 = vadd.f32 %v4021_v42, %v4020_v16 }
 0xf50   :  { %6512 = vtanh.f32 %v7957_v51 }
 0xf5a   :  { %v6513_v50 = vpop.eup %6512 }
 0xf5b   :  { %v4024_v56 = vmul.f32 %v6513_v50, %v6511_v43 }
 0xf5d   :  { %4090 = vmatmul.mubr.f32.vlgmr.msra.gmra.mrb[30].mxu0 %v4024_v56  ;;  %4161 = vmatmul.mubr.f32.vlgmr.msra.gmra.mrb[30].mxu1 %v4024_v56 }
 0xf5e   :  { %6030 = vmatpush1.bf16.msra.mxu0 %v6919_v35  ;;  %6062 = vmatpush1.bf16.msra.mxu1 %v6923_v38  ;;  %v8633_v35 = vld [vmem:[#allocation29_spill] sm:$0xff]  ;;  %v8634_v38 = vld [vmem:[#allocation30_spill] sm:$0xff] }
 0xf5f   :  { %6032 = vmatprep.subr.bf16.mxu0 %v6925_v39  ;;  %6064 = vmatprep.subr.bf16.mxu1 %v6929_v47  ;;  %v8635_v39 = vld [vmem:[#allocation31_spill] sm:$0xff]  ;;  %v8636_v47 = vld [vmem:[#allocation32_spill] sm:$0xff] }
 0xf60   :  { %4235 = vmatprep.mubr.f32.mxu0 %v8231_v25  ;;  %4306 = vmatprep.mubr.f32.mxu1 %v8231_v25 }
 0xf62   :  { %6034 = vmatpush1.bf16.msra.mxu0 %v6935_v59  ;;  %6066 = vmatpush1.bf16.msra.mxu1 %v6939_v61  ;;  %v8637_v59 = vld [vmem:[#allocation33_spill] sm:$0xff]  ;;  %v8638_v61 = vld [vmem:[#allocation34_spill] sm:$0xff] }
 0xf63   :  { %6036 = vmatprep.subr.bf16.mxu0 %v6941_v0  ;;  %6068 = vmatprep.subr.bf16.mxu1 %v6944_v8  ;;  %v8639_v0 = vld [vmem:[#allocation35_spill] sm:$0xff]  ;;  %v8640_v8 = vld [vmem:[#allocation36_spill] sm:$0xff] }
 0xf66   :  { %6038 = vmatpush1.bf16.msra.mxu0 %v6949_v23  ;;  %6070 = vmatpush1.bf16.msra.mxu1 %v8273_v14  ;;  %v8641_v23 = vld [vmem:[#allocation37_spill] sm:$0xff]  ;;  %v8642_v14 = vld [vmem:[#allocation38_spill] sm:$0xff] }
 0xf67   :  { %6040 = vmatprep.subr.bf16.mxu0 %v8274_v21  ;;  %6072 = vmatprep.subr.bf16.mxu1 %v8333_v3  ;;  %v8643_v21 = vld [vmem:[#allocation39_spill] sm:$0xff]  ;;  %v8644_v3 = vld [vmem:[#allocation40_spill] sm:$0xff] }
 0xf6a   :  { %6042 = vmatpush1.bf16.msra.mxu0 %v8393_v62  ;;  %6074 = vmatpush1.bf16.msra.mxu1 %v8453_v58  ;;  %v8645_v62 = vld [vmem:[#allocation41_spill] sm:$0xff]  ;;  %v8646_v58 = vld [vmem:[#allocation42_spill] sm:$0xff] }
 0xf6b   :  { %6044 = vmatprep.subr.bf16.mxu0 %v8513_v54  ;;  %6076 = vmatprep.subr.bf16.mxu1 %v8573_v48  ;;  %v8647_v54 = vld [vmem:[#allocation43_spill] sm:$0xff]  ;;  %v8649_v48 = vld [vmem:[#allocation45_spill] sm:$0xff] }
 0xf6e   :  { %6046 = vmatpush1.bf16.msra.mxu0 %v8633_v35  ;;  %6078 = vmatpush1.bf16.msra.mxu1 %v8634_v38 }
 0xf6f   :  { %6048 = vmatprep.subr.bf16.mxu0 %v8635_v39  ;;  %6080 = vmatprep.subr.bf16.mxu1 %v8636_v47 }
 0xf72   :  { %6050 = vmatpush1.bf16.msra.mxu0 %v8637_v59  ;;  %6082 = vmatpush1.bf16.msra.mxu1 %v8638_v61 }
 0xf73   :  { %6052 = vmatprep.subr.bf16.mxu0 %v8639_v0  ;;  %6084 = vmatprep.subr.bf16.mxu1 %v8640_v8 }
 0xf76   :  { %6054 = vmatpush1.bf16.msra.mxu0 %v8641_v23  ;;  %6086 = vmatpush1.bf16.msra.mxu1 %v8642_v14 }
 0xf77   :  { %6056 = vmatprep.subr.bf16.mxu0 %v8643_v21  ;;  %6088 = vmatprep.subr.bf16.mxu1 %v8644_v3 }
 0xf7a   :  { %6058 = vmatpush1.bf16.msra.mxu0 %v8645_v62  ;;  %6090 = vmatpush1.bf16.msra.mxu1 %v8646_v58 }
 0xf7b   :  { %6092 = vmatprep.subr.bf16.mxu0 %v8647_v54  ;;  %6124 = vmatprep.subr.bf16.mxu1 %v8648_v5 }
 0xf7d   :  { %4236 = vmatmul.mubr.f32.vlgmr.msra.gmra.mrb[14].mxu0 %v7914_v2  ;;  %4307 = vmatmul.mubr.f32.vlgmr.msra.gmra.mrb[14].mxu1 %v7914_v2  ;;  %v8657_v2 = vld [vmem:[#allocation53_spill] sm:$0xff] }
 0xf7e   :  { %6094 = vmatpush1.bf16.msra.mxu0 %v8649_v48  ;;  %6126 = vmatpush1.bf16.msra.mxu1 %v8650_v18 }
 0xf7f   :  { %6096 = vmatprep.subr.bf16.mxu0 %v8651_v52  ;;  %6128 = vmatprep.subr.bf16.mxu1 %v8652_v24 }
 0xf80   :  { %4405 = vmatprep.mubr.f32.mxu0 %v8231_v25  ;;  %4476 = vmatprep.mubr.f32.mxu1 %v8231_v25  ;;  %v8663_v25 = vld [vmem:[#allocation59_spill] sm:$0xff] }
 0xf82   :  { %6098 = vmatpush1.bf16.msra.mxu0 %v8653_v28  ;;  %6130 = vmatpush1.bf16.msra.mxu1 %v8654_v32 }
 0xf83   :  { %6100 = vmatprep.subr.bf16.mxu0 %v8655_v33  ;;  %6132 = vmatprep.subr.bf16.mxu1 %v8656_v37 }
 0xf86   :  { %6102 = vmatpush1.bf16.msra.mxu0 %v8657_v2  ;;  %6134 = vmatpush1.bf16.msra.mxu1 %v8658_v41 }
 0xf87   :  { %6104 = vmatprep.subr.bf16.mxu0 %v8659_v45  ;;  %6136 = vmatprep.subr.bf16.mxu1 %v8660_v49 }
 0xf8a   :  { %6106 = vmatpush1.bf16.msra.mxu0 %v8661_v53  ;;  %6138 = vmatpush1.bf16.msra.mxu1 %v8662_v57 }
 0xf8b   :  { %6108 = vmatprep.subr.bf16.mxu0 %v8663_v25  ;;  %6140 = vmatprep.subr.bf16.mxu1 %v8664_v60 }
 0xf8e   :  { %6110 = vmatpush1.bf16.msra.mxu0 %v8665_v4  ;;  %6142 = vmatpush1.bf16.msra.mxu1 %v8666_v7 }
 0xf8f   :  { %6112 = vmatprep.subr.bf16.mxu0 %v8667_v10  ;;  %6144 = vmatprep.subr.bf16.mxu1 %v8668_v13  ;;  %v4605_v13 = vld [vmem:[%s8051_s7] ss:$0 sm:$0xff] }
 0xf92   :  { %6114 = vmatpush1.bf16.msra.mxu0 %v8669_v17  ;;  %6146 = vmatpush1.bf16.msra.mxu1 %v8670_v22 }
 0xf93   :  { %6116 = vmatprep.subr.bf16.mxu0 %v8671_v26  ;;  %6148 = vmatprep.subr.bf16.mxu1 %v8672_v30  ;;  %v4606_v26 = vld [vmem:[#allocation3] ss:$0 sm:$0xff] }
 0xf96   :  { %6118 = vmatpush1.bf16.msra.mxu0 %v8673_v36  ;;  %6150 = vmatpush1.bf16.msra.mxu1 %v8674_v40 }
 0xf97   :  { %6120 = vmatprep.subr.bf16.mxu0 %v8675_v44  ;;  %6152 = vmatprep.subr.bf16.mxu1 %v8676_v1 }
 0xf9a   :  { %6122 = vmatpush1.bf16.msra.mxu0 %v8677_v34  ;;  %6154 = vmatpush1.bf16.msra.mxu1 %v8678_v15 }
0x1050   :  { %v4237_v6 = vpop.f32.mrb[14].mxu0  ;;  %v4308_v19 = vpop.f32.mrb[14].mxu1 }
0x1051   :  { %v6169_v42 = vadd.f32 %v4237_v6, %v8679_v55  ;;  %v4239_v11 = vpop.f32.mrb[15].mxu0  ;;  %v4310_v16 = vpop.f32.mrb[15].mxu1  ;;  %v6185_v39 = vadd.f32 %v4308_v19, %v7146_v31 }
0x1052   :  { %v6170_v43 = vadd.f32 %v4239_v11, %v8326_v27  ;;  %v6186_v35 = vadd.f32 %v4310_v16, %v8327_v20 }
0x1053   :  { %v4599_v50 = vmul.f32 -1.442695, %v6169_v42 }
0x1054   :  { %v4600_v56 = vmul.f32 -1.442695, %v6170_v43  ;;  %v4601_v38 = vmul.f32 -1.442695, %v6186_v35 }
0x1055   :  { %6514 = vpow2.f32 %v4599_v50 }
0x1056   :  { %6516 = vpow2.f32 %v4600_v56 }
0x1057   :  { %6518 = vpow2.f32 %v4601_v38 }
0x1058   :  { %6520 = vtanh.f32 %v6185_v39 }
0x105f   :  { %v6515_v47 = vpop.eup %6514 }
0x1060   :  { %v6517_v59 = vpop.eup %6516  ;;  %v4320_v61 = vadd.f32 1.0, %v6515_v47 }
0x1061   :  { %v4326_v0 = vadd.f32 1.0, %v6517_v59  ;;  %v6519_v8 = vpop.eup %6518 }
0x1062   :  { %6522 = vrcp.f32 %v4320_v61  ;;  %v6521_v23 = vpop.eup %6520  ;;  %v4333_v3 = vadd.f32 1.0, %v6519_v8 }
0x1063   :  { %6524 = vrcp.f32 %v4326_v0 }
0x1064   :  { %6526 = vrcp.f32 %v4333_v3 }
0x106c   :  { %v6523_v27 = vpop.eup %6522 }
0x106d   :  { %v6525_v14 = vpop.eup %6524  ;;  %v4337_v21 = vmul.f32 %v6523_v27, %v6521_v23 }
0x106e   :  { %v4336_v62 = vmul.f32 %v6525_v14, %v7911_v9  ;;  %v6527_v31 = vpop.eup %6526 }
0x1070   :  { %v4338_v20 = vadd.f32 %v4337_v21, %v4336_v62 }
0x1072   :  { %6528 = vtanh.f32 %v4338_v20 }
0x107c   :  { %v6529_v58 = vpop.eup %6528 }
0x107d   :  { %v4340_v54 = vmul.f32 %v6529_v58, %v6527_v31 }
0x107f   :  { %4406 = vmatmul.mubr.f32.vlgmr.msra.gmra.mrb[30].mxu0 %v4340_v54  ;;  %4477 = vmatmul.mubr.f32.vlgmr.msra.gmra.mrb[30].mxu1 %v4340_v54 }
0x1152   :  { %v4407_v5 = vpop.f32.mrb[30].mxu0  ;;  %v4478_v48 = vpop.f32.mrb[30].mxu1 }
0x1153   :  { %v6215_v18 = vadd.f32 %v4407_v5, %v8632_v63  ;;  %v4409_v52 = vpop.f32.mrb[31].mxu0  ;;  %v4480_v24 = vpop.f32.mrb[31].mxu1  ;;  %v6217_v2 = vadd.f32 %v4478_v48, %v7210_v29 }
0x1154   :  { %v6216_v28 = vadd.f32 %v4409_v52, %v7199_v12  ;;  %v6218_v9 = vadd.f32 %v4480_v24, %v8332_v46 }
0x1155   :  { %v4602_v32 = vmul.f32 -1.442695, %v6215_v18 }
0x1156   :  { %v4603_v33 = vmul.f32 -1.442695, %v6216_v28  ;;  %v4604_v37 = vmul.f32 -1.442695, %v6218_v9 }
0x1157   :  { %6530 = vpow2.f32 %v4602_v32 }
0x1158   :  { %6532 = vpow2.f32 %v4603_v33 }
0x1159   :  { %6534 = vpow2.f32 %v4604_v37 }
0x115a   :  { %6536 = vtanh.f32 %v6217_v2 }
0x1161   :  { %v6531_v41 = vpop.eup %6530 }
0x1162   :  { %v6533_v45 = vpop.eup %6532  ;;  %v4490_v49 = vadd.f32 1.0, %v6531_v41 }
0x1163   :  { %v4496_v53 = vadd.f32 1.0, %v6533_v45  ;;  %v6535_v63 = vpop.eup %6534 }
0x1164   :  { %6538 = vrcp.f32 %v4490_v49  ;;  %v6537_v57 = vpop.eup %6536  ;;  %v4503_v4 = vadd.f32 1.0, %v6535_v63 }
0x1165   :  { %6540 = vrcp.f32 %v4496_v53 }
0x1166   :  { %6542 = vrcp.f32 %v4503_v4 }
0x116e   :  { %v6539_v12 = vpop.eup %6538 }
0x116f   :  { %v6541_v25 = vpop.eup %6540  ;;  %v4507_v60 = vmul.f32 %v6539_v12, %v6537_v57 }
0x1170   :  { %v4506_v7 = vmul.f32 %v6541_v25, %v7957_v51  ;;  %v6543_v29 = vpop.eup %6542 }
0x1172   :  { %v4508_v46 = vadd.f32 %v4507_v60, %v4506_v7 }
0x1174   :  { %6544 = vtanh.f32 %v4508_v46 }
0x117e   :  { %v6545_v10 = vpop.eup %6544 }
0x117f   :  { %v4510_v17 = vmul.f32 %v6545_v10, %v6543_v29 }
0x1181   :  { %v4518_v22 = vmul.f32 %v4605_v13, %v4510_v17 }
0x1183   :  { %4519 = vadd.xlane.f32.xlu0 %v4518_v22 }
0x1210   :  { %v4520_v30 = vpop.xlane.xlu0 %4519 }
0x1211   :  { %v4528_v36 = vadd.f32 %v4606_v26, %v4520_v30 }
0x1213   :  { %4530 = vst.msk [vmem:[%s8053_s9] sm:$0x3] %vm4529_vm4, %v4528_v36 }
0x1214   :  { %4535 = vsyncpa [#allocation5], 1 }
0x1215   :  { %4536 = vsyncpa [#allocation7], 1 }

</bundles_post_ra>
